<compile_context>
chip_gen: v7x
topology: tpu7x:2x2x1
jax: 0.10.0
libtpu: 0.0.40
codegen_flags: <defaults>
</compile_context>

<pallas_src>
import math

import jax
import jax.numpy as jnp
from jax.experimental import pallas as pl
from jax.experimental.pallas import tpu as pltpu

# ----------------------------------------------------------------------------
# Model hyper-parameters (small, consistent with the module's forward pass)
# ----------------------------------------------------------------------------
NUM_CLASSES = 4          # out1
NUM_BIRADS = 4           # out2
D_MODEL = 32             # transformer hidden dim
NHEADS = 4
DH = D_MODEL // NHEADS
DFF = 64                 # transformer feed-forward dim
NUM_QUERIES = 8          # object queries
DETR_CLASSES = 92        # detr_resnet50 class_embed.out_features (91 + no-object)
C1, C2 = 16, 32          # tiny conv-stem channels
C1P = 32                 # conv1 channels padded to 32 (lane-friendly, zero tail)
K1P = 32                 # conv1 im2col K (3*3*3=27) padded to 32
CONV_W_ROWS = K1P + 9 * C1P + C2     # 352: [w1 | 9 conv2 taps | input_proj]

_TRANS_B = (((1,), (1,)), ((), ()))  # contract last dims of lhs and rhs (q @ k^T)

# ----------------------------------------------------------------------------
# Slab layouts (static offsets baked into the kernels)
# ----------------------------------------------------------------------------
# wd slab: (16, D_MODEL, 128) bf16; each slot holds one D-row matrix in cols [:width].
_WD = {  # name: (slot index, used width)
    "e_wqk": (0, 2 * D_MODEL), "e_wv": (1, D_MODEL), "e_wo": (2, D_MODEL), "e_w1": (3, DFF),
    "sa_wqk": (4, 2 * D_MODEL), "sa_wv": (5, D_MODEL), "sa_wo": (6, D_MODEL),
    "ca_wq": (7, D_MODEL), "ca_wk": (8, D_MODEL), "ca_wv": (9, D_MODEL), "ca_wo": (10, D_MODEL),
    "d_w1": (11, DFF), "cls_w": (12, 128),            # class head kept lane-dense (92 -> 128)
    "bb_w1": (13, D_MODEL), "bb_w2": (14, D_MODEL), "bb_w3": (15, 8),
}
# bias slab: (32, 128) f32; each row holds one bias / LN vector in cols [:width].
_BI = {  # name: (row, used width)
    "e_bqk": (0, 2 * D_MODEL), "e_bv": (1, D_MODEL), "e_bo": (2, D_MODEL),
    "e_ln1_g": (3, D_MODEL), "e_ln1_b": (4, D_MODEL),
    "e_b1": (5, DFF), "e_b2": (6, D_MODEL),
    "e_ln2_g": (7, D_MODEL), "e_ln2_b": (8, D_MODEL),
    "sa_bqk": (9, 2 * D_MODEL), "sa_bv": (10, D_MODEL), "sa_bo": (11, D_MODEL),
    "d_ln1_g": (12, D_MODEL), "d_ln1_b": (13, D_MODEL),
    "ca_bq": (14, D_MODEL), "ca_bk": (15, D_MODEL), "ca_bv": (16, D_MODEL), "ca_bo": (17, D_MODEL),
    "d_ln2_g": (18, D_MODEL), "d_ln2_b": (19, D_MODEL),
    "d_b1": (20, DFF), "d_b2": (21, D_MODEL),
    "d_ln3_g": (22, D_MODEL), "d_ln3_b": (23, D_MODEL),
    "dn_g": (24, D_MODEL), "dn_b": (25, D_MODEL),
    "cls_b": (26, 128), "bb_b1": (27, D_MODEL), "bb_b2": (28, D_MODEL), "bb_b3": (29, 8),
    "o12_b": (30, NUM_CLASSES + NUM_BIRADS),
}
N_BIAS_ROWS = 32


def _rep2(i):
    return (0, 0)


def _rep3(i):
    return (0, 0, 0)


# ----------------------------------------------------------------------------
# Kernel 1: fused conv stem (conv1 + in-kernel im2col + conv2 + 1x1 input_proj)
# ----------------------------------------------------------------------------
def _make_stem_kernel(hp, wp):
    """hp, wp = conv2 output spatial dims (= conv1 output dims // 2)."""
    lp = hp * wp                                    # positions per parity plane

    def kernel(cols_ref, w_ref, b_ref, o_ref):
        bf16, f32 = jnp.bfloat16, jnp.float32
        # conv1 as a matmul over parity-grouped im2col rows: (4*lp, K1P) @ (K1P, C1P)
        h1 = jnp.dot(cols_ref[0].astype(bf16), w_ref[0:K1P],
                     preferred_element_type=f32)
        h1 = jnp.maximum(h1 + b_ref[0:1, :], 0.0)   # (4*lp, C1P), channels >= C1 are zero

        # conv2 (3x3 stride 2 pad 1) as 9 accumulated taps; each tap reads one parity
        # plane of h1, shifted with jnp.roll + masked (implements the zero padding).
        row = jax.lax.broadcasted_iota(jnp.int32, (lp, 1), 0)
        acc = jnp.zeros((lp, C2), f32)
        for ki in range(3):
            for kj in range(3):
                pidx = ((ki + 1) % 2) * 2 + ((kj + 1) % 2)        # parity plane index
                x = h1[pidx * lp:(pidx + 1) * lp]                 # (lp, C1P)
                shift = (wp if ki == 0 else 0) + (1 if kj == 0 else 0)
                if shift:
                    x = jnp.roll(x, shift, axis=0)
                if ki == 0 and kj == 0:
                    pad = (row < wp) | ((row % wp) == 0)
                elif ki == 0:
                    pad = row < wp
                elif kj == 0:
                    pad = (row % wp) == 0
                else:
                    pad = None
                if pad is not None:
                    x = jnp.where(pad, jnp.zeros_like(x), x)
                t = ki * 3 + kj
                acc = acc + jnp.dot(
                    x.astype(bf16),
                    w_ref[K1P + t * C1P:K1P + (t + 1) * C1P],
                    preferred_element_type=f32)
        h2 = jnp.maximum(acc + b_ref[1:2, :], 0.0)                # conv2 + ReLU, (lp, C2)
        # 1x1 input_proj
        o_ref[0] = jnp.dot(h2.astype(bf16), w_ref[K1P + 9 * C1P:CONV_W_ROWS],
                           preferred_element_type=f32) + b_ref[2:3, :]

    return kernel


def _stem_call(cols, conv_w, conv_b, hp, wp):
    b, m, k = cols.shape
    l = hp * wp
    return pl.pallas_call(
        _make_stem_kernel(hp, wp),
        out_shape=jax.ShapeDtypeStruct((b, l, D_MODEL), jnp.float32),
        grid=(b,),
        in_specs=[pl.BlockSpec((1, m, k), lambda i: (i, 0, 0)),
                  pl.BlockSpec(conv_w.shape, _rep2),
                  pl.BlockSpec(conv_b.shape, _rep2)],
        out_specs=pl.BlockSpec((1, l, D_MODEL), lambda i: (i, 0, 0)),
        compiler_params=pltpu.CompilerParams(dimension_semantics=("parallel",)),
    )(cols, conv_w, conv_b)


# ----------------------------------------------------------------------------
# Kernel 2: full transformer (encoder + decoder + heads), one batch element / step
# ----------------------------------------------------------------------------
def _transformer_kernel(src_ref, pos_ref, qe_ref, wd_ref, wf_ref, wo12_ref, bias_ref,
                        logits_ref, boxes_ref, o12_ref):
    bf16, f32 = jnp.bfloat16, jnp.float32

    def brow(name):
        r, w = _BI[name]
        return bias_ref[r:r + 1, :w]                       # (1, w) f32

    def wmat(name):
        i, w = _WD[name]
        return wd_ref[i, :, :w]                            # (D, w) bf16

    def mm(x, wname, bname, relu=False):
        y = jnp.dot(x.astype(bf16), wmat(wname),
                    preferred_element_type=f32) + brow(bname)
        return jnp.maximum(y, 0.0) if relu else y

    def ln(x, gname, bname, eps=1e-5):
        mu = jnp.mean(x, axis=-1, keepdims=True)
        xc = x - mu
        var = jnp.mean(xc * xc, axis=-1, keepdims=True)
        return xc * jax.lax.rsqrt(var + eps) * brow(gname) + brow(bname)

    lane = jax.lax.broadcasted_iota(jnp.int32, (1, D_MODEL), 1)
    scale = 1.0 / math.sqrt(DH)

    def attn(q, k, v, woname, boname):
        # Heads selected with lane masks (no 8-lane slicing); head-merge folded into
        # a single Wo matmul after the loop.
        qb = (q * scale).astype(bf16)
        kb = k.astype(bf16)
        vb = v.astype(bf16)
        out = jnp.zeros((q.shape[0], D_MODEL), f32)
        for h in range(NHEADS):
            hm = (lane >= h * DH) & (lane < (h + 1) * DH)          # (1, D) bool
            qh = jnp.where(hm, qb, jnp.zeros_like(qb))
            vh = jnp.where(hm, vb, jnp.zeros_like(vb))
            s = jax.lax.dot_general(qh, kb, _TRANS_B,
                                    preferred_element_type=f32)    # (Lq, Lk)
            p = jnp.exp(s - jnp.max(s, axis=-1, keepdims=True))
            r = pl.reciprocal(jnp.sum(p, axis=-1, keepdims=True), approx=True)
            out = out + jnp.dot(p.astype(bf16), vh,
                                preferred_element_type=f32) * r
        return jnp.dot(out.astype(bf16), wmat(woname),
                       preferred_element_type=f32) + brow(boname)

    src = src_ref[0]                    # (L, D)
    pos = pos_ref[...]                  # (L, D)
    qpos = qe_ref[...]                  # (Q, D)

    # ---------------- transformer encoder (post-norm, DETR style) ----------------
    mem = src
    qk = mm(mem + pos, "e_wqk", "e_bqk")                     # fused q/k proj -> (L, 2D)
    v = mm(mem, "e_wv", "e_bv")
    a = attn(qk[:, :D_MODEL], qk[:, D_MODEL:], v, "e_wo", "e_bo")
    mem = ln(mem + a, "e_ln1_g", "e_ln1_b")
    f = mm(mem, "e_w1", "e_b1", relu=True)
    f = jnp.dot(f.astype(bf16), wf_ref[0], preferred_element_type=f32) + brow("e_b2")
    mem = ln(mem + f, "e_ln2_g", "e_ln2_b")

    # ---------------- transformer decoder (tgt starts at zeros: simplified) -------
    qk = mm(qpos, "sa_wqk", "sa_bqk")
    v = jnp.broadcast_to(brow("sa_bv"), (NUM_QUERIES, D_MODEL))
    a = attn(qk[:, :D_MODEL], qk[:, D_MODEL:], v, "sa_wo", "sa_bo")
    tgt = ln(a, "d_ln1_g", "d_ln1_b")

    qc = mm(tgt + qpos, "ca_wq", "ca_bq")
    kc = mm(mem + pos, "ca_wk", "ca_bk")
    vc = mm(mem, "ca_wv", "ca_bv")
    a = attn(qc, kc, vc, "ca_wo", "ca_bo")
    tgt = ln(tgt + a, "d_ln2_g", "d_ln2_b")

    f = mm(tgt, "d_w1", "d_b1", relu=True)
    f = jnp.dot(f.astype(bf16), wf_ref[1], preferred_element_type=f32) + brow("d_b2")
    tgt = ln(tgt + f, "d_ln3_g", "d_ln3_b")
    hs = ln(tgt, "dn_g", "dn_b")                             # (Q, D)

    # ---------------- DETR heads ----------------
    logits = mm(hs, "cls_w", "cls_b")                        # (Q, 128), cols >=92 are zero
    logits_ref[0] = logits

    h = mm(hs, "bb_w1", "bb_b1", relu=True)
    h = mm(h, "bb_w2", "bb_b2", relu=True)
    bb = mm(h, "bb_w3", "bb_b3")                             # (Q, 8), cols >=4 padded
    boxes_ref[0] = 0.5 * (jnp.tanh(0.5 * bb) + 1.0)          # overflow-safe sigmoid (EUP)

    o12_ref[0] = jnp.dot(logits.astype(bf16), wo12_ref[...],
                         preferred_element_type=f32) + brow("o12_b")   # (Q, 8) = [out1|out2]


def _transformer_call(src, pos, qe, params):
    b, l, d = src.shape
    q = NUM_QUERIES
    no12 = NUM_CLASSES + NUM_BIRADS
    return pl.pallas_call(
        _transformer_kernel,
        out_shape=(jax.ShapeDtypeStruct((b, q, 128), jnp.float32),
                   jax.ShapeDtypeStruct((b, q, 8), jnp.float32),
                   jax.ShapeDtypeStruct((b, q, no12), jnp.float32)),
        grid=(b,),
        in_specs=[pl.BlockSpec((1, l, d), lambda i: (i, 0, 0)),
                  pl.BlockSpec(pos.shape, _rep2),
                  pl.BlockSpec(qe.shape, _rep2),
                  pl.BlockSpec(params["wd"].shape, _rep3),
                  pl.BlockSpec(params["wf"].shape, _rep3),
                  pl.BlockSpec(params["wo12"].shape, _rep2),
                  pl.BlockSpec(params["bias"].shape, _rep2)],
        out_specs=(pl.BlockSpec((1, q, 128), lambda i: (i, 0, 0)),
                   pl.BlockSpec((1, q, 8), lambda i: (i, 0, 0)),
                   pl.BlockSpec((1, q, no12), lambda i: (i, 0, 0))),
        compiler_params=pltpu.CompilerParams(dimension_semantics=("parallel",)),
    )(src, pos, qe, params["wd"], params["wf"], params["wo12"], params["bias"])


# ----------------------------------------------------------------------------
# Plain-JAX glue (conv1 patch extraction, positional embedding)
# ----------------------------------------------------------------------------
def _im2col(x, kh, kw, stride, pad):
    """NHWC -> (B, Ho*Wo, kh*kw*C) patch matrix."""
    b, h, w, c = x.shape
    xp = jnp.pad(x, ((0, 0), (pad, pad), (pad, pad), (0, 0)))
    ho = (h + 2 * pad - kh) // stride + 1
    wo = (w + 2 * pad - kw) // stride + 1
    patches = []
    for i in range(kh):
        for j in range(kw):
            patches.append(xp[:, i:i + (ho - 1) * stride + 1:stride,
                              j:j + (wo - 1) * stride + 1:stride, :])
    cols = jnp.concatenate(patches, axis=-1)
    return cols.reshape(b, ho * wo, kh * kw * c), ho, wo


def sine_pos_embed(H, W, d):
    """DETR PositionEmbeddingSine (normalize=True) for an all-valid mask."""
    npf = d // 2
    eps = 1e-6
    scale = 2.0 * math.pi
    y_embed = jnp.broadcast_to(jnp.arange(1, H + 1, dtype=jnp.float32)[:, None], (H, W))
    x_embed = jnp.broadcast_to(jnp.arange(1, W + 1, dtype=jnp.float32)[None, :], (H, W))
    y_embed = y_embed / (H + eps) * scale
    x_embed = x_embed / (W + eps) * scale
    dim_t = jnp.arange(npf, dtype=jnp.float32)
    dim_t = 10000.0 ** (2.0 * jnp.floor(dim_t / 2.0) / npf)
    pos_x = x_embed[:, :, None] / dim_t
    pos_y = y_embed[:, :, None] / dim_t
    pos_x = jnp.stack([jnp.sin(pos_x[:, :, 0::2]), jnp.cos(pos_x[:, :, 1::2])],
                      axis=-1).reshape(H, W, npf)
    pos_y = jnp.stack([jnp.sin(pos_y[:, :, 0::2]), jnp.cos(pos_y[:, :, 1::2])],
                      axis=-1).reshape(H, W, npf)
    pos = jnp.concatenate([pos_y, pos_x], axis=-1)
    return pos.reshape(H * W, d)


# ----------------------------------------------------------------------------
# Parameter initialization (deterministic, synthetic) -> packed slabs
# ----------------------------------------------------------------------------
def init_params(key):
    keys = iter(jax.random.split(key, 64))

    def nk():
        return next(keys)

    def lin(din, dout):
        s = 1.0 / math.sqrt(din)
        return (jax.random.uniform(nk(), (din, dout), jnp.float32, -s, s),
                jax.random.uniform(nk(), (dout,), jnp.float32, -s, s))

    # ----- conv stem slab: [w1 | 9 conv2 taps | input_proj], bf16 at rest -----
    w1, b1 = lin(27, C1)                # conv1: 3x3x3 -> 16
    w2, b2 = lin(9 * C1, C2)            # conv2: 3x3x16 -> 32
    wpj, bpj = lin(C2, D_MODEL)         # 1x1 input_proj
    conv_w = jnp.zeros((CONV_W_ROWS, 32), jnp.float32)
    conv_w = conv_w.at[:27, :C1].set(w1)
    w2t = w2.reshape(3, 3, C1, C2)
    for ki in range(3):
        for kj in range(3):
            t = ki * 3 + kj
            conv_w = conv_w.at[K1P + t * C1P:K1P + t * C1P + C1, :C2].set(w2t[ki, kj])
    conv_w = conv_w.at[K1P + 9 * C1P:CONV_W_ROWS, :D_MODEL].set(wpj)
    conv_b = jnp.zeros((8, 32), jnp.float32)
    conv_b = conv_b.at[0, :C1].set(b1)
    conv_b = conv_b.at[1, :C2].set(b2)
    conv_b = conv_b.at[2, :D_MODEL].set(bpj)

    # ----- transformer slabs -----
    wd = jnp.zeros((len(_WD), D_MODEL, 128), jnp.float32)
    wf = jnp.zeros((2, DFF, D_MODEL), jnp.float32)
    bias = jnp.zeros((N_BIAS_ROWS, 128), jnp.float32)

    def put_w(name, w):
        nonlocal wd
        i, _ = _WD[name]
        wd = wd.at[i, :w.shape[0], :w.shape[1]].set(w)

    def put_b(name, v):
        nonlocal bias
        r, _ = _BI[name]
        bias = bias.at[r, :v.shape[0]].set(v)

    def ln_params(gname, bname):
        put_b(gname, jnp.ones((D_MODEL,), jnp.float32))
        put_b(bname, jnp.zeros((D_MODEL,), jnp.float32))

    def qkv_proj(prefix):
        wq, bq = lin(D_MODEL, D_MODEL)
        wk, bk = lin(D_MODEL, D_MODEL)
        put_w(prefix + "_wqk", jnp.concatenate([wq, wk], axis=1))
        put_b(prefix + "_bqk", jnp.concatenate([bq, bk], axis=0))
        wv, bv = lin(D_MODEL, D_MODEL)
        put_w(prefix + "_wv", wv)
        put_b(prefix + "_bv", bv)
        wo, bo = lin(D_MODEL, D_MODEL)
        put_w(prefix + "_wo", wo)
        put_b(prefix + "_bo", bo)

    # encoder layer
    qkv_proj("e")
    ln_params("e_ln1_g", "e_ln1_b")
    w, bv = lin(D_MODEL, DFF); put_w("e_w1", w); put_b("e_b1", bv)
    w, bv = lin(DFF, D_MODEL); wf = wf.at[0].set(w); put_b("e_b2", bv)
    ln_params("e_ln2_g", "e_ln2_b")

    # decoder self-attention
    qkv_proj("sa")
    ln_params("d_ln1_g", "d_ln1_b")

    # decoder cross-attention
    w, bv = lin(D_MODEL, D_MODEL); put_w("ca_wq", w); put_b("ca_bq", bv)
    w, bv = lin(D_MODEL, D_MODEL); put_w("ca_wk", w); put_b("ca_bk", bv)
    w, bv = lin(D_MODEL, D_MODEL); put_w("ca_wv", w); put_b("ca_bv", bv)
    w, bv = lin(D_MODEL, D_MODEL); put_w("ca_wo", w); put_b("ca_bo", bv)
    ln_params("d_ln2_g", "d_ln2_b")

    # decoder FFN + final decoder norm
    w, bv = lin(D_MODEL, DFF); put_w("d_w1", w); put_b("d_b1", bv)
    w, bv = lin(DFF, D_MODEL); wf = wf.at[1].set(w); put_b("d_b2", bv)
    ln_params("d_ln3_g", "d_ln3_b")
    ln_params("dn_g", "dn_b")

    # heads: class_embed (92, padded to 128 lanes), bbox MLP, out1/out2 fused
    w, bv = lin(D_MODEL, DETR_CLASSES); put_w("cls_w", w); put_b("cls_b", bv)
    w, bv = lin(D_MODEL, D_MODEL); put_w("bb_w1", w); put_b("bb_b1", bv)
    w, bv = lin(D_MODEL, D_MODEL); put_w("bb_w2", w); put_b("bb_b2", bv)
    w, bv = lin(D_MODEL, 4); put_w("bb_w3", w); put_b("bb_b3", bv)
    w1o, b1o = lin(DETR_CLASSES, NUM_CLASSES)
    w2o, b2o = lin(DETR_CLASSES, NUM_BIRADS)
    wo12 = jnp.zeros((128, NUM_CLASSES + NUM_BIRADS), jnp.float32)
    wo12 = wo12.at[:DETR_CLASSES].set(jnp.concatenate([w1o, w2o], axis=1))
    put_b("o12_b", jnp.concatenate([b1o, b2o], axis=0))

    query_embed = jax.random.normal(nk(), (NUM_QUERIES, D_MODEL), jnp.float32)

    return {"conv_w": conv_w.astype(jnp.bfloat16), "conv_b": conv_b,
            "wd": wd.astype(jnp.bfloat16), "wf": wf.astype(jnp.bfloat16),
            "wo12": wo12.astype(jnp.bfloat16), "bias": bias,
            "query_embed": query_embed}


# ----------------------------------------------------------------------------
# Forward pass (== DETRModel.forward)
# ----------------------------------------------------------------------------
def detr_forward(images, params):
    # images: (B, 3, H, W) -- NCHW, as in PyTorch
    x = jnp.transpose(images, (0, 2, 3, 1))                 # -> NHWC (lane-dense C)
    b = x.shape[0]

    # conv1 im2col in plain JAX, rows regrouped by conv1-output (row,col) parity
    # [ee, eo, oe, oo] so the fused kernel can build conv2 patches with rolls only.
    cols1, h1_, w1_ = _im2col(x, 3, 3, stride=2, pad=1)     # (B, H1*W1, 27)
    cols1 = jnp.pad(cols1, ((0, 0), (0, 0), (0, K1P - cols1.shape[-1])))
    assert h1_ % 2 == 0 and w1_ % 2 == 0
    hp, wp = h1_ // 2, w1_ // 2
    cols1 = cols1.reshape(b, h1_, w1_, K1P)
    cols1 = jnp.concatenate(
        [cols1[:, r::2, c::2].reshape(b, hp * wp, K1P)
         for r in (0, 1) for c in (0, 1)], axis=1)          # (B, 4*hp*wp, K1P)

    # fused conv stem: conv1 + conv2 + input_proj, one pallas_call
    src = _stem_call(cols1, params["conv_w"], params["conv_b"], hp, wp)  # (B, L, D)

    pos = sine_pos_embed(hp, wp, D_MODEL)                   # (L, D)

    # whole transformer + heads: one fused Pallas kernel, gridded over batch
    logits, boxes, o12 = _transformer_call(src, pos, params["query_embed"], params)

    return {"pred_logits": logits[:, :, :DETR_CLASSES],
            "pred_boxes": boxes[:, :, :4],
            "pred_logits1": o12[..., :NUM_CLASSES],
            "pred_logits2": o12[..., NUM_CLASSES:NUM_CLASSES + NUM_BIRADS]}


# ----------------------------------------------------------------------------
if __name__ == "__main__":
    key = jax.random.PRNGKey(0)
    pkey, xkey = jax.random.split(key)
    params = init_params(pkey)
    images = jax.random.normal(xkey, (2, 3, 32, 32), jnp.float32)   # NCHW

    out = jax.jit(detr_forward)(images, params)
    out = jax.block_until_ready(out)

    assert out["pred_logits"].shape == (2, NUM_QUERIES, DETR_CLASSES)
    assert out["pred_boxes"].shape == (2, NUM_QUERIES, 4)
    assert out["pred_logits1"].shape == (2, NUM_QUERIES, NUM_CLASSES)
    assert out["pred_logits2"].shape == (2, NUM_QUERIES, NUM_BIRADS)
    assert bool(jnp.all(jnp.isfinite(out["pred_logits"])))
    assert bool(jnp.all(jnp.isfinite(out["pred_boxes"])))
    assert bool(jnp.all(jnp.isfinite(out["pred_logits1"])))
    assert bool(jnp.all(jnp.isfinite(out["pred_logits2"])))
    print("KERNEL_OK")
</pallas_src>

<mosaic_0001>
module attributes {stable_mosaic.version = 11 : i64} {
  func.func @kernel(%arg0: i32, %arg1: memref<1x256x32xf32, #tpu.memory_space<vmem>>, %arg2: memref<352x32xbf16, #tpu.memory_space<vmem>>, %arg3: memref<8x32xf32, #tpu.memory_space<vmem>>, %arg4: memref<1x64x32xf32, #tpu.memory_space<vmem>>) attributes {dimension_semantics = [#tpu.dimension_semantics<parallel>], iteration_bounds = array<i64: 2>, scalar_prefetch = 0 : i64, scratch_operands = 0 : i64, tpu.core_type = #tpu.core_type<tc>, window_params = [{transform_indices = @transform_0, window_bounds = array<i64: 1, 256, 32>}, {pipeline_mode = #tpu.pipeline_mode<synchronous>, transform_indices = @transform_1, window_bounds = array<i64: 352, 32>}, {pipeline_mode = #tpu.pipeline_mode<synchronous>, transform_indices = @transform_2, window_bounds = array<i64: 8, 32>}, {transform_indices = @transform_3, window_bounds = array<i64: 1, 64, 32>}]} {
    %c0 = arith.constant 0 : index
    %c0_0 = arith.constant 0 : index
    %c0_1 = arith.constant 0 : index
    %0 = vector.load %arg1[%c0, %c0_0, %c0_1] : memref<1x256x32xf32, #tpu.memory_space<vmem>>, vector<1x256x32xf32>
    %1 = vector.shape_cast %0 : vector<1x256x32xf32> to vector<256x32xf32>
    %2 = arith.truncf %1 : vector<256x32xf32> to vector<256x32xbf16>
    %c0_2 = arith.constant 0 : index
    %c0_3 = arith.constant 0 : index
    %3 = vector.load %arg2[%c0_2, %c0_3] : memref<352x32xbf16, #tpu.memory_space<vmem>>, vector<32x32xbf16>
    %cst = arith.constant dense<0.000000e+00> : vector<256x32xf32>
    %4 = tpu.matmul %2, %3, %cst {dimension_numbers = #tpu.dot_dimension_numbers<[1], [0], [0], [1], [0, 0, 1, 1], [], []>} : vector<256x32xbf16>, vector<32x32xbf16>, vector<256x32xf32> -> vector<256x32xf32>
    %c0_4 = arith.constant 0 : index
    %c0_5 = arith.constant 0 : index
    %5 = vector.load %arg3[%c0_4, %c0_5] : memref<8x32xf32, #tpu.memory_space<vmem>>, vector<1x32xf32>
    %6 = vector.broadcast %5 : vector<1x32xf32> to vector<256x32xf32>
    %7 = arith.addf %4, %6 : vector<256x32xf32>
    %cst_6 = arith.constant 0.000000e+00 : f32
    %8 = vector.broadcast %cst_6 : f32 to vector<256x32xf32>
    %9 = arith.maximumf %7, %8 : vector<256x32xf32>
    %10 = tpu.iota {dimensions = array<i32: 0>} : vector<64x1xi32>
    %cst_7 = arith.constant 0.000000e+00 : f32
    %11 = vector.broadcast %cst_7 : f32 to vector<64x32xf32>
    %12 = vector.extract_strided_slice %9 {offsets = [192, 0], sizes = [64, 32], strides = [1, 1]} : vector<256x32xf32> to vector<64x32xf32>
    %13 = vector.extract_strided_slice %12 {offsets = [55, 0], sizes = [9, 32], strides = [1, 1]} : vector<64x32xf32> to vector<9x32xf32>
    %14 = vector.extract_strided_slice %12 {offsets = [0, 0], sizes = [55, 32], strides = [1, 1]} : vector<64x32xf32> to vector<55x32xf32>
    %15 = tpu.concatenate %13, %14 in 0 : vector<9x32xf32>, vector<55x32xf32> -> vector<64x32xf32>
    %c8_i32 = arith.constant 8 : i32
    %16 = vector.broadcast %c8_i32 : i32 to vector<64x1xi32>
    %17 = arith.cmpi slt, %10, %16 : vector<64x1xi32>
    %c8_i32_8 = arith.constant 8 : i32
    %c0_i32 = arith.constant 0 : i32
    %18 = arith.cmpi eq, %c8_i32_8, %c0_i32 : i32
    %c1_i32 = arith.constant 1 : i32
    %19 = arith.select %18, %c1_i32, %c8_i32_8 : i32
    %20 = vector.broadcast %19 : i32 to vector<64x1xi32>
    %21 = arith.remsi %10, %20 : vector<64x1xi32>
    %c0_i32_9 = arith.constant 0 : i32
    %22 = vector.broadcast %c0_i32_9 : i32 to vector<64x1xi32>
    %23 = arith.cmpi ne, %21, %22 : vector<64x1xi32>
    %c0_i32_10 = arith.constant 0 : i32
    %24 = vector.broadcast %c0_i32_10 : i32 to vector<64x1xi32>
    %25 = arith.cmpi slt, %21, %24 : vector<64x1xi32>
    %c0_i32_11 = arith.constant 0 : i32
    %26 = arith.cmpi slt, %19, %c0_i32_11 : i32
    %27 = vector.broadcast %26 : i1 to vector<64x1xi1>
    %28 = vector.broadcast %27 : vector<64x1xi1> to vector<64x1xi1>
    %29 = arith.xori %25, %28 : vector<64x1xi1>
    %30 = arith.andi %29, %23 : vector<64x1xi1>
    %31 = vector.broadcast %19 : i32 to vector<64x1xi32>
    %32 = arith.addi %21, %31 : vector<64x1xi32>
    %33 = arith.select %30, %32, %21 : vector<64x1xi1>, vector<64x1xi32>
    %c0_i32_12 = arith.constant 0 : i32
    %34 = vector.broadcast %c0_i32_12 : i32 to vector<64x1xi32>
    %35 = arith.cmpi eq, %33, %34 : vector<64x1xi32>
    %36 = arith.ori %17, %35 : vector<64x1xi1>
    %cst_13 = arith.constant 0.000000e+00 : f32
    %37 = vector.broadcast %cst_13 : f32 to vector<64x32xf32>
    %38 = vector.shape_cast %36 : vector<64x1xi1> to vector<64x1xi1>
    %39 = vector.broadcast %38 : vector<64x1xi1> to vector<64x32xi1>
    %40 = arith.select %39, %37, %15 : vector<64x32xi1>, vector<64x32xf32>
    %41 = arith.truncf %40 : vector<64x32xf32> to vector<64x32xbf16>
    %c32 = arith.constant 32 : index
    %c0_14 = arith.constant 0 : index
    %42 = vector.load %arg2[%c32, %c0_14] : memref<352x32xbf16, #tpu.memory_space<vmem>>, vector<32x32xbf16>
    %cst_15 = arith.constant dense<0.000000e+00> : vector<64x32xf32>
    %43 = tpu.matmul %41, %42, %cst_15 {dimension_numbers = #tpu.dot_dimension_numbers<[1], [0], [0], [1], [0, 0, 1, 1], [], []>} : vector<64x32xbf16>, vector<32x32xbf16>, vector<64x32xf32> -> vector<64x32xf32>
    %44 = arith.addf %11, %43 : vector<64x32xf32>
    %45 = vector.extract_strided_slice %9 {offsets = [128, 0], sizes = [64, 32], strides = [1, 1]} : vector<256x32xf32> to vector<64x32xf32>
    %46 = vector.extract_strided_slice %45 {offsets = [56, 0], sizes = [8, 32], strides = [1, 1]} : vector<64x32xf32> to vector<8x32xf32>
    %47 = vector.extract_strided_slice %45 {offsets = [0, 0], sizes = [56, 32], strides = [1, 1]} : vector<64x32xf32> to vector<56x32xf32>
    %48 = tpu.concatenate %46, %47 in 0 : vector<8x32xf32>, vector<56x32xf32> -> vector<64x32xf32>
    %c8_i32_16 = arith.constant 8 : i32
    %49 = vector.broadcast %c8_i32_16 : i32 to vector<64x1xi32>
    %50 = arith.cmpi slt, %10, %49 : vector<64x1xi32>
    %cst_17 = arith.constant 0.000000e+00 : f32
    %51 = vector.broadcast %cst_17 : f32 to vector<64x32xf32>
    %52 = vector.shape_cast %50 : vector<64x1xi1> to vector<64x1xi1>
    %53 = vector.broadcast %52 : vector<64x1xi1> to vector<64x32xi1>
    %54 = arith.select %53, %51, %48 : vector<64x32xi1>, vector<64x32xf32>
    %55 = arith.truncf %54 : vector<64x32xf32> to vector<64x32xbf16>
    %c64 = arith.constant 64 : index
    %c0_18 = arith.constant 0 : index
    %56 = vector.load %arg2[%c64, %c0_18] : memref<352x32xbf16, #tpu.memory_space<vmem>>, vector<32x32xbf16>
    %cst_19 = arith.constant dense<0.000000e+00> : vector<64x32xf32>
    %57 = tpu.matmul %55, %56, %cst_19 {dimension_numbers = #tpu.dot_dimension_numbers<[1], [0], [0], [1], [0, 0, 1, 1], [], []>} : vector<64x32xbf16>, vector<32x32xbf16>, vector<64x32xf32> -> vector<64x32xf32>
    %58 = arith.addf %44, %57 : vector<64x32xf32>
    %59 = vector.extract_strided_slice %9 {offsets = [192, 0], sizes = [64, 32], strides = [1, 1]} : vector<256x32xf32> to vector<64x32xf32>
    %60 = vector.extract_strided_slice %59 {offsets = [56, 0], sizes = [8, 32], strides = [1, 1]} : vector<64x32xf32> to vector<8x32xf32>
    %61 = vector.extract_strided_slice %59 {offsets = [0, 0], sizes = [56, 32], strides = [1, 1]} : vector<64x32xf32> to vector<56x32xf32>
    %62 = tpu.concatenate %60, %61 in 0 : vector<8x32xf32>, vector<56x32xf32> -> vector<64x32xf32>
    %c8_i32_20 = arith.constant 8 : i32
    %63 = vector.broadcast %c8_i32_20 : i32 to vector<64x1xi32>
    %64 = arith.cmpi slt, %10, %63 : vector<64x1xi32>
    %cst_21 = arith.constant 0.000000e+00 : f32
    %65 = vector.broadcast %cst_21 : f32 to vector<64x32xf32>
    %66 = vector.shape_cast %64 : vector<64x1xi1> to vector<64x1xi1>
    %67 = vector.broadcast %66 : vector<64x1xi1> to vector<64x32xi1>
    %68 = arith.select %67, %65, %62 : vector<64x32xi1>, vector<64x32xf32>
    %69 = arith.truncf %68 : vector<64x32xf32> to vector<64x32xbf16>
    %c96 = arith.constant 96 : index
    %c0_22 = arith.constant 0 : index
    %70 = vector.load %arg2[%c96, %c0_22] : memref<352x32xbf16, #tpu.memory_space<vmem>>, vector<32x32xbf16>
    %cst_23 = arith.constant dense<0.000000e+00> : vector<64x32xf32>
    %71 = tpu.matmul %69, %70, %cst_23 {dimension_numbers = #tpu.dot_dimension_numbers<[1], [0], [0], [1], [0, 0, 1, 1], [], []>} : vector<64x32xbf16>, vector<32x32xbf16>, vector<64x32xf32> -> vector<64x32xf32>
    %72 = arith.addf %58, %71 : vector<64x32xf32>
    %73 = vector.extract_strided_slice %9 {offsets = [64, 0], sizes = [64, 32], strides = [1, 1]} : vector<256x32xf32> to vector<64x32xf32>
    %74 = vector.extract_strided_slice %73 {offsets = [63, 0], sizes = [1, 32], strides = [1, 1]} : vector<64x32xf32> to vector<1x32xf32>
    %75 = vector.extract_strided_slice %73 {offsets = [0, 0], sizes = [63, 32], strides = [1, 1]} : vector<64x32xf32> to vector<63x32xf32>
    %76 = tpu.concatenate %74, %75 in 0 : vector<1x32xf32>, vector<63x32xf32> -> vector<64x32xf32>
    %c8_i32_24 = arith.constant 8 : i32
    %c0_i32_25 = arith.constant 0 : i32
    %77 = arith.cmpi eq, %c8_i32_24, %c0_i32_25 : i32
    %c1_i32_26 = arith.constant 1 : i32
    %78 = arith.select %77, %c1_i32_26, %c8_i32_24 : i32
    %79 = vector.broadcast %78 : i32 to vector<64x1xi32>
    %80 = arith.remsi %10, %79 : vector<64x1xi32>
    %c0_i32_27 = arith.constant 0 : i32
    %81 = vector.broadcast %c0_i32_27 : i32 to vector<64x1xi32>
    %82 = arith.cmpi ne, %80, %81 : vector<64x1xi32>
    %c0_i32_28 = arith.constant 0 : i32
    %83 = vector.broadcast %c0_i32_28 : i32 to vector<64x1xi32>
    %84 = arith.cmpi slt, %80, %83 : vector<64x1xi32>
    %c0_i32_29 = arith.constant 0 : i32
    %85 = arith.cmpi slt, %78, %c0_i32_29 : i32
    %86 = vector.broadcast %85 : i1 to vector<64x1xi1>
    %87 = vector.broadcast %86 : vector<64x1xi1> to vector<64x1xi1>
    %88 = arith.xori %84, %87 : vector<64x1xi1>
    %89 = arith.andi %88, %82 : vector<64x1xi1>
    %90 = vector.broadcast %78 : i32 to vector<64x1xi32>
    %91 = arith.addi %80, %90 : vector<64x1xi32>
    %92 = arith.select %89, %91, %80 : vector<64x1xi1>, vector<64x1xi32>
    %c0_i32_30 = arith.constant 0 : i32
    %93 = vector.broadcast %c0_i32_30 : i32 to vector<64x1xi32>
    %94 = arith.cmpi eq, %92, %93 : vector<64x1xi32>
    %cst_31 = arith.constant 0.000000e+00 : f32
    %95 = vector.broadcast %cst_31 : f32 to vector<64x32xf32>
    %96 = vector.shape_cast %94 : vector<64x1xi1> to vector<64x1xi1>
    %97 = vector.broadcast %96 : vector<64x1xi1> to vector<64x32xi1>
    %98 = arith.select %97, %95, %76 : vector<64x32xi1>, vector<64x32xf32>
    %99 = arith.truncf %98 : vector<64x32xf32> to vector<64x32xbf16>
    %c128 = arith.constant 128 : index
    %c0_32 = arith.constant 0 : index
    %100 = vector.load %arg2[%c128, %c0_32] : memref<352x32xbf16, #tpu.memory_space<vmem>>, vector<32x32xbf16>
    %cst_33 = arith.constant dense<0.000000e+00> : vector<64x32xf32>
    %101 = tpu.matmul %99, %100, %cst_33 {dimension_numbers = #tpu.dot_dimension_numbers<[1], [0], [0], [1], [0, 0, 1, 1], [], []>} : vector<64x32xbf16>, vector<32x32xbf16>, vector<64x32xf32> -> vector<64x32xf32>
    %102 = arith.addf %72, %101 : vector<64x32xf32>
    %103 = vector.extract_strided_slice %9 {offsets = [0, 0], sizes = [64, 32], strides = [1, 1]} : vector<256x32xf32> to vector<64x32xf32>
    %104 = arith.truncf %103 : vector<64x32xf32> to vector<64x32xbf16>
    %c160 = arith.constant 160 : index
    %c0_34 = arith.constant 0 : index
    %105 = vector.load %arg2[%c160, %c0_34] : memref<352x32xbf16, #tpu.memory_space<vmem>>, vector<32x32xbf16>
    %cst_35 = arith.constant dense<0.000000e+00> : vector<64x32xf32>
    %106 = tpu.matmul %104, %105, %cst_35 {dimension_numbers = #tpu.dot_dimension_numbers<[1], [0], [0], [1], [0, 0, 1, 1], [], []>} : vector<64x32xbf16>, vector<32x32xbf16>, vector<64x32xf32> -> vector<64x32xf32>
    %107 = arith.addf %102, %106 : vector<64x32xf32>
    %108 = vector.extract_strided_slice %9 {offsets = [64, 0], sizes = [64, 32], strides = [1, 1]} : vector<256x32xf32> to vector<64x32xf32>
    %109 = arith.truncf %108 : vector<64x32xf32> to vector<64x32xbf16>
    %c192 = arith.constant 192 : index
    %c0_36 = arith.constant 0 : index
    %110 = vector.load %arg2[%c192, %c0_36] : memref<352x32xbf16, #tpu.memory_space<vmem>>, vector<32x32xbf16>
    %cst_37 = arith.constant dense<0.000000e+00> : vector<64x32xf32>
    %111 = tpu.matmul %109, %110, %cst_37 {dimension_numbers = #tpu.dot_dimension_numbers<[1], [0], [0], [1], [0, 0, 1, 1], [], []>} : vector<64x32xbf16>, vector<32x32xbf16>, vector<64x32xf32> -> vector<64x32xf32>
    %112 = arith.addf %107, %111 : vector<64x32xf32>
    %113 = vector.extract_strided_slice %9 {offsets = [192, 0], sizes = [64, 32], strides = [1, 1]} : vector<256x32xf32> to vector<64x32xf32>
    %114 = vector.extract_strided_slice %113 {offsets = [63, 0], sizes = [1, 32], strides = [1, 1]} : vector<64x32xf32> to vector<1x32xf32>
    %115 = vector.extract_strided_slice %113 {offsets = [0, 0], sizes = [63, 32], strides = [1, 1]} : vector<64x32xf32> to vector<63x32xf32>
    %116 = tpu.concatenate %114, %115 in 0 : vector<1x32xf32>, vector<63x32xf32> -> vector<64x32xf32>
    %c8_i32_38 = arith.constant 8 : i32
    %c0_i32_39 = arith.constant 0 : i32
    %117 = arith.cmpi eq, %c8_i32_38, %c0_i32_39 : i32
    %c1_i32_40 = arith.constant 1 : i32
    %118 = arith.select %117, %c1_i32_40, %c8_i32_38 : i32
    %119 = vector.broadcast %118 : i32 to vector<64x1xi32>
    %120 = arith.remsi %10, %119 : vector<64x1xi32>
    %c0_i32_41 = arith.constant 0 : i32
    %121 = vector.broadcast %c0_i32_41 : i32 to vector<64x1xi32>
    %122 = arith.cmpi ne, %120, %121 : vector<64x1xi32>
    %c0_i32_42 = arith.constant 0 : i32
    %123 = vector.broadcast %c0_i32_42 : i32 to vector<64x1xi32>
    %124 = arith.cmpi slt, %120, %123 : vector<64x1xi32>
    %c0_i32_43 = arith.constant 0 : i32
    %125 = arith.cmpi slt, %118, %c0_i32_43 : i32
    %126 = vector.broadcast %125 : i1 to vector<64x1xi1>
    %127 = vector.broadcast %126 : vector<64x1xi1> to vector<64x1xi1>
    %128 = arith.xori %124, %127 : vector<64x1xi1>
    %129 = arith.andi %128, %122 : vector<64x1xi1>
    %130 = vector.broadcast %118 : i32 to vector<64x1xi32>
    %131 = arith.addi %120, %130 : vector<64x1xi32>
    %132 = arith.select %129, %131, %120 : vector<64x1xi1>, vector<64x1xi32>
    %c0_i32_44 = arith.constant 0 : i32
    %133 = vector.broadcast %c0_i32_44 : i32 to vector<64x1xi32>
    %134 = arith.cmpi eq, %132, %133 : vector<64x1xi32>
    %cst_45 = arith.constant 0.000000e+00 : f32
    %135 = vector.broadcast %cst_45 : f32 to vector<64x32xf32>
    %136 = vector.shape_cast %134 : vector<64x1xi1> to vector<64x1xi1>
    %137 = vector.broadcast %136 : vector<64x1xi1> to vector<64x32xi1>
    %138 = arith.select %137, %135, %116 : vector<64x32xi1>, vector<64x32xf32>
    %139 = arith.truncf %138 : vector<64x32xf32> to vector<64x32xbf16>
    %c224 = arith.constant 224 : index
    %c0_46 = arith.constant 0 : index
    %140 = vector.load %arg2[%c224, %c0_46] : memref<352x32xbf16, #tpu.memory_space<vmem>>, vector<32x32xbf16>
    %cst_47 = arith.constant dense<0.000000e+00> : vector<64x32xf32>
    %141 = tpu.matmul %139, %140, %cst_47 {dimension_numbers = #tpu.dot_dimension_numbers<[1], [0], [0], [1], [0, 0, 1, 1], [], []>} : vector<64x32xbf16>, vector<32x32xbf16>, vector<64x32xf32> -> vector<64x32xf32>
    %142 = arith.addf %112, %141 : vector<64x32xf32>
    %143 = vector.extract_strided_slice %9 {offsets = [128, 0], sizes = [64, 32], strides = [1, 1]} : vector<256x32xf32> to vector<64x32xf32>
    %144 = arith.truncf %143 : vector<64x32xf32> to vector<64x32xbf16>
    %c256 = arith.constant 256 : index
    %c0_48 = arith.constant 0 : index
    %145 = vector.load %arg2[%c256, %c0_48] : memref<352x32xbf16, #tpu.memory_space<vmem>>, vector<32x32xbf16>
    %cst_49 = arith.constant dense<0.000000e+00> : vector<64x32xf32>
    %146 = tpu.matmul %144, %145, %cst_49 {dimension_numbers = #tpu.dot_dimension_numbers<[1], [0], [0], [1], [0, 0, 1, 1], [], []>} : vector<64x32xbf16>, vector<32x32xbf16>, vector<64x32xf32> -> vector<64x32xf32>
    %147 = arith.addf %142, %146 : vector<64x32xf32>
    %148 = vector.extract_strided_slice %9 {offsets = [192, 0], sizes = [64, 32], strides = [1, 1]} : vector<256x32xf32> to vector<64x32xf32>
    %149 = arith.truncf %148 : vector<64x32xf32> to vector<64x32xbf16>
    %c288 = arith.constant 288 : index
    %c0_50 = arith.constant 0 : index
    %150 = vector.load %arg2[%c288, %c0_50] : memref<352x32xbf16, #tpu.memory_space<vmem>>, vector<32x32xbf16>
    %cst_51 = arith.constant dense<0.000000e+00> : vector<64x32xf32>
    %151 = tpu.matmul %149, %150, %cst_51 {dimension_numbers = #tpu.dot_dimension_numbers<[1], [0], [0], [1], [0, 0, 1, 1], [], []>} : vector<64x32xbf16>, vector<32x32xbf16>, vector<64x32xf32> -> vector<64x32xf32>
    %152 = arith.addf %147, %151 : vector<64x32xf32>
    %c1 = arith.constant 1 : index
    %c0_52 = arith.constant 0 : index
    %153 = vector.load %arg3[%c1, %c0_52] : memref<8x32xf32, #tpu.memory_space<vmem>>, vector<1x32xf32>
    %154 = vector.broadcast %153 : vector<1x32xf32> to vector<64x32xf32>
    %155 = arith.addf %152, %154 : vector<64x32xf32>
    %cst_53 = arith.constant 0.000000e+00 : f32
    %156 = vector.broadcast %cst_53 : f32 to vector<64x32xf32>
    %157 = arith.maximumf %155, %156 : vector<64x32xf32>
    %158 = arith.truncf %157 : vector<64x32xf32> to vector<64x32xbf16>
    %c320 = arith.constant 320 : index
    %c0_54 = arith.constant 0 : index
    %159 = vector.load %arg2[%c320, %c0_54] : memref<352x32xbf16, #tpu.memory_space<vmem>>, vector<32x32xbf16>
    %cst_55 = arith.constant dense<0.000000e+00> : vector<64x32xf32>
    %160 = tpu.matmul %158, %159, %cst_55 {dimension_numbers = #tpu.dot_dimension_numbers<[1], [0], [0], [1], [0, 0, 1, 1], [], []>} : vector<64x32xbf16>, vector<32x32xbf16>, vector<64x32xf32> -> vector<64x32xf32>
    %c2 = arith.constant 2 : index
    %c0_56 = arith.constant 0 : index
    %161 = vector.load %arg3[%c2, %c0_56] : memref<8x32xf32, #tpu.memory_space<vmem>>, vector<1x32xf32>
    %162 = vector.broadcast %161 : vector<1x32xf32> to vector<64x32xf32>
    %163 = arith.addf %160, %162 : vector<64x32xf32>
    %c0_57 = arith.constant 0 : index
    %c0_58 = arith.constant 0 : index
    %c0_59 = arith.constant 0 : index
    %164 = vector.load %arg4[%c0_57, %c0_58, %c0_59] : memref<1x64x32xf32, #tpu.memory_space<vmem>>, vector<1x64x32xf32>
    %165 = vector.shape_cast %164 : vector<1x64x32xf32> to vector<64x32xf32>
    %166 = vector.shape_cast %163 : vector<64x32xf32> to vector<1x64x32xf32>
    tpu.vector_store %arg4[%c0_57, %c0_58, %c0_59], %166 {strides = array<i32>} : memref<1x64x32xf32, #tpu.memory_space<vmem>>, vector<1x64x32xf32>,
    return
  }
  func.func @transform_0(%arg0: i32) -> (i32, i32, i32) {
    %c0_i32 = arith.constant 0 : i32
    %c0_i32_0 = arith.constant 0 : i32
    %c0_i32_1 = arith.constant 0 : i32
    return %arg0, %c0_i32, %c0_i32_0 : i32, i32, i32
  }
  func.func @transform_1(%arg0: i32) -> (i32, i32) {
    %c0_i32 = arith.constant 0 : i32
    %c0_i32_0 = arith.constant 0 : i32
    %c0_i32_1 = arith.constant 0 : i32
    return %c0_i32, %c0_i32_0 : i32, i32
  }
  func.func @transform_2(%arg0: i32) -> (i32, i32) {
    %c0_i32 = arith.constant 0 : i32
    %c0_i32_0 = arith.constant 0 : i32
    %c0_i32_1 = arith.constant 0 : i32
    return %c0_i32, %c0_i32_0 : i32, i32
  }
  func.func @transform_3(%arg0: i32) -> (i32, i32, i32) {
    %c0_i32 = arith.constant 0 : i32
    %c0_i32_0 = arith.constant 0 : i32
    %c0_i32_1 = arith.constant 0 : i32
    return %arg0, %c0_i32, %c0_i32_0 : i32, i32, i32
  }
}

module attributes {stable_mosaic.version = 11 : i64} {
  func.func @_transformer_kernel(%arg0: i32, %arg1: memref<1x64x32xf32, #tpu.memory_space<vmem>>, %arg2: memref<64x32xf32, #tpu.memory_space<vmem>>, %arg3: memref<8x32xf32, #tpu.memory_space<vmem>>, %arg4: memref<16x32x128xbf16, #tpu.memory_space<vmem>>, %arg5: memref<2x64x32xbf16, #tpu.memory_space<vmem>>, %arg6: memref<128x8xbf16, #tpu.memory_space<vmem>>, %arg7: memref<32x128xf32, #tpu.memory_space<vmem>>, %arg8: memref<1x8x128xf32, #tpu.memory_space<vmem>>, %arg9: memref<1x8x8xf32, #tpu.memory_space<vmem>>, %arg10: memref<1x8x8xf32, #tpu.memory_space<vmem>>) attributes {dimension_semantics = [#tpu.dimension_semantics<parallel>], iteration_bounds = array<i64: 2>, scalar_prefetch = 0 : i64, scratch_operands = 0 : i64, tpu.core_type = #tpu.core_type<tc>, window_params = [{transform_indices = @transform_0, window_bounds = array<i64: 1, 64, 32>}, {pipeline_mode = #tpu.pipeline_mode<synchronous>, transform_indices = @transform_1, window_bounds = array<i64: 64, 32>}, {pipeline_mode = #tpu.pipeline_mode<synchronous>, transform_indices = @transform_2, window_bounds = array<i64: 8, 32>}, {pipeline_mode = #tpu.pipeline_mode<synchronous>, transform_indices = @transform_3, window_bounds = array<i64: 16, 32, 128>}, {pipeline_mode = #tpu.pipeline_mode<synchronous>, transform_indices = @transform_4, window_bounds = array<i64: 2, 64, 32>}, {pipeline_mode = #tpu.pipeline_mode<synchronous>, transform_indices = @transform_5, window_bounds = array<i64: 128, 8>}, {pipeline_mode = #tpu.pipeline_mode<synchronous>, transform_indices = @transform_6, window_bounds = array<i64: 32, 128>}, {transform_indices = @transform_7, window_bounds = array<i64: 1, 8, 128>}, {transform_indices = @transform_8, window_bounds = array<i64: 1, 8, 8>}, {transform_indices = @transform_9, window_bounds = array<i64: 1, 8, 8>}]} {
    %0 = tpu.iota {dimensions = array<i32: 1>} : vector<1x32xi32>
    %c0 = arith.constant 0 : index
    %c0_0 = arith.constant 0 : index
    %c0_1 = arith.constant 0 : index
    %1 = vector.load %arg1[%c0, %c0_0, %c0_1] : memref<1x64x32xf32, #tpu.memory_space<vmem>>, vector<1x64x32xf32>
    %2 = vector.shape_cast %1 : vector<1x64x32xf32> to vector<64x32xf32>
    %c0_2 = arith.constant 0 : index
    %c0_3 = arith.constant 0 : index
    %3 = vector.load %arg2[%c0_2, %c0_3] : memref<64x32xf32, #tpu.memory_space<vmem>>, vector<64x32xf32>
    %c0_4 = arith.constant 0 : index
    %c0_5 = arith.constant 0 : index
    %4 = vector.load %arg3[%c0_4, %c0_5] : memref<8x32xf32, #tpu.memory_space<vmem>>, vector<8x32xf32>
    %5 = arith.addf %2, %3 : vector<64x32xf32>
    %6 = arith.truncf %5 : vector<64x32xf32> to vector<64x32xbf16>
    %c0_6 = arith.constant 0 : index
    %c0_7 = arith.constant 0 : index
    %c0_8 = arith.constant 0 : index
    %7 = vector.load %arg4[%c0_6, %c0_7, %c0_8] : memref<16x32x128xbf16, #tpu.memory_space<vmem>>, vector<1x32x64xbf16>
    %8 = vector.shape_cast %7 : vector<1x32x64xbf16> to vector<32x64xbf16>
    %cst = arith.constant dense<0.000000e+00> : vector<64x64xf32>
    %9 = tpu.matmul %6, %8, %cst {dimension_numbers = #tpu.dot_dimension_numbers<[1], [0], [0], [1], [0, 0, 1, 1], [], []>} : vector<64x32xbf16>, vector<32x64xbf16>, vector<64x64xf32> -> vector<64x64xf32>
    %c0_9 = arith.constant 0 : index
    %c0_10 = arith.constant 0 : index
    %10 = vector.load %arg7[%c0_9, %c0_10] : memref<32x128xf32, #tpu.memory_space<vmem>>, vector<1x64xf32>
    %11 = vector.broadcast %10 : vector<1x64xf32> to vector<64x64xf32>
    %12 = arith.addf %9, %11 : vector<64x64xf32>
    %13 = arith.truncf %2 : vector<64x32xf32> to vector<64x32xbf16>
    %c1 = arith.constant 1 : index
    %c0_11 = arith.constant 0 : index
    %c0_12 = arith.constant 0 : index
    %14 = vector.load %arg4[%c1, %c0_11, %c0_12] : memref<16x32x128xbf16, #tpu.memory_space<vmem>>, vector<1x32x32xbf16>
    %15 = vector.shape_cast %14 : vector<1x32x32xbf16> to vector<32x32xbf16>
    %cst_13 = arith.constant dense<0.000000e+00> : vector<64x32xf32>
    %16 = tpu.matmul %13, %15, %cst_13 {dimension_numbers = #tpu.dot_dimension_numbers<[1], [0], [0], [1], [0, 0, 1, 1], [], []>} : vector<64x32xbf16>, vector<32x32xbf16>, vector<64x32xf32> -> vector<64x32xf32>
    %c1_14 = arith.constant 1 : index
    %c0_15 = arith.constant 0 : index
    %17 = vector.load %arg7[%c1_14, %c0_15] : memref<32x128xf32, #tpu.memory_space<vmem>>, vector<1x32xf32>
    %18 = vector.broadcast %17 : vector<1x32xf32> to vector<64x32xf32>
    %19 = arith.addf %16, %18 : vector<64x32xf32>
    %20 = vector.extract_strided_slice %12 {offsets = [0, 0], sizes = [64, 32], strides = [1, 1]} : vector<64x64xf32> to vector<64x32xf32>
    %21 = vector.extract_strided_slice %12 {offsets = [0, 32], sizes = [64, 32], strides = [1, 1]} : vector<64x64xf32> to vector<64x32xf32>
    %cst_16 = arith.constant 0.353553385 : f32
    %22 = vector.broadcast %cst_16 : f32 to vector<64x32xf32>
    %23 = arith.mulf %20, %22 : vector<64x32xf32>
    %24 = arith.truncf %23 : vector<64x32xf32> to vector<64x32xbf16>
    %25 = arith.truncf %21 : vector<64x32xf32> to vector<64x32xbf16>
    %26 = arith.truncf %19 : vector<64x32xf32> to vector<64x32xbf16>
    %cst_17 = arith.constant 0.000000e+00 : f32
    %27 = vector.broadcast %cst_17 : f32 to vector<64x32xf32>
    %c0_i32 = arith.constant 0 : i32
    %28 = vector.broadcast %c0_i32 : i32 to vector<1x32xi32>
    %29 = arith.cmpi sge, %0, %28 : vector<1x32xi32>
    %c8_i32 = arith.constant 8 : i32
    %30 = vector.broadcast %c8_i32 : i32 to vector<1x32xi32>
    %31 = arith.cmpi slt, %0, %30 : vector<1x32xi32>
    %32 = arith.andi %29, %31 : vector<1x32xi1>
    %cst_18 = arith.constant 0.000000e+00 : bf16
    %33 = vector.broadcast %cst_18 : bf16 to vector<64x32xbf16>
    %34 = vector.shape_cast %32 : vector<1x32xi1> to vector<1x32xi1>
    %35 = vector.broadcast %34 : vector<1x32xi1> to vector<64x32xi1>
    %36 = arith.select %35, %24, %33 : vector<64x32xi1>, vector<64x32xbf16>
    %cst_19 = arith.constant 0.000000e+00 : bf16
    %37 = vector.broadcast %cst_19 : bf16 to vector<64x32xbf16>
    %38 = vector.shape_cast %32 : vector<1x32xi1> to vector<1x32xi1>
    %39 = vector.broadcast %38 : vector<1x32xi1> to vector<64x32xi1>
    %40 = arith.select %39, %26, %37 : vector<64x32xi1>, vector<64x32xbf16>
    %cst_20 = arith.constant dense<0.000000e+00> : vector<64x64xf32>
    %41 = tpu.matmul %36, %25, %cst_20 {dimension_numbers = #tpu.dot_dimension_numbers<[1], [1], [0], [0], [0, 0, 1, 0], [], []>} : vector<64x32xbf16>, vector<64x32xbf16>, vector<64x64xf32> -> vector<64x64xf32>
    %cst_21 = arith.constant dense<0xFF800000> : vector<64xf32>
    %42 = vector.multi_reduction <maximumf>, %41, %cst_21 [1] : vector<64x64xf32> to vector<64xf32>
    %43 = vector.shape_cast %42 : vector<64xf32> to vector<64x1xf32>
    %44 = vector.broadcast %43 : vector<64x1xf32> to vector<64x64xf32>
    %45 = arith.subf %41, %44 : vector<64x64xf32>
    %46 = math.exp %45 : vector<64x64xf32>
    %cst_22 = arith.constant dense<0.000000e+00> : vector<64xf32>
    %47 = vector.multi_reduction <add>, %46, %cst_22 [1] : vector<64x64xf32> to vector<64xf32>
    %48 = vector.shape_cast %47 : vector<64xf32> to vector<64x1xf32>
    %49 = tpu.reciprocal %48 {approx = true} : vector<64x1xf32> -> vector<64x1xf32>
    %50 = arith.truncf %46 : vector<64x64xf32> to vector<64x64xbf16>
    %cst_23 = arith.constant dense<0.000000e+00> : vector<64x32xf32>
    %51 = tpu.matmul %50, %40, %cst_23 {dimension_numbers = #tpu.dot_dimension_numbers<[1], [0], [0], [1], [0, 0, 1, 1], [], []>} : vector<64x64xbf16>, vector<64x32xbf16>, vector<64x32xf32> -> vector<64x32xf32>
    %52 = vector.broadcast %49 : vector<64x1xf32> to vector<64x32xf32>
    %53 = arith.mulf %51, %52 : vector<64x32xf32>
    %54 = arith.addf %27, %53 : vector<64x32xf32>
    %c8_i32_24 = arith.constant 8 : i32
    %55 = vector.broadcast %c8_i32_24 : i32 to vector<1x32xi32>
    %56 = arith.cmpi sge, %0, %55 : vector<1x32xi32>
    %c16_i32 = arith.constant 16 : i32
    %57 = vector.broadcast %c16_i32 : i32 to vector<1x32xi32>
    %58 = arith.cmpi slt, %0, %57 : vector<1x32xi32>
    %59 = arith.andi %56, %58 : vector<1x32xi1>
    %cst_25 = arith.constant 0.000000e+00 : bf16
    %60 = vector.broadcast %cst_25 : bf16 to vector<64x32xbf16>
    %61 = vector.shape_cast %59 : vector<1x32xi1> to vector<1x32xi1>
    %62 = vector.broadcast %61 : vector<1x32xi1> to vector<64x32xi1>
    %63 = arith.select %62, %24, %60 : vector<64x32xi1>, vector<64x32xbf16>
    %cst_26 = arith.constant 0.000000e+00 : bf16
    %64 = vector.broadcast %cst_26 : bf16 to vector<64x32xbf16>
    %65 = vector.shape_cast %59 : vector<1x32xi1> to vector<1x32xi1>
    %66 = vector.broadcast %65 : vector<1x32xi1> to vector<64x32xi1>
    %67 = arith.select %66, %26, %64 : vector<64x32xi1>, vector<64x32xbf16>
    %cst_27 = arith.constant dense<0.000000e+00> : vector<64x64xf32>
    %68 = tpu.matmul %63, %25, %cst_27 {dimension_numbers = #tpu.dot_dimension_numbers<[1], [1], [0], [0], [0, 0, 1, 0], [], []>} : vector<64x32xbf16>, vector<64x32xbf16>, vector<64x64xf32> -> vector<64x64xf32>
    %cst_28 = arith.constant dense<0xFF800000> : vector<64xf32>
    %69 = vector.multi_reduction <maximumf>, %68, %cst_28 [1] : vector<64x64xf32> to vector<64xf32>
    %70 = vector.shape_cast %69 : vector<64xf32> to vector<64x1xf32>
    %71 = vector.broadcast %70 : vector<64x1xf32> to vector<64x64xf32>
    %72 = arith.subf %68, %71 : vector<64x64xf32>
    %73 = math.exp %72 : vector<64x64xf32>
    %cst_29 = arith.constant dense<0.000000e+00> : vector<64xf32>
    %74 = vector.multi_reduction <add>, %73, %cst_29 [1] : vector<64x64xf32> to vector<64xf32>
    %75 = vector.shape_cast %74 : vector<64xf32> to vector<64x1xf32>
    %76 = tpu.reciprocal %75 {approx = true} : vector<64x1xf32> -> vector<64x1xf32>
    %77 = arith.truncf %73 : vector<64x64xf32> to vector<64x64xbf16>
    %cst_30 = arith.constant dense<0.000000e+00> : vector<64x32xf32>
    %78 = tpu.matmul %77, %67, %cst_30 {dimension_numbers = #tpu.dot_dimension_numbers<[1], [0], [0], [1], [0, 0, 1, 1], [], []>} : vector<64x64xbf16>, vector<64x32xbf16>, vector<64x32xf32> -> vector<64x32xf32>
    %79 = vector.broadcast %76 : vector<64x1xf32> to vector<64x32xf32>
    %80 = arith.mulf %78, %79 : vector<64x32xf32>
    %81 = arith.addf %54, %80 : vector<64x32xf32>
    %c16_i32_31 = arith.constant 16 : i32
    %82 = vector.broadcast %c16_i32_31 : i32 to vector<1x32xi32>
    %83 = arith.cmpi sge, %0, %82 : vector<1x32xi32>
    %c24_i32 = arith.constant 24 : i32
    %84 = vector.broadcast %c24_i32 : i32 to vector<1x32xi32>
    %85 = arith.cmpi slt, %0, %84 : vector<1x32xi32>
    %86 = arith.andi %83, %85 : vector<1x32xi1>
    %cst_32 = arith.constant 0.000000e+00 : bf16
    %87 = vector.broadcast %cst_32 : bf16 to vector<64x32xbf16>
    %88 = vector.shape_cast %86 : vector<1x32xi1> to vector<1x32xi1>
    %89 = vector.broadcast %88 : vector<1x32xi1> to vector<64x32xi1>
    %90 = arith.select %89, %24, %87 : vector<64x32xi1>, vector<64x32xbf16>
    %cst_33 = arith.constant 0.000000e+00 : bf16
    %91 = vector.broadcast %cst_33 : bf16 to vector<64x32xbf16>
    %92 = vector.shape_cast %86 : vector<1x32xi1> to vector<1x32xi1>
    %93 = vector.broadcast %92 : vector<1x32xi1> to vector<64x32xi1>
    %94 = arith.select %93, %26, %91 : vector<64x32xi1>, vector<64x32xbf16>
    %cst_34 = arith.constant dense<0.000000e+00> : vector<64x64xf32>
    %95 = tpu.matmul %90, %25, %cst_34 {dimension_numbers = #tpu.dot_dimension_numbers<[1], [1], [0], [0], [0, 0, 1, 0], [], []>} : vector<64x32xbf16>, vector<64x32xbf16>, vector<64x64xf32> -> vector<64x64xf32>
    %cst_35 = arith.constant dense<0xFF800000> : vector<64xf32>
    %96 = vector.multi_reduction <maximumf>, %95, %cst_35 [1] : vector<64x64xf32> to vector<64xf32>
    %97 = vector.shape_cast %96 : vector<64xf32> to vector<64x1xf32>
    %98 = vector.broadcast %97 : vector<64x1xf32> to vector<64x64xf32>
    %99 = arith.subf %95, %98 : vector<64x64xf32>
    %100 = math.exp %99 : vector<64x64xf32>
    %cst_36 = arith.constant dense<0.000000e+00> : vector<64xf32>
    %101 = vector.multi_reduction <add>, %100, %cst_36 [1] : vector<64x64xf32> to vector<64xf32>
    %102 = vector.shape_cast %101 : vector<64xf32> to vector<64x1xf32>
    %103 = tpu.reciprocal %102 {approx = true} : vector<64x1xf32> -> vector<64x1xf32>
    %104 = arith.truncf %100 : vector<64x64xf32> to vector<64x64xbf16>
    %cst_37 = arith.constant dense<0.000000e+00> : vector<64x32xf32>
    %105 = tpu.matmul %104, %94, %cst_37 {dimension_numbers = #tpu.dot_dimension_numbers<[1], [0], [0], [1], [0, 0, 1, 1], [], []>} : vector<64x64xbf16>, vector<64x32xbf16>, vector<64x32xf32> -> vector<64x32xf32>
    %106 = vector.broadcast %103 : vector<64x1xf32> to vector<64x32xf32>
    %107 = arith.mulf %105, %106 : vector<64x32xf32>
    %108 = arith.addf %81, %107 : vector<64x32xf32>
    %c24_i32_38 = arith.constant 24 : i32
    %109 = vector.broadcast %c24_i32_38 : i32 to vector<1x32xi32>
    %110 = arith.cmpi sge, %0, %109 : vector<1x32xi32>
    %c32_i32 = arith.constant 32 : i32
    %111 = vector.broadcast %c32_i32 : i32 to vector<1x32xi32>
    %112 = arith.cmpi slt, %0, %111 : vector<1x32xi32>
    %113 = arith.andi %110, %112 : vector<1x32xi1>
    %cst_39 = arith.constant 0.000000e+00 : bf16
    %114 = vector.broadcast %cst_39 : bf16 to vector<64x32xbf16>
    %115 = vector.shape_cast %113 : vector<1x32xi1> to vector<1x32xi1>
    %116 = vector.broadcast %115 : vector<1x32xi1> to vector<64x32xi1>
    %117 = arith.select %116, %24, %114 : vector<64x32xi1>, vector<64x32xbf16>
    %cst_40 = arith.constant 0.000000e+00 : bf16
    %118 = vector.broadcast %cst_40 : bf16 to vector<64x32xbf16>
    %119 = vector.shape_cast %113 : vector<1x32xi1> to vector<1x32xi1>
    %120 = vector.broadcast %119 : vector<1x32xi1> to vector<64x32xi1>
    %121 = arith.select %120, %26, %118 : vector<64x32xi1>, vector<64x32xbf16>
    %cst_41 = arith.constant dense<0.000000e+00> : vector<64x64xf32>
    %122 = tpu.matmul %117, %25, %cst_41 {dimension_numbers = #tpu.dot_dimension_numbers<[1], [1], [0], [0], [0, 0, 1, 0], [], []>} : vector<64x32xbf16>, vector<64x32xbf16>, vector<64x64xf32> -> vector<64x64xf32>
    %cst_42 = arith.constant dense<0xFF800000> : vector<64xf32>
    %123 = vector.multi_reduction <maximumf>, %122, %cst_42 [1] : vector<64x64xf32> to vector<64xf32>
    %124 = vector.shape_cast %123 : vector<64xf32> to vector<64x1xf32>
    %125 = vector.broadcast %124 : vector<64x1xf32> to vector<64x64xf32>
    %126 = arith.subf %122, %125 : vector<64x64xf32>
    %127 = math.exp %126 : vector<64x64xf32>
    %cst_43 = arith.constant dense<0.000000e+00> : vector<64xf32>
    %128 = vector.multi_reduction <add>, %127, %cst_43 [1] : vector<64x64xf32> to vector<64xf32>
    %129 = vector.shape_cast %128 : vector<64xf32> to vector<64x1xf32>
    %130 = tpu.reciprocal %129 {approx = true} : vector<64x1xf32> -> vector<64x1xf32>
    %131 = arith.truncf %127 : vector<64x64xf32> to vector<64x64xbf16>
    %cst_44 = arith.constant dense<0.000000e+00> : vector<64x32xf32>
    %132 = tpu.matmul %131, %121, %cst_44 {dimension_numbers = #tpu.dot_dimension_numbers<[1], [0], [0], [1], [0, 0, 1, 1], [], []>} : vector<64x64xbf16>, vector<64x32xbf16>, vector<64x32xf32> -> vector<64x32xf32>
    %133 = vector.broadcast %130 : vector<64x1xf32> to vector<64x32xf32>
    %134 = arith.mulf %132, %133 : vector<64x32xf32>
    %135 = arith.addf %108, %134 : vector<64x32xf32>
    %136 = arith.truncf %135 : vector<64x32xf32> to vector<64x32xbf16>
    %c2 = arith.constant 2 : index
    %c0_45 = arith.constant 0 : index
    %c0_46 = arith.constant 0 : index
    %137 = vector.load %arg4[%c2, %c0_45, %c0_46] : memref<16x32x128xbf16, #tpu.memory_space<vmem>>, vector<1x32x32xbf16>
    %138 = vector.shape_cast %137 : vector<1x32x32xbf16> to vector<32x32xbf16>
    %cst_47 = arith.constant dense<0.000000e+00> : vector<64x32xf32>
    %139 = tpu.matmul %136, %138, %cst_47 {dimension_numbers = #tpu.dot_dimension_numbers<[1], [0], [0], [1], [0, 0, 1, 1], [], []>} : vector<64x32xbf16>, vector<32x32xbf16>, vector<64x32xf32> -> vector<64x32xf32>
    %c2_48 = arith.constant 2 : index
    %c0_49 = arith.constant 0 : index
    %140 = vector.load %arg7[%c2_48, %c0_49] : memref<32x128xf32, #tpu.memory_space<vmem>>, vector<1x32xf32>
    %141 = vector.broadcast %140 : vector<1x32xf32> to vector<64x32xf32>
    %142 = arith.addf %139, %141 : vector<64x32xf32>
    %143 = arith.addf %2, %142 : vector<64x32xf32>
    %cst_50 = arith.constant dense<0.000000e+00> : vector<64xf32>
    %144 = vector.multi_reduction <add>, %143, %cst_50 [1] : vector<64x32xf32> to vector<64xf32>
    %145 = vector.shape_cast %144 : vector<64xf32> to vector<64x1xf32>
    %cst_51 = arith.constant 3.200000e+01 : f32
    %146 = vector.broadcast %cst_51 : f32 to vector<64x1xf32>
    %147 = arith.divf %145, %146 : vector<64x1xf32>
    %148 = vector.broadcast %147 : vector<64x1xf32> to vector<64x32xf32>
    %149 = arith.subf %143, %148 : vector<64x32xf32>
    %150 = arith.mulf %149, %149 : vector<64x32xf32>
    %cst_52 = arith.constant dense<0.000000e+00> : vector<64xf32>
    %151 = vector.multi_reduction <add>, %150, %cst_52 [1] : vector<64x32xf32> to vector<64xf32>
    %152 = vector.shape_cast %151 : vector<64xf32> to vector<64x1xf32>
    %cst_53 = arith.constant 3.200000e+01 : f32
    %153 = vector.broadcast %cst_53 : f32 to vector<64x1xf32>
    %154 = arith.divf %152, %153 : vector<64x1xf32>
    %cst_54 = arith.constant 9.99999974E-6 : f32
    %155 = vector.broadcast %cst_54 : f32 to vector<64x1xf32>
    %156 = arith.addf %154, %155 : vector<64x1xf32>
    %157 = math.rsqrt %156 : vector<64x1xf32>
    %158 = vector.broadcast %157 : vector<64x1xf32> to vector<64x32xf32>
    %159 = arith.mulf %149, %158 : vector<64x32xf32>
    %c3 = arith.constant 3 : index
    %c0_55 = arith.constant 0 : index
    %160 = vector.load %arg7[%c3, %c0_55] : memref<32x128xf32, #tpu.memory_space<vmem>>, vector<1x32xf32>
    %161 = vector.broadcast %160 : vector<1x32xf32> to vector<64x32xf32>
    %162 = arith.mulf %159, %161 : vector<64x32xf32>
    %c4 = arith.constant 4 : index
    %c0_56 = arith.constant 0 : index
    %163 = vector.load %arg7[%c4, %c0_56] : memref<32x128xf32, #tpu.memory_space<vmem>>, vector<1x32xf32>
    %164 = vector.broadcast %163 : vector<1x32xf32> to vector<64x32xf32>
    %165 = arith.addf %162, %164 : vector<64x32xf32>
    %166 = arith.truncf %165 : vector<64x32xf32> to vector<64x32xbf16>
    %c3_57 = arith.constant 3 : index
    %c0_58 = arith.constant 0 : index
    %c0_59 = arith.constant 0 : index
    %167 = vector.load %arg4[%c3_57, %c0_58, %c0_59] : memref<16x32x128xbf16, #tpu.memory_space<vmem>>, vector<1x32x64xbf16>
    %168 = vector.shape_cast %167 : vector<1x32x64xbf16> to vector<32x64xbf16>
    %cst_60 = arith.constant dense<0.000000e+00> : vector<64x64xf32>
    %169 = tpu.matmul %166, %168, %cst_60 {dimension_numbers = #tpu.dot_dimension_numbers<[1], [0], [0], [1], [0, 0, 1, 1], [], []>} : vector<64x32xbf16>, vector<32x64xbf16>, vector<64x64xf32> -> vector<64x64xf32>
    %c5 = arith.constant 5 : index
    %c0_61 = arith.constant 0 : index
    %170 = vector.load %arg7[%c5, %c0_61] : memref<32x128xf32, #tpu.memory_space<vmem>>, vector<1x64xf32>
    %171 = vector.broadcast %170 : vector<1x64xf32> to vector<64x64xf32>
    %172 = arith.addf %169, %171 : vector<64x64xf32>
    %cst_62 = arith.constant 0.000000e+00 : f32
    %173 = vector.broadcast %cst_62 : f32 to vector<64x64xf32>
    %174 = arith.maximumf %172, %173 : vector<64x64xf32>
    %175 = arith.truncf %174 : vector<64x64xf32> to vector<64x64xbf16>
    %c0_63 = arith.constant 0 : index
    %c0_64 = arith.constant 0 : index
    %c0_65 = arith.constant 0 : index
    %176 = vector.load %arg5[%c0_63, %c0_64, %c0_65] : memref<2x64x32xbf16, #tpu.memory_space<vmem>>, vector<1x64x32xbf16>
    %177 = vector.shape_cast %176 : vector<1x64x32xbf16> to vector<64x32xbf16>
    %cst_66 = arith.constant dense<0.000000e+00> : vector<64x32xf32>
    %178 = tpu.matmul %175, %177, %cst_66 {dimension_numbers = #tpu.dot_dimension_numbers<[1], [0], [0], [1], [0, 0, 1, 1], [], []>} : vector<64x64xbf16>, vector<64x32xbf16>, vector<64x32xf32> -> vector<64x32xf32>
    %c6 = arith.constant 6 : index
    %c0_67 = arith.constant 0 : index
    %179 = vector.load %arg7[%c6, %c0_67] : memref<32x128xf32, #tpu.memory_space<vmem>>, vector<1x32xf32>
    %180 = vector.broadcast %179 : vector<1x32xf32> to vector<64x32xf32>
    %181 = arith.addf %178, %180 : vector<64x32xf32>
    %182 = arith.addf %165, %181 : vector<64x32xf32>
    %cst_68 = arith.constant dense<0.000000e+00> : vector<64xf32>
    %183 = vector.multi_reduction <add>, %182, %cst_68 [1] : vector<64x32xf32> to vector<64xf32>
    %184 = vector.shape_cast %183 : vector<64xf32> to vector<64x1xf32>
    %cst_69 = arith.constant 3.200000e+01 : f32
    %185 = vector.broadcast %cst_69 : f32 to vector<64x1xf32>
    %186 = arith.divf %184, %185 : vector<64x1xf32>
    %187 = vector.broadcast %186 : vector<64x1xf32> to vector<64x32xf32>
    %188 = arith.subf %182, %187 : vector<64x32xf32>
    %189 = arith.mulf %188, %188 : vector<64x32xf32>
    %cst_70 = arith.constant dense<0.000000e+00> : vector<64xf32>
    %190 = vector.multi_reduction <add>, %189, %cst_70 [1] : vector<64x32xf32> to vector<64xf32>
    %191 = vector.shape_cast %190 : vector<64xf32> to vector<64x1xf32>
    %cst_71 = arith.constant 3.200000e+01 : f32
    %192 = vector.broadcast %cst_71 : f32 to vector<64x1xf32>
    %193 = arith.divf %191, %192 : vector<64x1xf32>
    %cst_72 = arith.constant 9.99999974E-6 : f32
    %194 = vector.broadcast %cst_72 : f32 to vector<64x1xf32>
    %195 = arith.addf %193, %194 : vector<64x1xf32>
    %196 = math.rsqrt %195 : vector<64x1xf32>
    %197 = vector.broadcast %196 : vector<64x1xf32> to vector<64x32xf32>
    %198 = arith.mulf %188, %197 : vector<64x32xf32>
    %c7 = arith.constant 7 : index
    %c0_73 = arith.constant 0 : index
    %199 = vector.load %arg7[%c7, %c0_73] : memref<32x128xf32, #tpu.memory_space<vmem>>, vector<1x32xf32>
    %200 = vector.broadcast %199 : vector<1x32xf32> to vector<64x32xf32>
    %201 = arith.mulf %198, %200 : vector<64x32xf32>
    %c8 = arith.constant 8 : index
    %c0_74 = arith.constant 0 : index
    %202 = vector.load %arg7[%c8, %c0_74] : memref<32x128xf32, #tpu.memory_space<vmem>>, vector<1x32xf32>
    %203 = vector.broadcast %202 : vector<1x32xf32> to vector<64x32xf32>
    %204 = arith.addf %201, %203 : vector<64x32xf32>
    %205 = arith.truncf %4 : vector<8x32xf32> to vector<8x32xbf16>
    %c4_75 = arith.constant 4 : index
    %c0_76 = arith.constant 0 : index
    %c0_77 = arith.constant 0 : index
    %206 = vector.load %arg4[%c4_75, %c0_76, %c0_77] : memref<16x32x128xbf16, #tpu.memory_space<vmem>>, vector<1x32x64xbf16>
    %207 = vector.shape_cast %206 : vector<1x32x64xbf16> to vector<32x64xbf16>
    %cst_78 = arith.constant dense<0.000000e+00> : vector<8x64xf32>
    %208 = tpu.matmul %205, %207, %cst_78 {dimension_numbers = #tpu.dot_dimension_numbers<[1], [0], [0], [1], [0, 0, 1, 1], [], []>} : vector<8x32xbf16>, vector<32x64xbf16>, vector<8x64xf32> -> vector<8x64xf32>
    %c9 = arith.constant 9 : index
    %c0_79 = arith.constant 0 : index
    %209 = vector.load %arg7[%c9, %c0_79] : memref<32x128xf32, #tpu.memory_space<vmem>>, vector<1x64xf32>
    %210 = vector.broadcast %209 : vector<1x64xf32> to vector<8x64xf32>
    %211 = arith.addf %208, %210 : vector<8x64xf32>
    %c10 = arith.constant 10 : index
    %c0_80 = arith.constant 0 : index
    %212 = vector.load %arg7[%c10, %c0_80] : memref<32x128xf32, #tpu.memory_space<vmem>>, vector<1x32xf32>
    %213 = vector.shape_cast %212 : vector<1x32xf32> to vector<1x32xf32>
    %214 = vector.broadcast %213 : vector<1x32xf32> to vector<8x32xf32>
    %215 = vector.extract_strided_slice %211 {offsets = [0, 0], sizes = [8, 32], strides = [1, 1]} : vector<8x64xf32> to vector<8x32xf32>
    %216 = vector.extract_strided_slice %211 {offsets = [0, 32], sizes = [8, 32], strides = [1, 1]} : vector<8x64xf32> to vector<8x32xf32>
    %cst_81 = arith.constant 0.353553385 : f32
    %217 = vector.broadcast %cst_81 : f32 to vector<8x32xf32>
    %218 = arith.mulf %215, %217 : vector<8x32xf32>
    %219 = arith.truncf %218 : vector<8x32xf32> to vector<8x32xbf16>
    %220 = arith.truncf %216 : vector<8x32xf32> to vector<8x32xbf16>
    %221 = arith.truncf %214 : vector<8x32xf32> to vector<8x32xbf16>
    %cst_82 = arith.constant 0.000000e+00 : f32
    %222 = vector.broadcast %cst_82 : f32 to vector<8x32xf32>
    %c0_i32_83 = arith.constant 0 : i32
    %223 = vector.broadcast %c0_i32_83 : i32 to vector<1x32xi32>
    %224 = arith.cmpi sge, %0, %223 : vector<1x32xi32>
    %c8_i32_84 = arith.constant 8 : i32
    %225 = vector.broadcast %c8_i32_84 : i32 to vector<1x32xi32>
    %226 = arith.cmpi slt, %0, %225 : vector<1x32xi32>
    %227 = arith.andi %224, %226 : vector<1x32xi1>
    %cst_85 = arith.constant 0.000000e+00 : bf16
    %228 = vector.broadcast %cst_85 : bf16 to vector<8x32xbf16>
    %229 = vector.shape_cast %227 : vector<1x32xi1> to vector<1x32xi1>
    %230 = vector.broadcast %229 : vector<1x32xi1> to vector<8x32xi1>
    %231 = arith.select %230, %219, %228 : vector<8x32xi1>, vector<8x32xbf16>
    %cst_86 = arith.constant 0.000000e+00 : bf16
    %232 = vector.broadcast %cst_86 : bf16 to vector<8x32xbf16>
    %233 = vector.shape_cast %227 : vector<1x32xi1> to vector<1x32xi1>
    %234 = vector.broadcast %233 : vector<1x32xi1> to vector<8x32xi1>
    %235 = arith.select %234, %221, %232 : vector<8x32xi1>, vector<8x32xbf16>
    %cst_87 = arith.constant dense<0.000000e+00> : vector<8x8xf32>
    %236 = tpu.matmul %231, %220, %cst_87 {dimension_numbers = #tpu.dot_dimension_numbers<[1], [1], [0], [0], [0, 0, 1, 0], [], []>} : vector<8x32xbf16>, vector<8x32xbf16>, vector<8x8xf32> -> vector<8x8xf32>
    %cst_88 = arith.constant dense<0xFF800000> : vector<8xf32>
    %237 = vector.multi_reduction <maximumf>, %236, %cst_88 [1] : vector<8x8xf32> to vector<8xf32>
    %238 = vector.shape_cast %237 : vector<8xf32> to vector<8x1xf32>
    %239 = vector.broadcast %238 : vector<8x1xf32> to vector<8x8xf32>
    %240 = arith.subf %236, %239 : vector<8x8xf32>
    %241 = math.exp %240 : vector<8x8xf32>
    %cst_89 = arith.constant dense<0.000000e+00> : vector<8xf32>
    %242 = vector.multi_reduction <add>, %241, %cst_89 [1] : vector<8x8xf32> to vector<8xf32>
    %243 = vector.shape_cast %242 : vector<8xf32> to vector<8x1xf32>
    %244 = tpu.reciprocal %243 {approx = true} : vector<8x1xf32> -> vector<8x1xf32>
    %245 = arith.truncf %241 : vector<8x8xf32> to vector<8x8xbf16>
    %cst_90 = arith.constant dense<0.000000e+00> : vector<8x32xf32>
    %246 = tpu.matmul %245, %235, %cst_90 {dimension_numbers = #tpu.dot_dimension_numbers<[1], [0], [0], [1], [0, 0, 1, 1], [], []>} : vector<8x8xbf16>, vector<8x32xbf16>, vector<8x32xf32> -> vector<8x32xf32>
    %247 = vector.broadcast %244 : vector<8x1xf32> to vector<8x32xf32>
    %248 = arith.mulf %246, %247 : vector<8x32xf32>
    %249 = arith.addf %222, %248 : vector<8x32xf32>
    %c8_i32_91 = arith.constant 8 : i32
    %250 = vector.broadcast %c8_i32_91 : i32 to vector<1x32xi32>
    %251 = arith.cmpi sge, %0, %250 : vector<1x32xi32>
    %c16_i32_92 = arith.constant 16 : i32
    %252 = vector.broadcast %c16_i32_92 : i32 to vector<1x32xi32>
    %253 = arith.cmpi slt, %0, %252 : vector<1x32xi32>
    %254 = arith.andi %251, %253 : vector<1x32xi1>
    %cst_93 = arith.constant 0.000000e+00 : bf16
    %255 = vector.broadcast %cst_93 : bf16 to vector<8x32xbf16>
    %256 = vector.shape_cast %254 : vector<1x32xi1> to vector<1x32xi1>
    %257 = vector.broadcast %256 : vector<1x32xi1> to vector<8x32xi1>
    %258 = arith.select %257, %219, %255 : vector<8x32xi1>, vector<8x32xbf16>
    %cst_94 = arith.constant 0.000000e+00 : bf16
    %259 = vector.broadcast %cst_94 : bf16 to vector<8x32xbf16>
    %260 = vector.shape_cast %254 : vector<1x32xi1> to vector<1x32xi1>
    %261 = vector.broadcast %260 : vector<1x32xi1> to vector<8x32xi1>
    %262 = arith.select %261, %221, %259 : vector<8x32xi1>, vector<8x32xbf16>
    %cst_95 = arith.constant dense<0.000000e+00> : vector<8x8xf32>
    %263 = tpu.matmul %258, %220, %cst_95 {dimension_numbers = #tpu.dot_dimension_numbers<[1], [1], [0], [0], [0, 0, 1, 0], [], []>} : vector<8x32xbf16>, vector<8x32xbf16>, vector<8x8xf32> -> vector<8x8xf32>
    %cst_96 = arith.constant dense<0xFF800000> : vector<8xf32>
    %264 = vector.multi_reduction <maximumf>, %263, %cst_96 [1] : vector<8x8xf32> to vector<8xf32>
    %265 = vector.shape_cast %264 : vector<8xf32> to vector<8x1xf32>
    %266 = vector.broadcast %265 : vector<8x1xf32> to vector<8x8xf32>
    %267 = arith.subf %263, %266 : vector<8x8xf32>
    %268 = math.exp %267 : vector<8x8xf32>
    %cst_97 = arith.constant dense<0.000000e+00> : vector<8xf32>
    %269 = vector.multi_reduction <add>, %268, %cst_97 [1] : vector<8x8xf32> to vector<8xf32>
    %270 = vector.shape_cast %269 : vector<8xf32> to vector<8x1xf32>
    %271 = tpu.reciprocal %270 {approx = true} : vector<8x1xf32> -> vector<8x1xf32>
    %272 = arith.truncf %268 : vector<8x8xf32> to vector<8x8xbf16>
    %cst_98 = arith.constant dense<0.000000e+00> : vector<8x32xf32>
    %273 = tpu.matmul %272, %262, %cst_98 {dimension_numbers = #tpu.dot_dimension_numbers<[1], [0], [0], [1], [0, 0, 1, 1], [], []>} : vector<8x8xbf16>, vector<8x32xbf16>, vector<8x32xf32> -> vector<8x32xf32>
    %274 = vector.broadcast %271 : vector<8x1xf32> to vector<8x32xf32>
    %275 = arith.mulf %273, %274 : vector<8x32xf32>
    %276 = arith.addf %249, %275 : vector<8x32xf32>
    %c16_i32_99 = arith.constant 16 : i32
    %277 = vector.broadcast %c16_i32_99 : i32 to vector<1x32xi32>
    %278 = arith.cmpi sge, %0, %277 : vector<1x32xi32>
    %c24_i32_100 = arith.constant 24 : i32
    %279 = vector.broadcast %c24_i32_100 : i32 to vector<1x32xi32>
    %280 = arith.cmpi slt, %0, %279 : vector<1x32xi32>
    %281 = arith.andi %278, %280 : vector<1x32xi1>
    %cst_101 = arith.constant 0.000000e+00 : bf16
    %282 = vector.broadcast %cst_101 : bf16 to vector<8x32xbf16>
    %283 = vector.shape_cast %281 : vector<1x32xi1> to vector<1x32xi1>
    %284 = vector.broadcast %283 : vector<1x32xi1> to vector<8x32xi1>
    %285 = arith.select %284, %219, %282 : vector<8x32xi1>, vector<8x32xbf16>
    %cst_102 = arith.constant 0.000000e+00 : bf16
    %286 = vector.broadcast %cst_102 : bf16 to vector<8x32xbf16>
    %287 = vector.shape_cast %281 : vector<1x32xi1> to vector<1x32xi1>
    %288 = vector.broadcast %287 : vector<1x32xi1> to vector<8x32xi1>
    %289 = arith.select %288, %221, %286 : vector<8x32xi1>, vector<8x32xbf16>
    %cst_103 = arith.constant dense<0.000000e+00> : vector<8x8xf32>
    %290 = tpu.matmul %285, %220, %cst_103 {dimension_numbers = #tpu.dot_dimension_numbers<[1], [1], [0], [0], [0, 0, 1, 0], [], []>} : vector<8x32xbf16>, vector<8x32xbf16>, vector<8x8xf32> -> vector<8x8xf32>
    %cst_104 = arith.constant dense<0xFF800000> : vector<8xf32>
    %291 = vector.multi_reduction <maximumf>, %290, %cst_104 [1] : vector<8x8xf32> to vector<8xf32>
    %292 = vector.shape_cast %291 : vector<8xf32> to vector<8x1xf32>
    %293 = vector.broadcast %292 : vector<8x1xf32> to vector<8x8xf32>
    %294 = arith.subf %290, %293 : vector<8x8xf32>
    %295 = math.exp %294 : vector<8x8xf32>
    %cst_105 = arith.constant dense<0.000000e+00> : vector<8xf32>
    %296 = vector.multi_reduction <add>, %295, %cst_105 [1] : vector<8x8xf32> to vector<8xf32>
    %297 = vector.shape_cast %296 : vector<8xf32> to vector<8x1xf32>
    %298 = tpu.reciprocal %297 {approx = true} : vector<8x1xf32> -> vector<8x1xf32>
    %299 = arith.truncf %295 : vector<8x8xf32> to vector<8x8xbf16>
    %cst_106 = arith.constant dense<0.000000e+00> : vector<8x32xf32>
    %300 = tpu.matmul %299, %289, %cst_106 {dimension_numbers = #tpu.dot_dimension_numbers<[1], [0], [0], [1], [0, 0, 1, 1], [], []>} : vector<8x8xbf16>, vector<8x32xbf16>, vector<8x32xf32> -> vector<8x32xf32>
    %301 = vector.broadcast %298 : vector<8x1xf32> to vector<8x32xf32>
    %302 = arith.mulf %300, %301 : vector<8x32xf32>
    %303 = arith.addf %276, %302 : vector<8x32xf32>
    %c24_i32_107 = arith.constant 24 : i32
    %304 = vector.broadcast %c24_i32_107 : i32 to vector<1x32xi32>
    %305 = arith.cmpi sge, %0, %304 : vector<1x32xi32>
    %c32_i32_108 = arith.constant 32 : i32
    %306 = vector.broadcast %c32_i32_108 : i32 to vector<1x32xi32>
    %307 = arith.cmpi slt, %0, %306 : vector<1x32xi32>
    %308 = arith.andi %305, %307 : vector<1x32xi1>
    %cst_109 = arith.constant 0.000000e+00 : bf16
    %309 = vector.broadcast %cst_109 : bf16 to vector<8x32xbf16>
    %310 = vector.shape_cast %308 : vector<1x32xi1> to vector<1x32xi1>
    %311 = vector.broadcast %310 : vector<1x32xi1> to vector<8x32xi1>
    %312 = arith.select %311, %219, %309 : vector<8x32xi1>, vector<8x32xbf16>
    %cst_110 = arith.constant 0.000000e+00 : bf16
    %313 = vector.broadcast %cst_110 : bf16 to vector<8x32xbf16>
    %314 = vector.shape_cast %308 : vector<1x32xi1> to vector<1x32xi1>
    %315 = vector.broadcast %314 : vector<1x32xi1> to vector<8x32xi1>
    %316 = arith.select %315, %221, %313 : vector<8x32xi1>, vector<8x32xbf16>
    %cst_111 = arith.constant dense<0.000000e+00> : vector<8x8xf32>
    %317 = tpu.matmul %312, %220, %cst_111 {dimension_numbers = #tpu.dot_dimension_numbers<[1], [1], [0], [0], [0, 0, 1, 0], [], []>} : vector<8x32xbf16>, vector<8x32xbf16>, vector<8x8xf32> -> vector<8x8xf32>
    %cst_112 = arith.constant dense<0xFF800000> : vector<8xf32>
    %318 = vector.multi_reduction <maximumf>, %317, %cst_112 [1] : vector<8x8xf32> to vector<8xf32>
    %319 = vector.shape_cast %318 : vector<8xf32> to vector<8x1xf32>
    %320 = vector.broadcast %319 : vector<8x1xf32> to vector<8x8xf32>
    %321 = arith.subf %317, %320 : vector<8x8xf32>
    %322 = math.exp %321 : vector<8x8xf32>
    %cst_113 = arith.constant dense<0.000000e+00> : vector<8xf32>
    %323 = vector.multi_reduction <add>, %322, %cst_113 [1] : vector<8x8xf32> to vector<8xf32>
    %324 = vector.shape_cast %323 : vector<8xf32> to vector<8x1xf32>
    %325 = tpu.reciprocal %324 {approx = true} : vector<8x1xf32> -> vector<8x1xf32>
    %326 = arith.truncf %322 : vector<8x8xf32> to vector<8x8xbf16>
    %cst_114 = arith.constant dense<0.000000e+00> : vector<8x32xf32>
    %327 = tpu.matmul %326, %316, %cst_114 {dimension_numbers = #tpu.dot_dimension_numbers<[1], [0], [0], [1], [0, 0, 1, 1], [], []>} : vector<8x8xbf16>, vector<8x32xbf16>, vector<8x32xf32> -> vector<8x32xf32>
    %328 = vector.broadcast %325 : vector<8x1xf32> to vector<8x32xf32>
    %329 = arith.mulf %327, %328 : vector<8x32xf32>
    %330 = arith.addf %303, %329 : vector<8x32xf32>
    %331 = arith.truncf %330 : vector<8x32xf32> to vector<8x32xbf16>
    %c6_115 = arith.constant 6 : index
    %c0_116 = arith.constant 0 : index
    %c0_117 = arith.constant 0 : index
    %332 = vector.load %arg4[%c6_115, %c0_116, %c0_117] : memref<16x32x128xbf16, #tpu.memory_space<vmem>>, vector<1x32x32xbf16>
    %333 = vector.shape_cast %332 : vector<1x32x32xbf16> to vector<32x32xbf16>
    %cst_118 = arith.constant dense<0.000000e+00> : vector<8x32xf32>
    %334 = tpu.matmul %331, %333, %cst_118 {dimension_numbers = #tpu.dot_dimension_numbers<[1], [0], [0], [1], [0, 0, 1, 1], [], []>} : vector<8x32xbf16>, vector<32x32xbf16>, vector<8x32xf32> -> vector<8x32xf32>
    %c11 = arith.constant 11 : index
    %c0_119 = arith.constant 0 : index
    %335 = vector.load %arg7[%c11, %c0_119] : memref<32x128xf32, #tpu.memory_space<vmem>>, vector<1x32xf32>
    %336 = vector.broadcast %335 : vector<1x32xf32> to vector<8x32xf32>
    %337 = arith.addf %334, %336 : vector<8x32xf32>
    %cst_120 = arith.constant dense<0.000000e+00> : vector<8xf32>
    %338 = vector.multi_reduction <add>, %337, %cst_120 [1] : vector<8x32xf32> to vector<8xf32>
    %339 = vector.shape_cast %338 : vector<8xf32> to vector<8x1xf32>
    %cst_121 = arith.constant 3.200000e+01 : f32
    %340 = vector.broadcast %cst_121 : f32 to vector<8x1xf32>
    %341 = arith.divf %339, %340 : vector<8x1xf32>
    %342 = vector.broadcast %341 : vector<8x1xf32> to vector<8x32xf32>
    %343 = arith.subf %337, %342 : vector<8x32xf32>
    %344 = arith.mulf %343, %343 : vector<8x32xf32>
    %cst_122 = arith.constant dense<0.000000e+00> : vector<8xf32>
    %345 = vector.multi_reduction <add>, %344, %cst_122 [1] : vector<8x32xf32> to vector<8xf32>
    %346 = vector.shape_cast %345 : vector<8xf32> to vector<8x1xf32>
    %cst_123 = arith.constant 3.200000e+01 : f32
    %347 = vector.broadcast %cst_123 : f32 to vector<8x1xf32>
    %348 = arith.divf %346, %347 : vector<8x1xf32>
    %cst_124 = arith.constant 9.99999974E-6 : f32
    %349 = vector.broadcast %cst_124 : f32 to vector<8x1xf32>
    %350 = arith.addf %348, %349 : vector<8x1xf32>
    %351 = math.rsqrt %350 : vector<8x1xf32>
    %352 = vector.broadcast %351 : vector<8x1xf32> to vector<8x32xf32>
    %353 = arith.mulf %343, %352 : vector<8x32xf32>
    %c12 = arith.constant 12 : index
    %c0_125 = arith.constant 0 : index
    %354 = vector.load %arg7[%c12, %c0_125] : memref<32x128xf32, #tpu.memory_space<vmem>>, vector<1x32xf32>
    %355 = vector.broadcast %354 : vector<1x32xf32> to vector<8x32xf32>
    %356 = arith.mulf %353, %355 : vector<8x32xf32>
    %c13 = arith.constant 13 : index
    %c0_126 = arith.constant 0 : index
    %357 = vector.load %arg7[%c13, %c0_126] : memref<32x128xf32, #tpu.memory_space<vmem>>, vector<1x32xf32>
    %358 = vector.broadcast %357 : vector<1x32xf32> to vector<8x32xf32>
    %359 = arith.addf %356, %358 : vector<8x32xf32>
    %360 = arith.addf %359, %4 : vector<8x32xf32>
    %361 = arith.truncf %360 : vector<8x32xf32> to vector<8x32xbf16>
    %c7_127 = arith.constant 7 : index
    %c0_128 = arith.constant 0 : index
    %c0_129 = arith.constant 0 : index
    %362 = vector.load %arg4[%c7_127, %c0_128, %c0_129] : memref<16x32x128xbf16, #tpu.memory_space<vmem>>, vector<1x32x32xbf16>
    %363 = vector.shape_cast %362 : vector<1x32x32xbf16> to vector<32x32xbf16>
    %cst_130 = arith.constant dense<0.000000e+00> : vector<8x32xf32>
    %364 = tpu.matmul %361, %363, %cst_130 {dimension_numbers = #tpu.dot_dimension_numbers<[1], [0], [0], [1], [0, 0, 1, 1], [], []>} : vector<8x32xbf16>, vector<32x32xbf16>, vector<8x32xf32> -> vector<8x32xf32>
    %c14 = arith.constant 14 : index
    %c0_131 = arith.constant 0 : index
    %365 = vector.load %arg7[%c14, %c0_131] : memref<32x128xf32, #tpu.memory_space<vmem>>, vector<1x32xf32>
    %366 = vector.broadcast %365 : vector<1x32xf32> to vector<8x32xf32>
    %367 = arith.addf %364, %366 : vector<8x32xf32>
    %368 = arith.addf %204, %3 : vector<64x32xf32>
    %369 = arith.truncf %368 : vector<64x32xf32> to vector<64x32xbf16>
    %c8_132 = arith.constant 8 : index
    %c0_133 = arith.constant 0 : index
    %c0_134 = arith.constant 0 : index
    %370 = vector.load %arg4[%c8_132, %c0_133, %c0_134] : memref<16x32x128xbf16, #tpu.memory_space<vmem>>, vector<1x32x32xbf16>
    %371 = vector.shape_cast %370 : vector<1x32x32xbf16> to vector<32x32xbf16>
    %cst_135 = arith.constant dense<0.000000e+00> : vector<64x32xf32>
    %372 = tpu.matmul %369, %371, %cst_135 {dimension_numbers = #tpu.dot_dimension_numbers<[1], [0], [0], [1], [0, 0, 1, 1], [], []>} : vector<64x32xbf16>, vector<32x32xbf16>, vector<64x32xf32> -> vector<64x32xf32>
    %c15 = arith.constant 15 : index
    %c0_136 = arith.constant 0 : index
    %373 = vector.load %arg7[%c15, %c0_136] : memref<32x128xf32, #tpu.memory_space<vmem>>, vector<1x32xf32>
    %374 = vector.broadcast %373 : vector<1x32xf32> to vector<64x32xf32>
    %375 = arith.addf %372, %374 : vector<64x32xf32>
    %376 = arith.truncf %204 : vector<64x32xf32> to vector<64x32xbf16>
    %c9_137 = arith.constant 9 : index
    %c0_138 = arith.constant 0 : index
    %c0_139 = arith.constant 0 : index
    %377 = vector.load %arg4[%c9_137, %c0_138, %c0_139] : memref<16x32x128xbf16, #tpu.memory_space<vmem>>, vector<1x32x32xbf16>
    %378 = vector.shape_cast %377 : vector<1x32x32xbf16> to vector<32x32xbf16>
    %cst_140 = arith.constant dense<0.000000e+00> : vector<64x32xf32>
    %379 = tpu.matmul %376, %378, %cst_140 {dimension_numbers = #tpu.dot_dimension_numbers<[1], [0], [0], [1], [0, 0, 1, 1], [], []>} : vector<64x32xbf16>, vector<32x32xbf16>, vector<64x32xf32> -> vector<64x32xf32>
    %c16 = arith.constant 16 : index
    %c0_141 = arith.constant 0 : index
    %380 = vector.load %arg7[%c16, %c0_141] : memref<32x128xf32, #tpu.memory_space<vmem>>, vector<1x32xf32>
    %381 = vector.broadcast %380 : vector<1x32xf32> to vector<64x32xf32>
    %382 = arith.addf %379, %381 : vector<64x32xf32>
    %cst_142 = arith.constant 0.353553385 : f32
    %383 = vector.broadcast %cst_142 : f32 to vector<8x32xf32>
    %384 = arith.mulf %367, %383 : vector<8x32xf32>
    %385 = arith.truncf %384 : vector<8x32xf32> to vector<8x32xbf16>
    %386 = arith.truncf %375 : vector<64x32xf32> to vector<64x32xbf16>
    %387 = arith.truncf %382 : vector<64x32xf32> to vector<64x32xbf16>
    %cst_143 = arith.constant 0.000000e+00 : f32
    %388 = vector.broadcast %cst_143 : f32 to vector<8x32xf32>
    %c0_i32_144 = arith.constant 0 : i32
    %389 = vector.broadcast %c0_i32_144 : i32 to vector<1x32xi32>
    %390 = arith.cmpi sge, %0, %389 : vector<1x32xi32>
    %c8_i32_145 = arith.constant 8 : i32
    %391 = vector.broadcast %c8_i32_145 : i32 to vector<1x32xi32>
    %392 = arith.cmpi slt, %0, %391 : vector<1x32xi32>
    %393 = arith.andi %390, %392 : vector<1x32xi1>
    %cst_146 = arith.constant 0.000000e+00 : bf16
    %394 = vector.broadcast %cst_146 : bf16 to vector<8x32xbf16>
    %395 = vector.shape_cast %393 : vector<1x32xi1> to vector<1x32xi1>
    %396 = vector.broadcast %395 : vector<1x32xi1> to vector<8x32xi1>
    %397 = arith.select %396, %385, %394 : vector<8x32xi1>, vector<8x32xbf16>
    %cst_147 = arith.constant 0.000000e+00 : bf16
    %398 = vector.broadcast %cst_147 : bf16 to vector<64x32xbf16>
    %399 = vector.shape_cast %393 : vector<1x32xi1> to vector<1x32xi1>
    %400 = vector.broadcast %399 : vector<1x32xi1> to vector<64x32xi1>
    %401 = arith.select %400, %387, %398 : vector<64x32xi1>, vector<64x32xbf16>
    %cst_148 = arith.constant dense<0.000000e+00> : vector<8x64xf32>
    %402 = tpu.matmul %397, %386, %cst_148 {dimension_numbers = #tpu.dot_dimension_numbers<[1], [1], [0], [0], [0, 0, 1, 0], [], []>} : vector<8x32xbf16>, vector<64x32xbf16>, vector<8x64xf32> -> vector<8x64xf32>
    %cst_149 = arith.constant dense<0xFF800000> : vector<8xf32>
    %403 = vector.multi_reduction <maximumf>, %402, %cst_149 [1] : vector<8x64xf32> to vector<8xf32>
    %404 = vector.shape_cast %403 : vector<8xf32> to vector<8x1xf32>
    %405 = vector.broadcast %404 : vector<8x1xf32> to vector<8x64xf32>
    %406 = arith.subf %402, %405 : vector<8x64xf32>
    %407 = math.exp %406 : vector<8x64xf32>
    %cst_150 = arith.constant dense<0.000000e+00> : vector<8xf32>
    %408 = vector.multi_reduction <add>, %407, %cst_150 [1] : vector<8x64xf32> to vector<8xf32>
    %409 = vector.shape_cast %408 : vector<8xf32> to vector<8x1xf32>
    %410 = tpu.reciprocal %409 {approx = true} : vector<8x1xf32> -> vector<8x1xf32>
    %411 = arith.truncf %407 : vector<8x64xf32> to vector<8x64xbf16>
    %cst_151 = arith.constant dense<0.000000e+00> : vector<8x32xf32>
    %412 = tpu.matmul %411, %401, %cst_151 {dimension_numbers = #tpu.dot_dimension_numbers<[1], [0], [0], [1], [0, 0, 1, 1], [], []>} : vector<8x64xbf16>, vector<64x32xbf16>, vector<8x32xf32> -> vector<8x32xf32>
    %413 = vector.broadcast %410 : vector<8x1xf32> to vector<8x32xf32>
    %414 = arith.mulf %412, %413 : vector<8x32xf32>
    %415 = arith.addf %388, %414 : vector<8x32xf32>
    %c8_i32_152 = arith.constant 8 : i32
    %416 = vector.broadcast %c8_i32_152 : i32 to vector<1x32xi32>
    %417 = arith.cmpi sge, %0, %416 : vector<1x32xi32>
    %c16_i32_153 = arith.constant 16 : i32
    %418 = vector.broadcast %c16_i32_153 : i32 to vector<1x32xi32>
    %419 = arith.cmpi slt, %0, %418 : vector<1x32xi32>
    %420 = arith.andi %417, %419 : vector<1x32xi1>
    %cst_154 = arith.constant 0.000000e+00 : bf16
    %421 = vector.broadcast %cst_154 : bf16 to vector<8x32xbf16>
    %422 = vector.shape_cast %420 : vector<1x32xi1> to vector<1x32xi1>
    %423 = vector.broadcast %422 : vector<1x32xi1> to vector<8x32xi1>
    %424 = arith.select %423, %385, %421 : vector<8x32xi1>, vector<8x32xbf16>
    %cst_155 = arith.constant 0.000000e+00 : bf16
    %425 = vector.broadcast %cst_155 : bf16 to vector<64x32xbf16>
    %426 = vector.shape_cast %420 : vector<1x32xi1> to vector<1x32xi1>
    %427 = vector.broadcast %426 : vector<1x32xi1> to vector<64x32xi1>
    %428 = arith.select %427, %387, %425 : vector<64x32xi1>, vector<64x32xbf16>
    %cst_156 = arith.constant dense<0.000000e+00> : vector<8x64xf32>
    %429 = tpu.matmul %424, %386, %cst_156 {dimension_numbers = #tpu.dot_dimension_numbers<[1], [1], [0], [0], [0, 0, 1, 0], [], []>} : vector<8x32xbf16>, vector<64x32xbf16>, vector<8x64xf32> -> vector<8x64xf32>
    %cst_157 = arith.constant dense<0xFF800000> : vector<8xf32>
    %430 = vector.multi_reduction <maximumf>, %429, %cst_157 [1] : vector<8x64xf32> to vector<8xf32>
    %431 = vector.shape_cast %430 : vector<8xf32> to vector<8x1xf32>
    %432 = vector.broadcast %431 : vector<8x1xf32> to vector<8x64xf32>
    %433 = arith.subf %429, %432 : vector<8x64xf32>
    %434 = math.exp %433 : vector<8x64xf32>
    %cst_158 = arith.constant dense<0.000000e+00> : vector<8xf32>
    %435 = vector.multi_reduction <add>, %434, %cst_158 [1] : vector<8x64xf32> to vector<8xf32>
    %436 = vector.shape_cast %435 : vector<8xf32> to vector<8x1xf32>
    %437 = tpu.reciprocal %436 {approx = true} : vector<8x1xf32> -> vector<8x1xf32>
    %438 = arith.truncf %434 : vector<8x64xf32> to vector<8x64xbf16>
    %cst_159 = arith.constant dense<0.000000e+00> : vector<8x32xf32>
    %439 = tpu.matmul %438, %428, %cst_159 {dimension_numbers = #tpu.dot_dimension_numbers<[1], [0], [0], [1], [0, 0, 1, 1], [], []>} : vector<8x64xbf16>, vector<64x32xbf16>, vector<8x32xf32> -> vector<8x32xf32>
    %440 = vector.broadcast %437 : vector<8x1xf32> to vector<8x32xf32>
    %441 = arith.mulf %439, %440 : vector<8x32xf32>
    %442 = arith.addf %415, %441 : vector<8x32xf32>
    %c16_i32_160 = arith.constant 16 : i32
    %443 = vector.broadcast %c16_i32_160 : i32 to vector<1x32xi32>
    %444 = arith.cmpi sge, %0, %443 : vector<1x32xi32>
    %c24_i32_161 = arith.constant 24 : i32
    %445 = vector.broadcast %c24_i32_161 : i32 to vector<1x32xi32>
    %446 = arith.cmpi slt, %0, %445 : vector<1x32xi32>
    %447 = arith.andi %444, %446 : vector<1x32xi1>
    %cst_162 = arith.constant 0.000000e+00 : bf16
    %448 = vector.broadcast %cst_162 : bf16 to vector<8x32xbf16>
    %449 = vector.shape_cast %447 : vector<1x32xi1> to vector<1x32xi1>
    %450 = vector.broadcast %449 : vector<1x32xi1> to vector<8x32xi1>
    %451 = arith.select %450, %385, %448 : vector<8x32xi1>, vector<8x32xbf16>
    %cst_163 = arith.constant 0.000000e+00 : bf16
    %452 = vector.broadcast %cst_163 : bf16 to vector<64x32xbf16>
    %453 = vector.shape_cast %447 : vector<1x32xi1> to vector<1x32xi1>
    %454 = vector.broadcast %453 : vector<1x32xi1> to vector<64x32xi1>
    %455 = arith.select %454, %387, %452 : vector<64x32xi1>, vector<64x32xbf16>
    %cst_164 = arith.constant dense<0.000000e+00> : vector<8x64xf32>
    %456 = tpu.matmul %451, %386, %cst_164 {dimension_numbers = #tpu.dot_dimension_numbers<[1], [1], [0], [0], [0, 0, 1, 0], [], []>} : vector<8x32xbf16>, vector<64x32xbf16>, vector<8x64xf32> -> vector<8x64xf32>
    %cst_165 = arith.constant dense<0xFF800000> : vector<8xf32>
    %457 = vector.multi_reduction <maximumf>, %456, %cst_165 [1] : vector<8x64xf32> to vector<8xf32>
    %458 = vector.shape_cast %457 : vector<8xf32> to vector<8x1xf32>
    %459 = vector.broadcast %458 : vector<8x1xf32> to vector<8x64xf32>
    %460 = arith.subf %456, %459 : vector<8x64xf32>
    %461 = math.exp %460 : vector<8x64xf32>
    %cst_166 = arith.constant dense<0.000000e+00> : vector<8xf32>
    %462 = vector.multi_reduction <add>, %461, %cst_166 [1] : vector<8x64xf32> to vector<8xf32>
    %463 = vector.shape_cast %462 : vector<8xf32> to vector<8x1xf32>
    %464 = tpu.reciprocal %463 {approx = true} : vector<8x1xf32> -> vector<8x1xf32>
    %465 = arith.truncf %461 : vector<8x64xf32> to vector<8x64xbf16>
    %cst_167 = arith.constant dense<0.000000e+00> : vector<8x32xf32>
    %466 = tpu.matmul %465, %455, %cst_167 {dimension_numbers = #tpu.dot_dimension_numbers<[1], [0], [0], [1], [0, 0, 1, 1], [], []>} : vector<8x64xbf16>, vector<64x32xbf16>, vector<8x32xf32> -> vector<8x32xf32>
    %467 = vector.broadcast %464 : vector<8x1xf32> to vector<8x32xf32>
    %468 = arith.mulf %466, %467 : vector<8x32xf32>
    %469 = arith.addf %442, %468 : vector<8x32xf32>
    %c24_i32_168 = arith.constant 24 : i32
    %470 = vector.broadcast %c24_i32_168 : i32 to vector<1x32xi32>
    %471 = arith.cmpi sge, %0, %470 : vector<1x32xi32>
    %c32_i32_169 = arith.constant 32 : i32
    %472 = vector.broadcast %c32_i32_169 : i32 to vector<1x32xi32>
    %473 = arith.cmpi slt, %0, %472 : vector<1x32xi32>
    %474 = arith.andi %471, %473 : vector<1x32xi1>
    %cst_170 = arith.constant 0.000000e+00 : bf16
    %475 = vector.broadcast %cst_170 : bf16 to vector<8x32xbf16>
    %476 = vector.shape_cast %474 : vector<1x32xi1> to vector<1x32xi1>
    %477 = vector.broadcast %476 : vector<1x32xi1> to vector<8x32xi1>
    %478 = arith.select %477, %385, %475 : vector<8x32xi1>, vector<8x32xbf16>
    %cst_171 = arith.constant 0.000000e+00 : bf16
    %479 = vector.broadcast %cst_171 : bf16 to vector<64x32xbf16>
    %480 = vector.shape_cast %474 : vector<1x32xi1> to vector<1x32xi1>
    %481 = vector.broadcast %480 : vector<1x32xi1> to vector<64x32xi1>
    %482 = arith.select %481, %387, %479 : vector<64x32xi1>, vector<64x32xbf16>
    %cst_172 = arith.constant dense<0.000000e+00> : vector<8x64xf32>
    %483 = tpu.matmul %478, %386, %cst_172 {dimension_numbers = #tpu.dot_dimension_numbers<[1], [1], [0], [0], [0, 0, 1, 0], [], []>} : vector<8x32xbf16>, vector<64x32xbf16>, vector<8x64xf32> -> vector<8x64xf32>
    %cst_173 = arith.constant dense<0xFF800000> : vector<8xf32>
    %484 = vector.multi_reduction <maximumf>, %483, %cst_173 [1] : vector<8x64xf32> to vector<8xf32>
    %485 = vector.shape_cast %484 : vector<8xf32> to vector<8x1xf32>
    %486 = vector.broadcast %485 : vector<8x1xf32> to vector<8x64xf32>
    %487 = arith.subf %483, %486 : vector<8x64xf32>
    %488 = math.exp %487 : vector<8x64xf32>
    %cst_174 = arith.constant dense<0.000000e+00> : vector<8xf32>
    %489 = vector.multi_reduction <add>, %488, %cst_174 [1] : vector<8x64xf32> to vector<8xf32>
    %490 = vector.shape_cast %489 : vector<8xf32> to vector<8x1xf32>
    %491 = tpu.reciprocal %490 {approx = true} : vector<8x1xf32> -> vector<8x1xf32>
    %492 = arith.truncf %488 : vector<8x64xf32> to vector<8x64xbf16>
    %cst_175 = arith.constant dense<0.000000e+00> : vector<8x32xf32>
    %493 = tpu.matmul %492, %482, %cst_175 {dimension_numbers = #tpu.dot_dimension_numbers<[1], [0], [0], [1], [0, 0, 1, 1], [], []>} : vector<8x64xbf16>, vector<64x32xbf16>, vector<8x32xf32> -> vector<8x32xf32>
    %494 = vector.broadcast %491 : vector<8x1xf32> to vector<8x32xf32>
    %495 = arith.mulf %493, %494 : vector<8x32xf32>
    %496 = arith.addf %469, %495 : vector<8x32xf32>
    %497 = arith.truncf %496 : vector<8x32xf32> to vector<8x32xbf16>
    %c10_176 = arith.constant 10 : index
    %c0_177 = arith.constant 0 : index
    %c0_178 = arith.constant 0 : index
    %498 = vector.load %arg4[%c10_176, %c0_177, %c0_178] : memref<16x32x128xbf16, #tpu.memory_space<vmem>>, vector<1x32x32xbf16>
    %499 = vector.shape_cast %498 : vector<1x32x32xbf16> to vector<32x32xbf16>
    %cst_179 = arith.constant dense<0.000000e+00> : vector<8x32xf32>
    %500 = tpu.matmul %497, %499, %cst_179 {dimension_numbers = #tpu.dot_dimension_numbers<[1], [0], [0], [1], [0, 0, 1, 1], [], []>} : vector<8x32xbf16>, vector<32x32xbf16>, vector<8x32xf32> -> vector<8x32xf32>
    %c17 = arith.constant 17 : index
    %c0_180 = arith.constant 0 : index
    %501 = vector.load %arg7[%c17, %c0_180] : memref<32x128xf32, #tpu.memory_space<vmem>>, vector<1x32xf32>
    %502 = vector.broadcast %501 : vector<1x32xf32> to vector<8x32xf32>
    %503 = arith.addf %500, %502 : vector<8x32xf32>
    %504 = arith.addf %359, %503 : vector<8x32xf32>
    %cst_181 = arith.constant dense<0.000000e+00> : vector<8xf32>
    %505 = vector.multi_reduction <add>, %504, %cst_181 [1] : vector<8x32xf32> to vector<8xf32>
    %506 = vector.shape_cast %505 : vector<8xf32> to vector<8x1xf32>
    %cst_182 = arith.constant 3.200000e+01 : f32
    %507 = vector.broadcast %cst_182 : f32 to vector<8x1xf32>
    %508 = arith.divf %506, %507 : vector<8x1xf32>
    %509 = vector.broadcast %508 : vector<8x1xf32> to vector<8x32xf32>
    %510 = arith.subf %504, %509 : vector<8x32xf32>
    %511 = arith.mulf %510, %510 : vector<8x32xf32>
    %cst_183 = arith.constant dense<0.000000e+00> : vector<8xf32>
    %512 = vector.multi_reduction <add>, %511, %cst_183 [1] : vector<8x32xf32> to vector<8xf32>
    %513 = vector.shape_cast %512 : vector<8xf32> to vector<8x1xf32>
    %cst_184 = arith.constant 3.200000e+01 : f32
    %514 = vector.broadcast %cst_184 : f32 to vector<8x1xf32>
    %515 = arith.divf %513, %514 : vector<8x1xf32>
    %cst_185 = arith.constant 9.99999974E-6 : f32
    %516 = vector.broadcast %cst_185 : f32 to vector<8x1xf32>
    %517 = arith.addf %515, %516 : vector<8x1xf32>
    %518 = math.rsqrt %517 : vector<8x1xf32>
    %519 = vector.broadcast %518 : vector<8x1xf32> to vector<8x32xf32>
    %520 = arith.mulf %510, %519 : vector<8x32xf32>
    %c18 = arith.constant 18 : index
    %c0_186 = arith.constant 0 : index
    %521 = vector.load %arg7[%c18, %c0_186] : memref<32x128xf32, #tpu.memory_space<vmem>>, vector<1x32xf32>
    %522 = vector.broadcast %521 : vector<1x32xf32> to vector<8x32xf32>
    %523 = arith.mulf %520, %522 : vector<8x32xf32>
    %c19 = arith.constant 19 : index
    %c0_187 = arith.constant 0 : index
    %524 = vector.load %arg7[%c19, %c0_187] : memref<32x128xf32, #tpu.memory_space<vmem>>, vector<1x32xf32>
    %525 = vector.broadcast %524 : vector<1x32xf32> to vector<8x32xf32>
    %526 = arith.addf %523, %525 : vector<8x32xf32>
    %527 = arith.truncf %526 : vector<8x32xf32> to vector<8x32xbf16>
    %c11_188 = arith.constant 11 : index
    %c0_189 = arith.constant 0 : index
    %c0_190 = arith.constant 0 : index
    %528 = vector.load %arg4[%c11_188, %c0_189, %c0_190] : memref<16x32x128xbf16, #tpu.memory_space<vmem>>, vector<1x32x64xbf16>
    %529 = vector.shape_cast %528 : vector<1x32x64xbf16> to vector<32x64xbf16>
    %cst_191 = arith.constant dense<0.000000e+00> : vector<8x64xf32>
    %530 = tpu.matmul %527, %529, %cst_191 {dimension_numbers = #tpu.dot_dimension_numbers<[1], [0], [0], [1], [0, 0, 1, 1], [], []>} : vector<8x32xbf16>, vector<32x64xbf16>, vector<8x64xf32> -> vector<8x64xf32>
    %c20 = arith.constant 20 : index
    %c0_192 = arith.constant 0 : index
    %531 = vector.load %arg7[%c20, %c0_192] : memref<32x128xf32, #tpu.memory_space<vmem>>, vector<1x64xf32>
    %532 = vector.broadcast %531 : vector<1x64xf32> to vector<8x64xf32>
    %533 = arith.addf %530, %532 : vector<8x64xf32>
    %cst_193 = arith.constant 0.000000e+00 : f32
    %534 = vector.broadcast %cst_193 : f32 to vector<8x64xf32>
    %535 = arith.maximumf %533, %534 : vector<8x64xf32>
    %536 = arith.truncf %535 : vector<8x64xf32> to vector<8x64xbf16>
    %c1_194 = arith.constant 1 : index
    %c0_195 = arith.constant 0 : index
    %c0_196 = arith.constant 0 : index
    %537 = vector.load %arg5[%c1_194, %c0_195, %c0_196] : memref<2x64x32xbf16, #tpu.memory_space<vmem>>, vector<1x64x32xbf16>
    %538 = vector.shape_cast %537 : vector<1x64x32xbf16> to vector<64x32xbf16>
    %cst_197 = arith.constant dense<0.000000e+00> : vector<8x32xf32>
    %539 = tpu.matmul %536, %538, %cst_197 {dimension_numbers = #tpu.dot_dimension_numbers<[1], [0], [0], [1], [0, 0, 1, 1], [], []>} : vector<8x64xbf16>, vector<64x32xbf16>, vector<8x32xf32> -> vector<8x32xf32>
    %c21 = arith.constant 21 : index
    %c0_198 = arith.constant 0 : index
    %540 = vector.load %arg7[%c21, %c0_198] : memref<32x128xf32, #tpu.memory_space<vmem>>, vector<1x32xf32>
    %541 = vector.broadcast %540 : vector<1x32xf32> to vector<8x32xf32>
    %542 = arith.addf %539, %541 : vector<8x32xf32>
    %543 = arith.addf %526, %542 : vector<8x32xf32>
    %cst_199 = arith.constant dense<0.000000e+00> : vector<8xf32>
    %544 = vector.multi_reduction <add>, %543, %cst_199 [1] : vector<8x32xf32> to vector<8xf32>
    %545 = vector.shape_cast %544 : vector<8xf32> to vector<8x1xf32>
    %cst_200 = arith.constant 3.200000e+01 : f32
    %546 = vector.broadcast %cst_200 : f32 to vector<8x1xf32>
    %547 = arith.divf %545, %546 : vector<8x1xf32>
    %548 = vector.broadcast %547 : vector<8x1xf32> to vector<8x32xf32>
    %549 = arith.subf %543, %548 : vector<8x32xf32>
    %550 = arith.mulf %549, %549 : vector<8x32xf32>
    %cst_201 = arith.constant dense<0.000000e+00> : vector<8xf32>
    %551 = vector.multi_reduction <add>, %550, %cst_201 [1] : vector<8x32xf32> to vector<8xf32>
    %552 = vector.shape_cast %551 : vector<8xf32> to vector<8x1xf32>
    %cst_202 = arith.constant 3.200000e+01 : f32
    %553 = vector.broadcast %cst_202 : f32 to vector<8x1xf32>
    %554 = arith.divf %552, %553 : vector<8x1xf32>
    %cst_203 = arith.constant 9.99999974E-6 : f32
    %555 = vector.broadcast %cst_203 : f32 to vector<8x1xf32>
    %556 = arith.addf %554, %555 : vector<8x1xf32>
    %557 = math.rsqrt %556 : vector<8x1xf32>
    %558 = vector.broadcast %557 : vector<8x1xf32> to vector<8x32xf32>
    %559 = arith.mulf %549, %558 : vector<8x32xf32>
    %c22 = arith.constant 22 : index
    %c0_204 = arith.constant 0 : index
    %560 = vector.load %arg7[%c22, %c0_204] : memref<32x128xf32, #tpu.memory_space<vmem>>, vector<1x32xf32>
    %561 = vector.broadcast %560 : vector<1x32xf32> to vector<8x32xf32>
    %562 = arith.mulf %559, %561 : vector<8x32xf32>
    %c23 = arith.constant 23 : index
    %c0_205 = arith.constant 0 : index
    %563 = vector.load %arg7[%c23, %c0_205] : memref<32x128xf32, #tpu.memory_space<vmem>>, vector<1x32xf32>
    %564 = vector.broadcast %563 : vector<1x32xf32> to vector<8x32xf32>
    %565 = arith.addf %562, %564 : vector<8x32xf32>
    %cst_206 = arith.constant dense<0.000000e+00> : vector<8xf32>
    %566 = vector.multi_reduction <add>, %565, %cst_206 [1] : vector<8x32xf32> to vector<8xf32>
    %567 = vector.shape_cast %566 : vector<8xf32> to vector<8x1xf32>
    %cst_207 = arith.constant 3.200000e+01 : f32
    %568 = vector.broadcast %cst_207 : f32 to vector<8x1xf32>
    %569 = arith.divf %567, %568 : vector<8x1xf32>
    %570 = vector.broadcast %569 : vector<8x1xf32> to vector<8x32xf32>
    %571 = arith.subf %565, %570 : vector<8x32xf32>
    %572 = arith.mulf %571, %571 : vector<8x32xf32>
    %cst_208 = arith.constant dense<0.000000e+00> : vector<8xf32>
    %573 = vector.multi_reduction <add>, %572, %cst_208 [1] : vector<8x32xf32> to vector<8xf32>
    %574 = vector.shape_cast %573 : vector<8xf32> to vector<8x1xf32>
    %cst_209 = arith.constant 3.200000e+01 : f32
    %575 = vector.broadcast %cst_209 : f32 to vector<8x1xf32>
    %576 = arith.divf %574, %575 : vector<8x1xf32>
    %cst_210 = arith.constant 9.99999974E-6 : f32
    %577 = vector.broadcast %cst_210 : f32 to vector<8x1xf32>
    %578 = arith.addf %576, %577 : vector<8x1xf32>
    %579 = math.rsqrt %578 : vector<8x1xf32>
    %580 = vector.broadcast %579 : vector<8x1xf32> to vector<8x32xf32>
    %581 = arith.mulf %571, %580 : vector<8x32xf32>
    %c24 = arith.constant 24 : index
    %c0_211 = arith.constant 0 : index
    %582 = vector.load %arg7[%c24, %c0_211] : memref<32x128xf32, #tpu.memory_space<vmem>>, vector<1x32xf32>
    %583 = vector.broadcast %582 : vector<1x32xf32> to vector<8x32xf32>
    %584 = arith.mulf %581, %583 : vector<8x32xf32>
    %c25 = arith.constant 25 : index
    %c0_212 = arith.constant 0 : index
    %585 = vector.load %arg7[%c25, %c0_212] : memref<32x128xf32, #tpu.memory_space<vmem>>, vector<1x32xf32>
    %586 = vector.broadcast %585 : vector<1x32xf32> to vector<8x32xf32>
    %587 = arith.addf %584, %586 : vector<8x32xf32>
    %588 = arith.truncf %587 : vector<8x32xf32> to vector<8x32xbf16>
    %c12_213 = arith.constant 12 : index
    %c0_214 = arith.constant 0 : index
    %c0_215 = arith.constant 0 : index
    %589 = vector.load %arg4[%c12_213, %c0_214, %c0_215] : memref<16x32x128xbf16, #tpu.memory_space<vmem>>, vector<1x32x128xbf16>
    %590 = vector.shape_cast %589 : vector<1x32x128xbf16> to vector<32x128xbf16>
    %cst_216 = arith.constant dense<0.000000e+00> : vector<8x128xf32>
    %591 = tpu.matmul %588, %590, %cst_216 {dimension_numbers = #tpu.dot_dimension_numbers<[1], [0], [0], [1], [0, 0, 1, 1], [], []>} : vector<8x32xbf16>, vector<32x128xbf16>, vector<8x128xf32> -> vector<8x128xf32>
    %c26 = arith.constant 26 : index
    %c0_217 = arith.constant 0 : index
    %592 = vector.load %arg7[%c26, %c0_217] : memref<32x128xf32, #tpu.memory_space<vmem>>, vector<1x128xf32>
    %593 = vector.broadcast %592 : vector<1x128xf32> to vector<8x128xf32>
    %594 = arith.addf %591, %593 : vector<8x128xf32>
    %c0_218 = arith.constant 0 : index
    %c0_219 = arith.constant 0 : index
    %c0_220 = arith.constant 0 : index
    %595 = vector.load %arg8[%c0_218, %c0_219, %c0_220] : memref<1x8x128xf32, #tpu.memory_space<vmem>>, vector<1x8x128xf32>
    %596 = vector.shape_cast %595 : vector<1x8x128xf32> to vector<8x128xf32>
    %597 = vector.shape_cast %594 : vector<8x128xf32> to vector<1x8x128xf32>
    tpu.vector_store %arg8[%c0_218, %c0_219, %c0_220], %597 {strides = array<i32>} : memref<1x8x128xf32, #tpu.memory_space<vmem>>, vector<1x8x128xf32>,
    %598 = arith.truncf %587 : vector<8x32xf32> to vector<8x32xbf16>
    %c13_221 = arith.constant 13 : index
    %c0_222 = arith.constant 0 : index
    %c0_223 = arith.constant 0 : index
    %599 = vector.load %arg4[%c13_221, %c0_222, %c0_223] : memref<16x32x128xbf16, #tpu.memory_space<vmem>>, vector<1x32x32xbf16>
    %600 = vector.shape_cast %599 : vector<1x32x32xbf16> to vector<32x32xbf16>
    %cst_224 = arith.constant dense<0.000000e+00> : vector<8x32xf32>
    %601 = tpu.matmul %598, %600, %cst_224 {dimension_numbers = #tpu.dot_dimension_numbers<[1], [0], [0], [1], [0, 0, 1, 1], [], []>} : vector<8x32xbf16>, vector<32x32xbf16>, vector<8x32xf32> -> vector<8x32xf32>
    %c27 = arith.constant 27 : index
    %c0_225 = arith.constant 0 : index
    %602 = vector.load %arg7[%c27, %c0_225] : memref<32x128xf32, #tpu.memory_space<vmem>>, vector<1x32xf32>
    %603 = vector.broadcast %602 : vector<1x32xf32> to vector<8x32xf32>
    %604 = arith.addf %601, %603 : vector<8x32xf32>
    %cst_226 = arith.constant 0.000000e+00 : f32
    %605 = vector.broadcast %cst_226 : f32 to vector<8x32xf32>
    %606 = arith.maximumf %604, %605 : vector<8x32xf32>
    %607 = arith.truncf %606 : vector<8x32xf32> to vector<8x32xbf16>
    %c14_227 = arith.constant 14 : index
    %c0_228 = arith.constant 0 : index
    %c0_229 = arith.constant 0 : index
    %608 = vector.load %arg4[%c14_227, %c0_228, %c0_229] : memref<16x32x128xbf16, #tpu.memory_space<vmem>>, vector<1x32x32xbf16>
    %609 = vector.shape_cast %608 : vector<1x32x32xbf16> to vector<32x32xbf16>
    %cst_230 = arith.constant dense<0.000000e+00> : vector<8x32xf32>
    %610 = tpu.matmul %607, %609, %cst_230 {dimension_numbers = #tpu.dot_dimension_numbers<[1], [0], [0], [1], [0, 0, 1, 1], [], []>} : vector<8x32xbf16>, vector<32x32xbf16>, vector<8x32xf32> -> vector<8x32xf32>
    %c28 = arith.constant 28 : index
    %c0_231 = arith.constant 0 : index
    %611 = vector.load %arg7[%c28, %c0_231] : memref<32x128xf32, #tpu.memory_space<vmem>>, vector<1x32xf32>
    %612 = vector.broadcast %611 : vector<1x32xf32> to vector<8x32xf32>
    %613 = arith.addf %610, %612 : vector<8x32xf32>
    %cst_232 = arith.constant 0.000000e+00 : f32
    %614 = vector.broadcast %cst_232 : f32 to vector<8x32xf32>
    %615 = arith.maximumf %613, %614 : vector<8x32xf32>
    %616 = arith.truncf %615 : vector<8x32xf32> to vector<8x32xbf16>
    %c15_233 = arith.constant 15 : index
    %c0_234 = arith.constant 0 : index
    %c0_235 = arith.constant 0 : index
    %617 = vector.load %arg4[%c15_233, %c0_234, %c0_235] : memref<16x32x128xbf16, #tpu.memory_space<vmem>>, vector<1x32x8xbf16>
    %618 = vector.shape_cast %617 : vector<1x32x8xbf16> to vector<32x8xbf16>
    %cst_236 = arith.constant dense<0.000000e+00> : vector<8x8xf32>
    %619 = tpu.matmul %616, %618, %cst_236 {dimension_numbers = #tpu.dot_dimension_numbers<[1], [0], [0], [1], [0, 0, 1, 1], [], []>} : vector<8x32xbf16>, vector<32x8xbf16>, vector<8x8xf32> -> vector<8x8xf32>
    %c29 = arith.constant 29 : index
    %c0_237 = arith.constant 0 : index
    %620 = vector.load %arg7[%c29, %c0_237] : memref<32x128xf32, #tpu.memory_space<vmem>>, vector<1x8xf32>
    %621 = vector.broadcast %620 : vector<1x8xf32> to vector<8x8xf32>
    %622 = arith.addf %619, %621 : vector<8x8xf32>
    %cst_238 = arith.constant 5.000000e-01 : f32
    %623 = vector.broadcast %cst_238 : f32 to vector<8x8xf32>
    %624 = arith.mulf %623, %622 : vector<8x8xf32>
    %625 = math.tanh %624 : vector<8x8xf32>
    %cst_239 = arith.constant 1.000000e+00 : f32
    %626 = vector.broadcast %cst_239 : f32 to vector<8x8xf32>
    %627 = arith.addf %625, %626 : vector<8x8xf32>
    %cst_240 = arith.constant 5.000000e-01 : f32
    %628 = vector.broadcast %cst_240 : f32 to vector<8x8xf32>
    %629 = arith.mulf %628, %627 : vector<8x8xf32>
    %c0_241 = arith.constant 0 : index
    %c0_242 = arith.constant 0 : index
    %c0_243 = arith.constant 0 : index
    %630 = vector.load %arg9[%c0_241, %c0_242, %c0_243] : memref<1x8x8xf32, #tpu.memory_space<vmem>>, vector<1x8x8xf32>
    %631 = vector.shape_cast %630 : vector<1x8x8xf32> to vector<8x8xf32>
    %632 = vector.shape_cast %629 : vector<8x8xf32> to vector<1x8x8xf32>
    tpu.vector_store %arg9[%c0_241, %c0_242, %c0_243], %632 {strides = array<i32>} : memref<1x8x8xf32, #tpu.memory_space<vmem>>, vector<1x8x8xf32>,
    %633 = arith.truncf %594 : vector<8x128xf32> to vector<8x128xbf16>
    %c0_244 = arith.constant 0 : index
    %c0_245 = arith.constant 0 : index
    %634 = vector.load %arg6[%c0_244, %c0_245] : memref<128x8xbf16, #tpu.memory_space<vmem>>, vector<128x8xbf16>
    %cst_246 = arith.constant dense<0.000000e+00> : vector<8x8xf32>
    %635 = tpu.matmul %633, %634, %cst_246 {dimension_numbers = #tpu.dot_dimension_numbers<[1], [0], [0], [1], [0, 0, 1, 1], [], []>} : vector<8x128xbf16>, vector<128x8xbf16>, vector<8x8xf32> -> vector<8x8xf32>
    %c30 = arith.constant 30 : index
    %c0_247 = arith.constant 0 : index
    %636 = vector.load %arg7[%c30, %c0_247] : memref<32x128xf32, #tpu.memory_space<vmem>>, vector<1x8xf32>
    %637 = vector.broadcast %636 : vector<1x8xf32> to vector<8x8xf32>
    %638 = arith.addf %635, %637 : vector<8x8xf32>
    %c0_248 = arith.constant 0 : index
    %c0_249 = arith.constant 0 : index
    %c0_250 = arith.constant 0 : index
    %639 = vector.load %arg10[%c0_248, %c0_249, %c0_250] : memref<1x8x8xf32, #tpu.memory_space<vmem>>, vector<1x8x8xf32>
    %640 = vector.shape_cast %639 : vector<1x8x8xf32> to vector<8x8xf32>
    %641 = vector.shape_cast %638 : vector<8x8xf32> to vector<1x8x8xf32>
    tpu.vector_store %arg10[%c0_248, %c0_249, %c0_250], %641 {strides = array<i32>} : memref<1x8x8xf32, #tpu.memory_space<vmem>>, vector<1x8x8xf32>,
    return
  }
  func.func @transform_0(%arg0: i32) -> (i32, i32, i32) {
    %c0_i32 = arith.constant 0 : i32
    %c0_i32_0 = arith.constant 0 : i32
    %c0_i32_1 = arith.constant 0 : i32
    return %arg0, %c0_i32, %c0_i32_0 : i32, i32, i32
  }
  func.func @transform_1(%arg0: i32) -> (i32, i32) {
    %c0_i32 = arith.constant 0 : i32
    %c0_i32_0 = arith.constant 0 : i32
    %c0_i32_1 = arith.constant 0 : i32
    return %c0_i32, %c0_i32_0 : i32, i32
  }
  func.func @transform_2(%arg0: i32) -> (i32, i32) {
    %c0_i32 = arith.constant 0 : i32
    %c0_i32_0 = arith.constant 0 : i32
    %c0_i32_1 = arith.constant 0 : i32
    return %c0_i32, %c0_i32_0 : i32, i32
  }
  func.func @transform_3(%arg0: i32) -> (i32, i32, i32) {
    %c0_i32 = arith.constant 0 : i32
    %c0_i32_0 = arith.constant 0 : i32
    %c0_i32_1 = arith.constant 0 : i32
    %c0_i32_2 = arith.constant 0 : i32
    return %c0_i32, %c0_i32_0, %c0_i32_1 : i32, i32, i32
  }
  func.func @transform_4(%arg0: i32) -> (i32, i32, i32) {
    %c0_i32 = arith.constant 0 : i32
    %c0_i32_0 = arith.constant 0 : i32
    %c0_i32_1 = arith.constant 0 : i32
    %c0_i32_2 = arith.constant 0 : i32
    return %c0_i32, %c0_i32_0, %c0_i32_1 : i32, i32, i32
  }
  func.func @transform_5(%arg0: i32) -> (i32, i32) {
    %c0_i32 = arith.constant 0 : i32
    %c0_i32_0 = arith.constant 0 : i32
    %c0_i32_1 = arith.constant 0 : i32
    return %c0_i32, %c0_i32_0 : i32, i32
  }
  func.func @transform_6(%arg0: i32) -> (i32, i32) {
    %c0_i32 = arith.constant 0 : i32
    %c0_i32_0 = arith.constant 0 : i32
    %c0_i32_1 = arith.constant 0 : i32
    return %c0_i32, %c0_i32_0 : i32, i32
  }
  func.func @transform_7(%arg0: i32) -> (i32, i32, i32) {
    %c0_i32 = arith.constant 0 : i32
    %c0_i32_0 = arith.constant 0 : i32
    %c0_i32_1 = arith.constant 0 : i32
    return %arg0, %c0_i32, %c0_i32_0 : i32, i32, i32
  }
  func.func @transform_8(%arg0: i32) -> (i32, i32, i32) {
    %c0_i32 = arith.constant 0 : i32
    %c0_i32_0 = arith.constant 0 : i32
    %c0_i32_1 = arith.constant 0 : i32
    return %arg0, %c0_i32, %c0_i32_0 : i32, i32, i32
  }
  func.func @transform_9(%arg0: i32) -> (i32, i32, i32) {
    %c0_i32 = arith.constant 0 : i32
    %c0_i32_0 = arith.constant 0 : i32
    %c0_i32_1 = arith.constant 0 : i32
    return %arg0, %c0_i32, %c0_i32_0 : i32, i32, i32
  }
}

</mosaic_0001>

<bundles_post_ra>
// kernel: detr_forward.2
= control target key start
LH: loop header
LB: loop body
LE: loop exit
PB: predicated region body
PF: predicated region fallthrough
CT: control target
= control target key end

     0   :  { %s2334_s12 = smov 0   ;;  %s2770_s0 = inlined_call_operand.vmem [shape: f32[2,256,32], index: 0, kind: input, shape index: {}]   ;;  %s2771_s1 = inlined_call_operand.vmem [shape: bf16[352,32], index: 1, kind: input, shape index: {}]   ;;  %s2772_s2 = inlined_call_operand.vmem [shape: f32[8,32], index: 2, kind: input, shape index: {}]   ;;  %s2773_s3 = inlined_call_operand.vmem [shape: f32[2,64,32], index: 3, kind: output, shape index: {}]  }
   0x1 LB: > { %s1882_s13 = sadd.s32 4294967295, %s2311_s12   ;;  %p1886_p0 = scmp.ge.s32.totalorder %s2311_s12, 1  ;;  %s2311_s12 = sphi %s2334_s12, %s13_s12  }
   0x2   : > { %p137_p1 = scmp.lt.s32.totalorder %s2311_s12, 3 }
   0x4   : > { %p138_p2 = pnand %p1886_p0, %p137_p1 }
   0x5   : > { %v2283_v0 = vld [vmem:[%s2771_s1] sm:$0xff] (!%p138_p2)   ;;  %p161_p3 = scmp.lt.s32.totalorder (!%p138_p2), %s1882_s13, 1  ;;  %v2284_v1 = vld [vmem:[%s2771_s1 + $0x8] sm:$0xff] (!%p138_p2)   ;;  %vm241_vm0 = vcmask (!%p138_p2), 261120   ;;  %v2287_v52 = vld [vmem:[%s2771_s1 + $0x30] sm:$0xff] (!%p138_p2)   ;;  %vm494_vm1 = vcmask (!%p138_p2), 1040384  }
   0x6   : > { %141 = sbr.rel (%p138_p2) target bundleno = 835 (0x343), region = 32  ;;  %2054 = vmatprep.subr.bf16.mxu0 (!%p138_p2), %v2283_v0  ;;  %v2285_v50 = vld [vmem:[%s2771_s1 + $0x20] sm:$0xff] (!%p138_p2)   ;;  %v2286_v51 = vld [vmem:[%s2771_s1 + $0x28] sm:$0xff] (!%p138_p2)   ;;  %2114 = vmatprep.subr.bf16.mxu1 (!%p138_p2), %v2287_v52  ;;  %v2288_v53 = vld [vmem:[%s2771_s1 + $0x38] sm:$0xff] (!%p138_p2)  }
   0x7   : > { %2055 = vmatpush3.bf16.msra.mxu0 (!%p138_p2), %v2283_v0  ;;  %2115 = vmatpush3.bf16.msra.mxu1 (!%p138_p2), %v2287_v52  ;;  %v2419_v54 = vld [vmem:[%s2771_s1 + $0x10] sm:$0xff] (!%p138_p2)   ;;  %v2424_v55 = vld [vmem:[%s2771_s1 + $0x40] sm:$0xff] (!%p138_p2)  }
   0x8   : > { %2056 = vmatprep.subr.bf16.mxu0 (!%p138_p2), %v2284_v1  ;;  %2116 = vmatprep.subr.bf16.mxu1 (!%p138_p2), %v2288_v53  ;;  %v2431_v56 = vld [vmem:[%s2772_s2] ss:$0 sm:$0xff] (!%p138_p2) }
   0xb   : > { %2057 = vmatpush3.bf16.msra.mxu0 (!%p138_p2), %v2284_v1  ;;  %2117 = vmatpush3.bf16.msra.mxu1 (!%p138_p2), %v2288_v53 }
   0xc   : > { %2090 = vmatprep.subr.bf16.mxu0 (!%p138_p2), %v2285_v50  ;;  %2126 = vmatprep.subr.bf16.mxu1 (!%p138_p2), %v2424_v55 }
   0xd   : > { %s2791_s13 = smov (!%p161_p3, %s1882_s13), 1 }
   0xe   : > { %s1974_s18 = sshll.u32 %s2791_s13, 8  ;;  %s1975_s16 = sshll.u32 %s2791_s13, 6 }
   0xf   : > { %s2354_s21 = scalar_lea.vmem %s2770_s0, %s1974_s18 }
  0x10   : > { %v172_v2 = vld [vmem:[%s2354_s21] sm:$0xff]  ;;  %v173_v3 = vld [vmem:[%s2354_s21 + $0x8] sm:$0xff]  ;;  %v174_v4 = vld [vmem:[%s2354_s21 + $0x10] sm:$0xff] }
  0x11   : > { %v204_v5 = vpack.c.bf16 %v173_v3, %v172_v2  ;;  %v175_v6 = vld [vmem:[%s2354_s21 + $0x18] sm:$0xff]  ;;  %v176_v7 = vld [vmem:[%s2354_s21 + $0x20] sm:$0xff]  ;;  %v177_v8 = vld [vmem:[%s2354_s21 + $0x28] sm:$0xff]  ;;  %v483_v3 = vlaneseq }
  0x12   : > { %v205_v9 = vpack.c.bf16 %v175_v6, %v174_v4  ;;  %v206_v10 = vpack.c.bf16 %v177_v8, %v176_v7  ;;  %v178_v11 = vld [vmem:[%s2354_s21 + $0x30] sm:$0xff]  ;;  %v179_v12 = vld [vmem:[%s2354_s21 + $0x38] sm:$0xff]  ;;  %v180_v13 = vld [vmem:[%s2354_s21 + $0x40] sm:$0xff] }
  0x13   : > { %2058 = vmatprep.mubr.msk.bf16.mxu0 %vm241_vm0, %v204_v5  ;;  %v181_v14 = vld [vmem:[%s2354_s21 + $0x48] sm:$0xff]  ;;  %v207_v15 = vpack.c.bf16 %v179_v12, %v178_v11  ;;  %v182_v17 = vld [vmem:[%s2354_s21 + $0x50] sm:$0xff]  ;;  %v183_v18 = vld [vmem:[%s2354_s21 + $0x58] sm:$0xff]  ;;  %v2442_v11 = vshrl.u32 %v483_v3, 7 }
  0x14   : > { %2059 = vmatmul.mubr.msk.bf16.vlgmr.msra.gmra.mrb[0].mxu0 %vm241_vm0, %v205_v9  ;;  %v208_v16 = vpack.c.bf16 %v181_v14, %v180_v13  ;;  %v184_v19 = vld [vmem:[%s2354_s21 + $0x60] sm:$0xff]  ;;  %v185_v20 = vld [vmem:[%s2354_s21 + $0x68] sm:$0xff]  ;;  %v209_v21 = vpack.c.bf16 %v183_v18, %v182_v17  ;;  %v186_v23 = vld [vmem:[%s2354_s21 + $0x70] sm:$0xff] }
  0x15   : > { %2062 = vmatprep.mubr.msk.bf16.mxu0 %vm241_vm0, %v206_v10  ;;  %v210_v22 = vpack.c.bf16 %v185_v20, %v184_v19  ;;  %v187_v24 = vld [vmem:[%s2354_s21 + $0x78] sm:$0xff]  ;;  %v188_v25 = vld [vmem:[%s2354_s21 + $0x80] sm:$0xff]  ;;  %v189_v26 = vld [vmem:[%s2354_s21 + $0x88] sm:$0xff]  ;;  %2091 = vmatpush3.bf16.msra.mxu0 %v2285_v50  ;;  %v487_v19 = vadd.s32 24, %v2442_v11 }
  0x16   : > { %v211_v27 = vpack.c.bf16 %v187_v24, %v186_v23  ;;  %v212_v28 = vpack.c.bf16 %v189_v26, %v188_v25  ;;  %v190_v29 = vld [vmem:[%s2354_s21 + $0x90] sm:$0xff]  ;;  %v191_v30 = vld [vmem:[%s2354_s21 + $0x98] sm:$0xff]  ;;  %v192_v31 = vld [vmem:[%s2354_s21 + $0xa0] sm:$0xff]  ;;  %2092 = vmatprep.subr.bf16.mxu0 %v2286_v51 }
  0x17   : > { %v193_v32 = vld [vmem:[%s2354_s21 + $0xa8] sm:$0xff]  ;;  %v213_v33 = vpack.c.bf16 %v191_v30, %v190_v29  ;;  %v194_v35 = vld [vmem:[%s2354_s21 + $0xb0] sm:$0xff]  ;;  %v195_v36 = vld [vmem:[%s2354_s21 + $0xb8] sm:$0xff] }
  0x18   : > { %v214_v34 = vpack.c.bf16 %v193_v32, %v192_v31  ;;  %v196_v37 = vld [vmem:[%s2354_s21 + $0xc0] sm:$0xff]  ;;  %v197_v38 = vld [vmem:[%s2354_s21 + $0xc8] sm:$0xff]  ;;  %v215_v39 = vpack.c.bf16 %v195_v36, %v194_v35  ;;  %v198_v41 = vld [vmem:[%s2354_s21 + $0xd0] sm:$0xff]  ;;  %v485_v32 = vadd.s32 8, %v2442_v11 }
  0x19   : > { %v216_v40 = vpack.c.bf16 %v197_v38, %v196_v37  ;;  %v199_v42 = vld [vmem:[%s2354_s21 + $0xd8] sm:$0xff]  ;;  %v200_v43 = vld [vmem:[%s2354_s21 + $0xe0] sm:$0xff]  ;;  %v201_v44 = vld [vmem:[%s2354_s21 + $0xe8] sm:$0xff]  ;;  %2093 = vmatpush3.bf16.msra.mxu0 %v2286_v51 }
  0x1a   : > { %v217_v45 = vpack.c.bf16 %v199_v42, %v198_v41  ;;  %v218_v46 = vpack.c.bf16 %v201_v44, %v200_v43  ;;  %v202_v47 = vld [vmem:[%s2354_s21 + $0xf0] sm:$0xff]  ;;  %v203_v48 = vld [vmem:[%s2354_s21 + $0xf8] sm:$0xff]  ;;  %2102 = vmatprep.subr.bf16.mxu0 %v2419_v54  ;;  %v489_v41 = vadd.s32 40, %v2442_v11  ;;  %v545_v44 = vand.u32 7, %v485_v32  ;;  %s170_s21 = scalar_lea.vmem %s2773_s3, %s1975_s16 }
  0x1b   : > { %v219_v49 = vpack.c.bf16 %v203_v48, %v202_v47 }
  0x1c   : > { %2063 = vmatmul.mubr.msk.bf16.gmra.mrb[4].mxu0 %vm241_vm0, %v207_v15  ;;  %vm2492_vm5 = vcmp.eq.s32.totalorder %v545_v44, 0 }
  0x1d   : > { %2066 = vmatprep.mubr.msk.bf16.mxu0 %vm241_vm0, %v208_v16 }
  0x24   : > { %2067 = vmatmul.mubr.msk.bf16.gmra.mrb[8].mxu0 %vm241_vm0, %v209_v21 }
  0x25   : > { %2070 = vmatprep.mubr.msk.bf16.mxu0 %vm241_vm0, %v210_v22  ;;  %v486_v22 = vadd.s32 16, %v2442_v11 }
  0x27   : > { %v552_v31 = vand.u32 7, %v486_v22 }
  0x29   : > { %vm2464_vm3 = vcmp.eq.s32.totalorder %v552_v31, 0 }
  0x2c   : > { %2071 = vmatmul.mubr.msk.bf16.gmra.mrb[12].mxu0 %vm241_vm0, %v211_v27 }
  0x2d   : > { %2074 = vmatprep.mubr.msk.bf16.mxu0 %vm241_vm0, %v212_v28  ;;  %v559_v28 = vand.u32 7, %v487_v19 }
  0x2f   : > { %vm2459_vm2 = vcmp.eq.s32.totalorder %v559_v28, 0 }
  0x34   : > { %2075 = vmatmul.mubr.msk.bf16.gmra.mrb[16].mxu0 %vm241_vm0, %v213_v33  ;;  %v488_v33 = vadd.s32 32, %v2442_v11 }
  0x35   : > { %2078 = vmatprep.mubr.msk.bf16.mxu0 %vm241_vm0, %v214_v34 }
  0x3c   : > { %2079 = vmatmul.mubr.msk.bf16.gmra.mrb[20].mxu0 %vm241_vm0, %v215_v39 }
  0x3d   : > { %2082 = vmatprep.mubr.msk.bf16.mxu0 %vm241_vm0, %v216_v40 }
  0x44   : > { %2083 = vmatmul.mubr.msk.bf16.gmra.mrb[24].mxu0 %vm241_vm0, %v217_v45  ;;  %v566_v45 = vand.u32 7, %v488_v33 }
  0x45   : > { %2086 = vmatprep.mubr.msk.bf16.mxu0 %vm241_vm0, %v218_v46 }
  0x46   : > { %vm2496_vm6 = vcmp.eq.s32.totalorder %v566_v45, 0 }
  0x4c   : > { %2087 = vmatmul.mubr.msk.bf16.gmra.mrb[28].mxu0 %vm241_vm0, %v219_v49  ;;  %v491_v49 = vadd.s32 56, %v2442_v11 }
  0xe7   : > { %v2060_v57 = vpop.f32.mrb[0].mxu0 }
  0xe8   : > { %v333_v58 = vadd.f32 %v2060_v57, %v2431_v56  ;;  %v324_v59 = vpop.f32.mrb[1].mxu0  ;;  %v490_v57 = vadd.s32 48, %v2442_v11 }
  0xe9   : > { %v325_v60 = vadd.f32 %v2431_v56, %v324_v59  ;;  %v2061_v61 = vpop.f32.mrb[2].mxu0 }
  0xea   : > { %v336_v62 = vadd.f32 %v2061_v61, %v2431_v56  ;;  %v327_v63 = vpop.f32.mrb[3].mxu0  ;;  %v453_v1 = vmax.f32 %v333_v58, 0.0  ;;  %v538_v61 = vand.u32 7, %v2442_v11 }
  0xeb   : > { %v328_v0 = vadd.f32 %v2431_v56, %v327_v63  ;;  %v451_v4 = vmax.f32 %v325_v60, 0.0 }
  0xec   : > { %v454_v2 = vmax.f32 %v336_v62, 0.0  ;;  %v573_v62 = vand.u32 7, %v489_v41  ;;  %vm2488_vm4 = vcmp.eq.s32.totalorder %v538_v61, 0 }
  0xed   : > { %v452_v5 = vmax.f32 %v328_v0, 0.0 }
  0xee   : > { %v2437_v6 = vpack.c.bf16 %v454_v2, %v453_v1  ;;  %vm2500_vm7 = vcmp.eq.s32.totalorder %v573_v62, 0  ;;  %v2313_v62 = vmov 0.0  }
  0xef   : > { %v2439_v7 = vpack.c.bf16 %v452_v5, %v451_v4  ;;  %v2064_v8 = vpop.f32.mrb[4].mxu0 }
  0xf0   : > { %v349_v9 = vadd.f32 %v2064_v8, %v2431_v56  ;;  %v340_v10 = vpop.f32.mrb[5].mxu0 }
  0xf1   : > { %v341_v12 = vadd.f32 %v2431_v56, %v340_v10  ;;  %v2065_v13 = vpop.f32.mrb[6].mxu0  ;;  %v587_v10 = vand.u32 7, %v491_v49 }
  0xf2   : > { %v352_v14 = vadd.f32 %v2065_v13, %v2431_v56  ;;  %v343_v15 = vpop.f32.mrb[7].mxu0  ;;  %v457_v17 = vmax.f32 %v349_v9, 0.0 }
  0xf3   : > { %v344_v16 = vadd.f32 %v2431_v56, %v343_v15  ;;  %v455_v20 = vmax.f32 %v341_v12, 0.0  ;;  %vm2506_vm8 = vcmp.eq.s32.totalorder %v587_v10, 0 }
  0xf4   : > { %v458_v18 = vmax.f32 %v352_v14, 0.0  ;;  %v580_v14 = vand.u32 7, %v490_v57 }
  0xf5   : > { %v456_v21 = vmax.f32 %v344_v16, 0.0 }
  0xf6   : > { %v2449_v23 = vpack.c.bf16 %v458_v18, %v457_v17  ;;  %vm2513_vm9 = vcmp.eq.s32.totalorder %v580_v14, 0  ;;  %v2294_v18 = vld [vmem:[%s2771_s1 + $0x58] sm:$0xff]  }
  0xf7   : > { %v2451_v24 = vpack.c.bf16 %v456_v21, %v455_v20  ;;  %v2068_v25 = vpop.f32.mrb[8].mxu0  ;;  %v2295_v21 = vld [vmem:[%s2771_s1 + $0x60] sm:$0xff]  }
  0xf8   : > { %v365_v26 = vadd.f32 %v2068_v25, %v2431_v56  ;;  %v356_v27 = vpop.f32.mrb[9].mxu0 }
  0xf9   : > { %v357_v29 = vadd.f32 %v2431_v56, %v356_v27  ;;  %v2069_v30 = vpop.f32.mrb[10].mxu0  ;;  %v2297_v27 = vld [vmem:[%s2771_s1 + $0x70] sm:$0xff]  }
  0xfa   : > { %v461_v34 = vmax.f32 %v365_v26, 0.0  ;;  %v368_v35 = vadd.f32 %v2069_v30, %v2431_v56  ;;  %v359_v36 = vpop.f32.mrb[11].mxu0 }
  0xfb   : > { %v459_v37 = vmax.f32 %v357_v29, 0.0  ;;  %v360_v38 = vadd.f32 %v2431_v56, %v359_v36 }
  0xfc   : > { %v462_v39 = vmax.f32 %v368_v35, 0.0  ;;  %v1014_v46 = vrot.slane %v461_v34, 7 }
  0xfd   : > { %v460_v42 = vmax.f32 %v360_v38, 0.0  ;;  %v1011_v50 = vrot.slane %v459_v37, 7 }
  0xfe   : > { %v1016_v47 = vrot.slane %v462_v39, 7  ;;  %v2468_v48 = vpack.c.bf16 %v462_v39, %v461_v34 }
  0xff   : > { %v1012_v51 = vrot.slane %v460_v42, 7  ;;  %v2471_v52 = vpack.c.bf16 %v460_v42, %v459_v37  ;;  %v2072_v53 = vpop.f32.mrb[12].mxu0 }
 0x100   : > { %v1017_v58 = vsel %vm494_vm1, %v1014_v46, %v1016_v47  ;;  %v381_v59 = vadd.f32 %v2072_v53, %v2431_v56  ;;  %v372_v60 = vpop.f32.mrb[13].mxu0 }
 0x101   : > { %v1053_v63 = vsel %vm2459_vm2, 0.0, %v1017_v58  ;;  %v1013_v0 = vsel %vm494_vm1, %v1011_v50, %v1012_v51  ;;  %v1015_v1 = vsel %vm494_vm1, %v1012_v51, %v1014_v46  ;;  %v373_v2 = vadd.f32 %v2431_v56, %v372_v60  ;;  %v2073_v3 = vpop.f32.mrb[14].mxu0 }
 0x102   : > { %v1052_v4 = vsel %vm2464_vm3, 0.0, %v1015_v1  ;;  %v465_v5 = vmax.f32 %v381_v59, 0.0  ;;  %v384_v8 = vadd.f32 %v2073_v3, %v2431_v56  ;;  %v375_v9 = vpop.f32.mrb[15].mxu0  ;;  %v1051_v37 = vsel %vm2492_vm5, 0.0, %v1013_v0 }
 0x103   : > { %v2485_v11 = vpack.c.bf16 %v1053_v63, %v1052_v4  ;;  %v463_v12 = vmax.f32 %v373_v2, 0.0  ;;  %v376_v13 = vadd.f32 %v2431_v56, %v375_v9 }
 0x104   : > { %v466_v15 = vmax.f32 %v384_v8, 0.0  ;;  %v1022_v22 = vrot.slane %v465_v5, 7  ;;  %v2292_v8 = vld [vmem:[%s2771_s1 + $0x18] sm:$0xff]  }
 0x105   : > { %v1018_v19 = vrot.slane %v463_v12, 7  ;;  %v464_v20 = vmax.f32 %v376_v13, 0.0 }
 0x106   : > { %v1002_v25 = vrot.slane %v466_v15, 7  ;;  %v2504_v26 = vpack.c.bf16 %v466_v15, %v465_v5 }
 0x107   : > { %v1019_v28 = vsel %vm494_vm1, %v1016_v47, %v1018_v19  ;;  %v1020_v29 = vrot.slane %v464_v20, 7  ;;  %v2511_v30 = vpack.c.bf16 %v464_v20, %v463_v12  ;;  %v2076_v31 = vpop.f32.mrb[16].mxu0 }
 0x108   : > { %v1024_v33 = vsel %vm494_vm1, %v1022_v22, %v1002_v25  ;;  %v1033_v34 = vsel %vm494_vm1, %v1002_v25, %v1011_v50  ;;  %v397_v35 = vadd.f32 %v2076_v31, %v2431_v56  ;;  %v388_v36 = vpop.f32.mrb[17].mxu0  ;;  %v1054_v49 = vsel %vm2496_vm6, 0.0, %v1019_v28 }
 0x109   : > { %v1021_v38 = vsel %vm494_vm1, %v1018_v19, %v1020_v29  ;;  %v1023_v39 = vsel %vm494_vm1, %v1020_v29, %v1022_v22  ;;  %v389_v41 = vadd.f32 %v2431_v56, %v388_v36  ;;  %v2077_v42 = vpop.f32.mrb[18].mxu0  ;;  %v1050_v44 = vsel %vm2488_vm4, 0.0, %v1033_v34 }
 0x10a   : > { %v400_v45 = vadd.f32 %v2077_v42, %v2431_v56  ;;  %v391_v46 = vpop.f32.mrb[19].mxu0  ;;  %v2528_v47 = vpack.c.bf16 %v1051_v37, %v1050_v44  ;;  %v1055_v50 = vsel %vm2500_vm7, 0.0, %v1021_v38  ;;  %v1056_v58 = vsel %vm2513_vm9, 0.0, %v1023_v39 }
 0x10b   : > { %v467_v51 = vmax.f32 %v389_v41, 0.0  ;;  %v392_v53 = vadd.f32 %v2431_v56, %v391_v46  ;;  %v2535_v57 = vpack.c.bf16 %v1055_v50, %v1054_v49  ;;  %v469_v59 = vmax.f32 %v397_v35, 0.0 }
 0x10c   : > { %v470_v60 = vmax.f32 %v400_v45, 0.0  ;;  %v1057_v61 = vsel %vm2506_vm8, 0.0, %v1024_v33 }
 0x10d   : > { %v702_v63 = vpack.c.bf16 %v467_v51, %v2313_v62  ;;  %v468_v0 = vmax.f32 %v392_v53, 0.0  ;;  %v2542_v1 = vpack.c.bf16 %v1057_v61, %v1056_v58 }
 0x10e   : > { %v2544_v2 = vpack.c.bf16 %v470_v60, %v469_v59 }
 0x10f   : > { %v703_v3 = vpack.c.bf16 %v469_v59, %v468_v0  ;;  %v2546_v4 = vpack.c.bf16 %v468_v0, %v467_v51  ;;  %v2080_v5 = vpop.f32.mrb[20].mxu0  ;;  %2094 = vmatprep.mubr.msk.bf16.mxu0 %vm241_vm0, %v702_v63 }
 0x110   : > { %v413_v9 = vadd.f32 %v2080_v5, %v2431_v56  ;;  %v404_v10 = vpop.f32.mrb[21].mxu0 }
 0x111   : > { %v405_v12 = vadd.f32 %v2431_v56, %v404_v10  ;;  %v2081_v13 = vpop.f32.mrb[22].mxu0  ;;  %2095 = vmatmul.mubr.msk.bf16.vlgmr.msra.gmra.mrb[32].mxu0 %vm241_vm0, %v703_v3  ;;  %v2291_v3 = vld [vmem:[%s2771_s1 + $0x48] sm:$0xff]  }
 0x112   : > { %v416_v14 = vadd.f32 %v2081_v13, %v2431_v56  ;;  %v407_v15 = vpop.f32.mrb[23].mxu0  ;;  %2103 = vmatpush3.bf16.msra.mxu0 %v2419_v54  ;;  %v473_v22 = vmax.f32 %v413_v9, 0.0 }
 0x113   : > { %v471_v19 = vmax.f32 %v405_v12, 0.0  ;;  %v408_v20 = vadd.f32 %v2431_v56, %v407_v15  ;;  %2104 = vmatprep.subr.bf16.mxu0 %v2292_v8 }
 0x114   : > { %v474_v25 = vmax.f32 %v416_v14, 0.0 }
 0x115   : > { %v704_v28 = vpack.c.bf16 %v471_v19, %v470_v60  ;;  %v472_v29 = vmax.f32 %v408_v20, 0.0 }
 0x116   : > { %v2558_v31 = vpack.c.bf16 %v474_v25, %v473_v22  ;;  %2105 = vmatpush3.bf16.msra.mxu0 %v2292_v8 }
 0x117   : > { %v705_v33 = vpack.c.bf16 %v473_v22, %v472_v29  ;;  %v2560_v34 = vpack.c.bf16 %v472_v29, %v471_v19  ;;  %v2084_v35 = vpop.f32.mrb[24].mxu0  ;;  %2098 = vmatprep.mubr.msk.bf16.mxu0 %vm241_vm0, %v704_v28 }
 0x118   : > { %v429_v36 = vadd.f32 %v2084_v35, %v2431_v56  ;;  %v420_v54 = vpop.f32.mrb[25].mxu0 }
 0x119   : > { %v421_v37 = vadd.f32 %v2431_v56, %v420_v54  ;;  %v2085_v38 = vpop.f32.mrb[26].mxu0  ;;  %2099 = vmatmul.mubr.msk.bf16.gmra.mrb[36].mxu0 %vm241_vm0, %v705_v33 }
 0x11a   : > { %v2566_v39 = vmax.f32 %v429_v36, 0.0  ;;  %v432_v41 = vadd.f32 %v2085_v38, %v2431_v56  ;;  %v423_v42 = vpop.f32.mrb[27].mxu0  ;;  %v2293_v36 = vld [vmem:[%s2771_s1 + $0x50] sm:$0xff]  }
 0x11b   : > { %v2569_v44 = vmax.f32 %v421_v37, 0.0  ;;  %v424_v45 = vadd.f32 %v2431_v56, %v423_v42 }
 0x11c   : > { %v2572_v46 = vmax.f32 %v432_v41, 0.0  ;;  %v509_v51 = vrot.slane %v2566_v39, 7 }
 0x11d   : > { %v2574_v49 = vmax.f32 %v424_v45, 0.0  ;;  %v896_v50 = vpack.c.bf16 %v2569_v44, %v2313_v62  ;;  %v506_v59 = vrot.slane %v2569_v44, 7 }
 0x11e   : > { %v511_v53 = vrot.slane %v2572_v46, 7  ;;  %v1592_v58 = vpack.c.bf16 %v2572_v46, %v2566_v39 }
 0x11f   : > { %v507_v60 = vrot.slane %v2574_v49, 7  ;;  %v897_v61 = vpack.c.bf16 %v2566_v39, %v2574_v49  ;;  %v1591_v63 = vpack.c.bf16 %v2574_v49, %v2569_v44  ;;  %v2088_v0 = vpop.f32.mrb[28].mxu0  ;;  %2118 = vmatprep.mubr.msk.bf16.mxu1 %vm241_vm0, %v896_v50  ;;  %v1964_v44 = vld [vmem:[%s2772_s2 + $0x1] ss:$0 sm:$0xff] }
 0x120   : > { %v445_v5 = vadd.f32 %v2088_v0, %v2431_v56  ;;  %v436_v8 = vpop.f32.mrb[29].mxu0  ;;  %v512_v9 = vsel %vm494_vm1, %v509_v51, %v511_v53 }
 0x121   : > { %v508_v10 = vsel %vm494_vm1, %v506_v59, %v507_v60  ;;  %v510_v12 = vsel %vm494_vm1, %v507_v60, %v509_v51  ;;  %v437_v13 = vadd.f32 %v2431_v56, %v436_v8  ;;  %v2089_v14 = vpop.f32.mrb[30].mxu0  ;;  %2119 = vmatmul.mubr.msk.bf16.vlgmr.msra.gmra.mrb[0].mxu1 %vm241_vm0, %v897_v61  ;;  %v1376_v43 = vsel %vm2459_vm2, 0.0, %v512_v9 }
 0x122   : > { %v664_v15 = vsel %vm2464_vm3, 0.0, %v508_v10  ;;  %v665_v19 = vsel %vm2459_vm2, 0.0, %v510_v12  ;;  %v1375_v20 = vsel %vm2464_vm3, 0.0, %v510_v12  ;;  %v481_v22 = vmax.f32 %v445_v5, 0.0  ;;  %2127 = vmatpush3.bf16.msra.mxu1 %v2424_v55  ;;  %v439_v25 = vpop.f32.mrb[31].mxu0 }
 0x123   : > { %v671_v28 = vpack.c.bf16 %v665_v19, %v664_v15  ;;  %v2605_v29 = vmax.f32 %v437_v13, 0.0  ;;  %v448_v33 = vadd.f32 %v2089_v14, %v2431_v56  ;;  %v440_v35 = vadd.f32 %v2431_v56, %v439_v25  ;;  %2128 = vmatprep.subr.bf16.mxu1 %v2291_v3 }
 0x124   : > { %v495_v41 = vrot.slane %v481_v22, 7  ;;  %v2619_v42 = vpack.c.bf16 %v1376_v43, %v1375_v20  ;;  %v666_v61 = vsel %vm2496_vm6, 0.0, %v512_v9  ;;  %v1374_v0 = vsel %vm2492_vm5, 0.0, %v508_v10 }
 0x125   : > { %v513_v54 = vrot.slane %v2605_v29, 7  ;;  %v898_v55 = vpack.c.bf16 %v2605_v29, %v2572_v46  ;;  %v482_v37 = vmax.f32 %v448_v33, 0.0  ;;  %v2617_v38 = vmax.f32 %v440_v35, 0.0 }
 0x126   : > { %2129 = vmatpush3.bf16.msra.mxu1 %v2291_v3 }
 0x127   : > { %v496_v56 = vrot.slane %v482_v37, 7  ;;  %v2621_v45 = vpack.c.bf16 %v482_v37, %v481_v22  ;;  %v515_v50 = vrot.slane %v2617_v38, 7  ;;  %v899_v40 = vpack.c.bf16 %v481_v22, %v2617_v38  ;;  %2122 = vmatprep.mubr.msk.bf16.mxu1 %vm241_vm0, %v898_v55  ;;  %2138 = vmatprep.subr.bf16.mxu1 %v2293_v36 }
 0x128   : > { %v1593_v51 = vpack.c.bf16 %v2617_v38, %v2605_v29  ;;  %v514_v60 = vsel %vm494_vm1, %v511_v53, %v513_v54 }
 0x129   : > { %v497_v3 = vsel %vm494_vm1, %v495_v41, %v496_v56  ;;  %v525_v5 = vsel %vm494_vm1, %v496_v56, %v506_v59  ;;  %2123 = vmatmul.mubr.msk.bf16.gmra.mrb[4].mxu1 %vm241_vm0, %v899_v40  ;;  %v667_v8 = vsel %vm2500_vm7, 0.0, %v514_v60  ;;  %v516_v12 = vsel %vm494_vm1, %v513_v54, %v515_v50 }
 0x12a   : > { %2130 = vmatprep.mubr.msk.bf16.mxu1 %vm241_vm0, %v2528_v47  ;;  %v663_v53 = vsel %vm2492_vm5, 0.0, %v525_v5  ;;  %v672_v9 = vpack.c.bf16 %v667_v8, %v666_v61  ;;  %v517_v10 = vsel %vm494_vm1, %v515_v50, %v495_v41  ;;  %v668_v13 = vsel %vm2513_vm9, 0.0, %v516_v12 }
 0x12b   : > { %v670_v59 = vpack.c.bf16 %v663_v53, %v2313_v62  ;;  %v669_v14 = vsel %vm2506_vm8, 0.0, %v517_v10  ;;  %v1373_v15 = vsel %vm2488_vm4, 0.0, %v525_v5  ;;  %v1377_v47 = vsel %vm2496_vm6, 0.0, %v514_v60 }
 0x12c   : > { %v673_v19 = vpack.c.bf16 %v669_v14, %v668_v13  ;;  %v1381_v17 = vpack.c.bf16 %v1374_v0, %v1373_v15  ;;  %v1378_v20 = vsel %vm2500_vm7, 0.0, %v516_v12  ;;  %v1379_v22 = vsel %vm2513_vm9, 0.0, %v517_v10 }
 0x12d   : > { %2106 = vmatprep.mubr.msk.bf16.mxu0 %vm241_vm0, %v670_v59  ;;  %v1383_v62 = vpack.c.bf16 %v1378_v20, %v1377_v47  ;;  %v1380_v25 = vsel %vm2506_vm8, 0.0, %v497_v3  ;;  %v1965_v47 = vld [vmem:[%s2772_s2 + $0x2] ss:$0 sm:$0xff] }
 0x12e   : > { %2107 = vmatmul.mubr.msk.bf16.vlgmr.msra.gmra.mrb[32].mxu0 %vm241_vm0, %v671_v28  ;;  %v1384_v16 = vpack.c.bf16 %v1380_v25, %v1379_v22 }
 0x12f   : > { %2110 = vmatprep.mubr.msk.bf16.mxu0 %vm241_vm0, %v672_v9 }
 0x131   : > { %2131 = vmatmul.mubr.msk.bf16.vlgmr.msra.gmra.mrb[0].mxu1 %vm241_vm0, %v2485_v11  ;;  %v2296_v11 = vld [vmem:[%s2771_s1 + $0x68] sm:$0xff]  }
 0x132   : > { %2139 = vmatpush3.bf16.msra.mxu1 %v2293_v36  ;;  %2134 = vmatprep.mubr.msk.bf16.mxu1 %vm241_vm0, %v2535_v57 }
 0x133   : > { %2140 = vmatprep.subr.bf16.mxu1 %v2294_v18 }
 0x136   : > { %2111 = vmatmul.mubr.msk.bf16.gmra.mrb[36].mxu0 %vm241_vm0, %v673_v19  ;;  %2141 = vmatpush3.bf16.msra.mxu1 %v2294_v18 }
 0x137   : > { %2150 = vmatprep.subr.bf16.mxu1 %v2295_v21 }
 0x139   : > { %2135 = vmatmul.mubr.msk.bf16.gmra.mrb[4].mxu1 %vm241_vm0, %v2542_v1 }
 0x13a   : > { %2142 = vmatprep.mubr.msk.bf16.mxu1 %vm241_vm0, %v2439_v7  ;;  %v2299_v7 = vld [vmem:[%s2771_s1 + $0x80] sm:$0xff]  }
 0x141   : > { %2143 = vmatmul.mubr.msk.bf16.vlgmr.msra.gmra.mrb[0].mxu1 %vm241_vm0, %v2437_v6  ;;  %v2298_v6 = vld [vmem:[%s2771_s1 + $0x78] sm:$0xff]  }
 0x142   : > { %2151 = vmatpush3.bf16.msra.mxu1 %v2295_v21  ;;  %2146 = vmatprep.mubr.msk.bf16.mxu1 %vm241_vm0, %v2451_v24  ;;  %v2301_v24 = vld [vmem:[%s2771_s1 + $0x90] sm:$0xff]  }
 0x143   : > { %2152 = vmatprep.subr.bf16.mxu1 %v2296_v11 }
 0x146   : > { %2153 = vmatpush3.bf16.msra.mxu1 %v2296_v11 }
 0x147   : > { %2162 = vmatprep.subr.bf16.mxu1 %v2297_v27 }
 0x149   : > { %2147 = vmatmul.mubr.msk.bf16.gmra.mrb[4].mxu1 %vm241_vm0, %v2449_v23  ;;  %v2300_v23 = vld [vmem:[%s2771_s1 + $0x88] sm:$0xff]  }
 0x14a   : > { %2154 = vmatprep.mubr.msk.bf16.mxu1 %vm241_vm0, %v2471_v52  ;;  %v2303_v52 = vld [vmem:[%s2771_s1 + $0xa0] sm:$0xff]  }
 0x14b   : > { %2198 = vmatprep.subr.bf16.mxu0 %v2303_v52 }
 0x14c   : > { %2199 = vmatpush3.bf16.msra.mxu0 %v2303_v52 }
 0x151   : > { %2155 = vmatmul.mubr.msk.bf16.vlgmr.msra.gmra.mrb[0].mxu1 %vm241_vm0, %v2468_v48  ;;  %v2302_v48 = vld [vmem:[%s2771_s1 + $0x98] sm:$0xff]  }
 0x152   : > { %2163 = vmatpush3.bf16.msra.mxu1 %v2297_v27  ;;  %2158 = vmatprep.mubr.msk.bf16.mxu1 %vm241_vm0, %v2511_v30 }
 0x153   : > { %2164 = vmatprep.subr.bf16.mxu1 %v2298_v6 }
 0x156   : > { %2165 = vmatpush3.bf16.msra.mxu1 %v2298_v6 }
 0x157   : > { %2174 = vmatprep.subr.bf16.mxu1 %v2299_v7 }
 0x159   : > { %2159 = vmatmul.mubr.msk.bf16.gmra.mrb[4].mxu1 %vm241_vm0, %v2504_v26  ;;  %v2304_v26 = vld [vmem:[%s2771_s1 + $0xa8] sm:$0xff]  }
 0x15a   : > { %2166 = vmatprep.mubr.msk.bf16.mxu1 %vm241_vm0, %v1381_v17  ;;  %2200 = vmatprep.subr.bf16.mxu0 %v2304_v26 }
 0x15b   : > { %2201 = vmatpush3.bf16.msra.mxu0 %v2304_v26 }
 0x161   : > { %2167 = vmatmul.mubr.msk.bf16.vlgmr.msra.gmra.mrb[0].mxu1 %vm241_vm0, %v2619_v42 }
 0x162   : > { %2175 = vmatpush3.bf16.msra.mxu1 %v2299_v7  ;;  %2170 = vmatprep.mubr.msk.bf16.mxu1 %vm241_vm0, %v1383_v62 }
 0x163   : > { %2176 = vmatprep.subr.bf16.mxu1 %v2300_v23 }
 0x166   : > { %2177 = vmatpush3.bf16.msra.mxu1 %v2300_v23 }
 0x167   : > { %2186 = vmatprep.subr.bf16.mxu1 %v2301_v24 }
 0x169   : > { %2171 = vmatmul.mubr.msk.bf16.gmra.mrb[4].mxu1 %vm241_vm0, %v1384_v16 }
 0x16a   : > { %2178 = vmatprep.mubr.msk.bf16.mxu1 %vm241_vm0, %v2546_v4 }
 0x171   : > { %2179 = vmatmul.mubr.msk.bf16.vlgmr.msra.gmra.mrb[0].mxu1 %vm241_vm0, %v2544_v2 }
 0x172   : > { %2187 = vmatpush3.bf16.msra.mxu1 %v2301_v24  ;;  %2182 = vmatprep.mubr.msk.bf16.mxu1 %vm241_vm0, %v2560_v34 }
 0x173   : > { %2188 = vmatprep.subr.bf16.mxu1 %v2302_v48 }
 0x176   : > { %2189 = vmatpush3.bf16.msra.mxu1 %v2302_v48 }
 0x179   : > { %2183 = vmatmul.mubr.msk.bf16.gmra.mrb[4].mxu1 %vm241_vm0, %v2558_v31 }
 0x17a   : > { %2190 = vmatprep.mubr.msk.bf16.mxu1 %vm241_vm0, %v1591_v63 }
 0x181   : > { %2191 = vmatmul.mubr.msk.bf16.vlgmr.msra.gmra.mrb[0].mxu1 %vm241_vm0, %v1592_v58 }
 0x182   : > { %2194 = vmatprep.mubr.msk.bf16.mxu1 %vm241_vm0, %v1593_v51 }
 0x189   : > { %2195 = vmatmul.mubr.msk.bf16.gmra.mrb[4].mxu1 %vm241_vm0, %v2621_v45 }
 0x201   : > { %v2108_v30 = vpop.f32.mrb[32].mxu0 }
 0x202   : > { %v857_v32 = vpop.f32.mrb[33].mxu0 }
 0x203   : > { %v2109_v57 = vpop.f32.mrb[34].mxu0 }
 0x204   : > { %v860_v1 = vpop.f32.mrb[35].mxu0 }
 0x209   : > { %v2112_v2 = vpop.f32.mrb[36].mxu0 }
 0x20a   : > { %v873_v4 = vpop.f32.mrb[37].mxu0 }
 0x20b   : > { %v2113_v31 = vpop.f32.mrb[38].mxu0 }
 0x20c   : > { %v876_v34 = vpop.f32.mrb[39].mxu0 }
 0x254   : > { %v2192_v39 = vpop.f32.mrb[0].mxu1 }
 0x255   : > { %v2210_v46 = vadd.f32 %v2192_v39, %v2108_v30  ;;  %v1657_v49 = vpop.f32.mrb[1].mxu1 }
 0x256   : > { %v2211_v58 = vadd.f32 %v1657_v49, %v857_v32  ;;  %v2193_v63 = vpop.f32.mrb[2].mxu1 }
 0x257   : > { %v1703_v28 = vadd.f32 %v2210_v46, %v1964_v44  ;;  %v2212_v29 = vadd.f32 %v2193_v63, %v2109_v57  ;;  %v1660_v33 = vpop.f32.mrb[3].mxu1 }
 0x258   : > { %v1701_v35 = vadd.f32 %v2211_v58, %v1964_v44  ;;  %v2213_v36 = vadd.f32 %v1660_v33, %v860_v1 }
 0x259   : > { %v1704_v43 = vadd.f32 %v2212_v29, %v1964_v44  ;;  %v1711_v55 = vmax.f32 %v1703_v28, 0.0 }
 0x25a   : > { %v1702_v54 = vadd.f32 %v2213_v36, %v1964_v44  ;;  %v1709_v38 = vmax.f32 %v1701_v35, 0.0 }
 0x25b   : > { %v1712_v37 = vmax.f32 %v1704_v43, 0.0 }
 0x25c   : > { %v1710_v41 = vmax.f32 %v1702_v54, 0.0  ;;  %v2196_v42 = vpop.f32.mrb[4].mxu1 }
 0x25d   : > { %v1718_v56 = vpack.c.bf16 %v1712_v37, %v1711_v55  ;;  %v2214_v45 = vadd.f32 %v2196_v42, %v2112_v2  ;;  %v1673_v50 = vpop.f32.mrb[5].mxu1 }
 0x25e   : > { %v1717_v40 = vpack.c.bf16 %v1710_v41, %v1709_v38  ;;  %v2215_v51 = vadd.f32 %v1673_v50, %v873_v4  ;;  %v2197_v60 = vpop.f32.mrb[6].mxu1 }
 0x25f   : > { %v1707_v61 = vadd.f32 %v2214_v45, %v1964_v44  ;;  %v2216_v0 = vadd.f32 %v2197_v60, %v2113_v31  ;;  %v1676_v3 = vpop.f32.mrb[7].mxu1 }
 0x260   : > { %v1705_v5 = vadd.f32 %v2215_v51, %v1964_v44  ;;  %v2217_v8 = vadd.f32 %v1676_v3, %v876_v34  ;;  %2202 = vmatprep.mubr.msk.bf16.mxu0 %vm241_vm0, %v1717_v40 }
 0x261   : > { %v1708_v12 = vadd.f32 %v2216_v0, %v1964_v44  ;;  %2203 = vmatmul.mubr.msk.bf16.vlgmr.msra.gmra.mrb[40].mxu0 %vm241_vm0, %v1718_v56  ;;  %v1715_v9 = vmax.f32 %v1707_v61, 0.0 }
 0x262   : > { %v1706_v53 = vadd.f32 %v2217_v8, %v1964_v44  ;;  %v1713_v13 = vmax.f32 %v1705_v5, 0.0 }
 0x263   : > { %v1716_v10 = vmax.f32 %v1708_v12, 0.0 }
 0x264   : > { %v1714_v59 = vmax.f32 %v1706_v53, 0.0 }
 0x265   : > { %v1720_v14 = vpack.c.bf16 %v1716_v10, %v1715_v9 }
 0x266   : > { %v1719_v15 = vpack.c.bf16 %v1714_v59, %v1713_v13 }
 0x268   : > { %2206 = vmatprep.mubr.msk.bf16.mxu0 %vm241_vm0, %v1719_v15 }
 0x269   : > { %2207 = vmatmul.mubr.msk.bf16.gmra.mrb[44].mxu0 %vm241_vm0, %v1720_v14 }
 0x334   : > { %v2204_v19 = vpop.f32.mrb[40].mxu0 }
 0x335   : > { %v1797_v17 = vadd.f32 %v2204_v19, %v1965_v47  ;;  %v1788_v20 = vpop.f32.mrb[41].mxu0 }
 0x336   : > { %v1789_v22 = vadd.f32 %v1965_v47, %v1788_v20  ;;  %v2205_v62 = vpop.f32.mrb[42].mxu0 }
 0x337   : > { %1821 = vst.msk [vmem:[%s170_s21 + $0x10] sm:$0xff] %vm241_vm0, %v1797_v17  ;;  %v1800_v25 = vadd.f32 %v2205_v62, %v1965_v47  ;;  %v1791_v16 = vpop.f32.mrb[43].mxu0 }
 0x338   : > { %1819 = vst.msk [vmem:[%s170_s21] sm:$0xff] %vm241_vm0, %v1789_v22  ;;  %v1792_v18 = vadd.f32 %v1965_v47, %v1791_v16 }
 0x339   : > { %1822 = vst.msk [vmem:[%s170_s21 + $0x18] sm:$0xff] %vm241_vm0, %v1800_v25 }
 0x33a   : > { %1820 = vst.msk [vmem:[%s170_s21 + $0x8] sm:$0xff] %vm241_vm0, %v1792_v18 }
 0x33c   : > { %v2208_v21 = vpop.f32.mrb[44].mxu0 }
 0x33d   : > { %v1813_v11 = vadd.f32 %v2208_v21, %v1965_v47  ;;  %v1804_v27 = vpop.f32.mrb[45].mxu0 }
 0x33e   : > { %v1805_v6 = vadd.f32 %v1965_v47, %v1804_v27  ;;  %v2209_v7 = vpop.f32.mrb[46].mxu0 }
 0x33f   : > { %1825 = vst.msk [vmem:[%s170_s21 + $0x30] sm:$0xff] %vm241_vm0, %v1813_v11  ;;  %v1816_v23 = vadd.f32 %v2209_v7, %v1965_v47  ;;  %v1807_v24 = vpop.f32.mrb[47].mxu0 }
 0x340   : > { %1823 = vst.msk [vmem:[%s170_s21 + $0x20] sm:$0xff] %vm241_vm0, %v1805_v6  ;;  %v1808_v48 = vadd.f32 %v1965_v47, %v1807_v24 }
 0x341   : > { %1826 = vst.msk [vmem:[%s170_s21 + $0x38] sm:$0xff] %vm241_vm0, %v1816_v23 }
 0x342   : > { %1824 = vst.msk [vmem:[%s170_s21 + $0x28] sm:$0xff] %vm241_vm0, %v1808_v48 }
 0x343 PF: > { %s13_s12 = sadd.s32 1, %s2311_s12  }
 0x344   : > { %p10_p4 = scmp.ge.s32.totalorder %s13_s12, 4  }
 0x346   :  { %12 = sbr.rel (!%p10_p4) target bundleno = 1 (0x1), region = 62 }

// kernel: detr_forward.3
= control target key start
LH: loop header
LB: loop body
LE: loop exit
PB: predicated region body
PF: predicated region fallthrough
CT: control target
= control target key end

     0   :  { %s7408_s0 = inlined_call_operand.vmem [shape: f32[2,64,32], index: 0, kind: input, shape index: {}]   ;;  %s7409_s1 = inlined_call_operand.vmem [shape: f32[64,32], index: 1, kind: input, shape index: {}]   ;;  %s7410_s2 = inlined_call_operand.vmem [shape: f32[8,32], index: 2, kind: input, shape index: {}]   ;;  %s7411_s3 = inlined_call_operand.vmem [shape: bf16[16,32,128], index: 3, kind: input, shape index: {}]   ;;  %s7412_s4 = inlined_call_operand.vmem [shape: bf16[2,64,32], index: 4, kind: input, shape index: {}]   ;;  %s7413_s5 = inlined_call_operand.vmem [shape: bf16[128,8], index: 5, kind: input, shape index: {}]   ;;  %s7414_s6 = inlined_call_operand.vmem [shape: f32[32,128], index: 6, kind: input, shape index: {}]   ;;  %s7415_s7 = inlined_call_operand.hbm [shape: f32[2,8,128], index: 7, kind: output, shape index: {0}]   ;;  %s7416_s8 = inlined_call_operand.vmem [shape: f32[2,8,8], index: 8, kind: output, shape index: {1}]   ;;  %s7417_s9 = inlined_call_operand.vmem [shape: f32[2,8,8], index: 9, kind: output, shape index: {2}]  }
   0x1   :  { %7434 = sst [smem:[#allocation18_spill]] %s7408_s0 }
   0x2   :  { %15 = vsyncpa [#allocation3], 0 }
   0x3   :  { %17 = vsyncpa [#allocation3 + $0x1], 0  ;;  %s5821_s30 = smov 0   ;;  %s5823_s10 = smov 0  }
   0x4   :  { %s5825_s11 = smov 0   ;;  %s5827_s12 = smov 0  }
   0x5 LB: > { %s5842_s13 = sadd.s32 4294967295, %s5764_s12   ;;  %s4453_s14 = sadd.s32 4294967294, %s5764_s12   ;;  %s5764_s12 = sphi %s5827_s12, %s7486_s12   ;;  %s5760_s11 = sphi %s5825_s11, %s7485_s11   ;;  %s5756_s10 = sphi %s5823_s10, %s7484_s10   ;;  %s5752_s30 = sphi %s5821_s30, %s7483_s30  }
   0x6   : > { %s5846_s15 = sadd.s32 1, %s5764_s12   ;;  %s182_s16 = sadd.s32 1, %s5760_s11 }
   0x7   : > { %s179_s17 = ssub.s32 %s5764_s12, %s5846_s15  ;;  %p192_p0 = scmp.ne.s32.totalorder %s5760_s11, %s5756_s10 }
   0x8   : > { %p180_p1 = scmp.eq.s32.totalorder %s179_s17, 0  ;;  %p193_p2 = scmp.eq.s32.totalorder %s5842_s13, 1 }
   0x9   : > { %p198_p3 = scmp.ne.s32.totalorder %s5756_s10, %s5752_s30  ;;  %p199_p4 = scmp.eq.s32.totalorder %s4453_s14, 1 }
   0xa   : > { %s5857_s18 = scalar_select %p180_p1, %s5760_s11, %s182_s16  }
   0xb   : > { %p5859_p5 = por %p193_p2, %p192_p0  ;;  %p5863_p6 = por %p199_p4, %p198_p3 }
   0xc   : > { %7435 = sst [smem:[#allocation5_spill]] %s5857_s18  ;;  %p4456_p7 = scmp.ge.s32.totalorder %s5764_s12, 1 }
   0xd   : > { %p295_p8 = scmp.lt.s32.totalorder %s5764_s12, 3 }
   0xf   : > { %p296_p9 = pnand %p4456_p7, %p295_p8 }
  0x11   : > { %299 = sbr.rel (%p296_p9) target bundleno = 8567 (0x2177), region = 48 }
  0x18   : > { %v5438_v0 = vld [vmem:[%s7411_s3] sm:$0xff]   ;;  %p339_p10 = scmp.lt.s32.totalorder %s5842_s13, 1  ;;  %v5439_v1 = vld [vmem:[%s7411_s3 + $0x8] sm:$0xff]   ;;  %v367_v4 = vld [vmem:[%s7409_s1 + $0x10] sm:$0xff]  ;;  %s7438_s0 = sld [smem:[#allocation18_spill]]  ;;  %vm407_vm0 = vcmask 261120   ;;  %v355_v36 = vlaneseq }
  0x19   : > { %4899 = vmatprep.subr.bf16.mxu0 %v5438_v0  ;;  %v365_v2 = vld [vmem:[%s7409_s1] sm:$0xff]  ;;  %v366_v3 = vld [vmem:[%s7409_s1 + $0x8] sm:$0xff]  ;;  %v368_v5 = vld [vmem:[%s7409_s1 + $0x18] sm:$0xff]  ;;  %v7439_v40 = vmov 0  ;;  %v5766_v41 = vmov 0   ;;  %v7442_v44 = vmov 0 }
  0x1a   : > { %s5877_s25 = scalar_select %p339_p10, %s5842_s13, 1  ;;  %4900 = vmatpush3.bf16.msra.mxu0 %v5438_v0  ;;  %v369_v6 = vld [vmem:[%s7409_s1 + $0x20] sm:$0xff]  ;;  %v370_v7 = vld [vmem:[%s7409_s1 + $0x28] sm:$0xff]  ;;  %v5440_v8 = vld [vmem:[%s7411_s3 + $0x10] sm:$0xff]   ;;  %v356_v37 = vand.u32 127, %v355_v36  ;;  %v616_v38 = vshrl.u32 %v355_v36, 7 }
  0x1b   : > { %4901 = vmatprep.subr.bf16.mxu0 %v5439_v1  ;;  %v371_v18 = vld [vmem:[%s7409_s1 + $0x30] sm:$0xff]  ;;  %v372_v19 = vld [vmem:[%s7409_s1 + $0x38] sm:$0xff]  ;;  %v7445_v47 = vmov 0  ;;  %v7448_v50 = vmov 0  ;;  %v4462_v51 = vld [vmem:[%s7414_s6] ss:$0 sm:$0xff] }
  0x1c   : > { %s4693_s22 = sshll.u32 %s5877_s25, 6  ;;  %v5441_v26 = vld [vmem:[%s7411_s3 + $0x18] sm:$0xff]   ;;  %vm907_vm1 = vcmp.ge.s32.totalorder %v356_v37, 8  ;;  %vm908_vm2 = vcmp.lt.s32.totalorder %v356_v37, 16  ;;  %vm1181_vm4 = vcmp.ge.s32.totalorder %v356_v37, 16  ;;  %vm1182_vm5 = vcmp.lt.s32.totalorder %v356_v37, 24 }
  0x1d   : > { %vm909_vm3 = vmand %vm907_vm1, %vm908_vm2  ;;  %v5931_v39 = vsub.s32 0, %v616_v38  ;;  %vm1455_vm7 = vcmp.ge.s32.totalorder %v356_v37, 24  ;;  %vm1456_vm8 = vcmp.lt.s32.totalorder %v356_v37, 32  ;;  %vm609_vm13 = vcmp.lt.s32.totalorder %v356_v37, 8  ;;  %s5767_s29 = smov 96   ;;  %s7432_s17 = sand.u32 1, %s5756_s10  }
  0x1e   : > { %s5901_s18 = scalar_lea.vmem %s7438_s0, %s4693_s22  ;;  %4902 = vmatpush3.bf16.msra.mxu0 %v5439_v1  ;;  %vm5933_vm6 = vmpackc.low %vm909_vm3, %vm909_vm3  ;;  %vm729_vm2 = vcmask 523264   ;;  %s7289_s21 = sshll.u32 %s7432_s17, 3 }
  0x1f   : > { %v357_v9 = vld [vmem:[%s5901_s18] sm:$0xff]  ;;  %v358_v10 = vld [vmem:[%s5901_s18 + $0x8] sm:$0xff]  ;;  %v359_v11 = vld [vmem:[%s5901_s18 + $0x10] sm:$0xff]  ;;  %4911 = vmatprep.subr.bf16.mxu0 %v5440_v8  ;;  %v7440_v40 = vsel %vm5933_vm6, 4294967295, %v7439_v40  ;;  %v5939_v42 = vsel %vm5933_vm6, 65537, %v5766_v41  ;;  %s326_s24 = scalar_lea.vmem [#allocation2], %s7289_s21 }
  0x20   : > { %v374_v12 = vadd.f32 %v365_v2, %v357_v9  ;;  %v375_v13 = vadd.f32 %v366_v3, %v358_v10  ;;  %v360_v14 = vld [vmem:[%s5901_s18 + $0x18] sm:$0xff]  ;;  %v376_v15 = vadd.f32 %v367_v4, %v359_v11  ;;  %v361_v16 = vld [vmem:[%s5901_s18 + $0x20] sm:$0xff]  ;;  %v362_v17 = vld [vmem:[%s5901_s18 + $0x28] sm:$0xff]  ;;  %v485_v32 = vpack.c.bf16 %v358_v10, %v357_v9  ;;  %7441 = vst [vmem:[#allocation6_spill] sm:$0xff] %v7440_v40  ;;  %s7433_s16 = sshll.u32 %s5877_s25, 3  ;;  %s4690_s28 = sshll.u32 %s5842_s13, 7 }
  0x21   : > { %v377_v20 = vadd.f32 %v368_v5, %v360_v14  ;;  %v378_v21 = vadd.f32 %v369_v6, %v361_v16  ;;  %v379_v22 = vadd.f32 %v370_v7, %v362_v17  ;;  %v363_v23 = vld [vmem:[%s5901_s18 + $0x30] sm:$0xff]  ;;  %v364_v24 = vld [vmem:[%s5901_s18 + $0x38] sm:$0xff]  ;;  %v486_v33 = vpack.c.bf16 %v360_v14, %v359_v11  ;;  %vm1183_vm9 = vmand %vm1181_vm4, %vm1182_vm5  ;;  %s351_s27 = scalar_lea.vmem %s7417_s9, %s7433_s16  ;;  %s4340_s14 = sshll.u32 %s326_s24, 4  ;;  %s4341_s14 = int_to_ptr.vmem [resolvable:$true] %s4340_s14 }
  0x22   : > { %v382_v25 = vpack.c.bf16 %v375_v13, %v374_v12  ;;  %v380_v29 = vadd.f32 %v371_v18, %v363_v23  ;;  %v381_v30 = vadd.f32 %v372_v19, %v364_v24  ;;  %v487_v34 = vpack.c.bf16 %v362_v17, %v361_v16  ;;  %vm5943_vm10 = vmpackc.low %vm1183_vm9, %vm1183_vm9  ;;  %s7361_s22 = scalar_lea.hbm %s7415_s7, %s4690_s28  ;;  %s7480_s23 = sand.u32 1, %s5756_s10  }
  0x23   : > { %v383_v27 = vpack.c.bf16 %v377_v20, %v376_v15  ;;  %v384_v28 = vpack.c.bf16 %v379_v22, %v378_v21  ;;  %v488_v35 = vpack.c.bf16 %v364_v24, %v363_v23  ;;  %v917_v43 = vrot.slane %v5939_v42, %v5931_v39  ;;  %vm1457_vm11 = vmand %vm1455_vm7, %vm1456_vm8  ;;  %v4473_v23 = vld [vmem:[%s7414_s6 + $0x1] ss:$0 sm:$0xff]  ;;  %s4319_s0 = scalar_lea.sflag [#allocation3], %s7480_s23  ;;  %s5702_s26 = scalar_lea.vmem %s4341_s14, 128 }
  0x24   : > { %4903 = vmatprep.mubr.msk.bf16.mxu0 %vm407_vm0, %v382_v25  ;;  %v385_v31 = vpack.c.bf16 %v381_v30, %v380_v29  ;;  %v7443_v44 = vsel %vm5943_vm10, 4294967295, %v7442_v44  ;;  %v5949_v45 = vsel %vm5943_vm10, 65537, %v5766_v41  ;;  %vm5953_vm12 = vmpackc.low %vm1457_vm11, %vm1457_vm11  ;;  %v7451_v5 = vmov 0  ;;  %p5703_p11 = scmp.ne.s32.totalorder %s4341_s14, %s5702_s26 }
  0x25   : > { %4904 = vmatmul.mubr.msk.bf16.vlgmr.msra.gmra.mrb[0].mxu0 %vm407_vm0, %v383_v27  ;;  %7444 = vst [vmem:[#allocation7_spill] sm:$0xff] %v7443_v44  ;;  %v1191_v46 = vrot.slane %v5949_v45, %v5931_v39  ;;  %v7446_v47 = vsel %vm5953_vm12, 4294967295, %v7445_v47  ;;  %v5959_v48 = vsel %vm5953_vm12, 65537, %v5766_v41  ;;  %vm5963_vm14 = vmpackc.low %vm609_vm13, %vm609_vm13  ;;  %vm6069_vm1 = vcmp.ne.s16.totalorder %v917_v43, 0 }
  0x26   : > { %4907 = vmatprep.mubr.msk.bf16.mxu0 %vm407_vm0, %v384_v28  ;;  %4912 = vmatpush3.bf16.msra.mxu0 %v5440_v8  ;;  %7447 = vst [vmem:[#allocation8_spill] sm:$0xff] %v7446_v47  ;;  %v7449_v50 = vsel %vm5963_vm14, 4294967295, %v7448_v50  ;;  %v614_v53 = vsel %vm5963_vm14, 65537, %v5766_v41  ;;  %vm5769_vm5 = vmmov 0   ;;  %vm2464_vm7 = vcmask 64512   ;;  %p5704_p12 = pnand %p5703_p11, %p5859_p5 }
  0x27   : > { %4913 = vmatprep.subr.bf16.mxu0 %v5441_v26  ;;  %7450 = vst [vmem:[#allocation9_spill] sm:$0xff] %v7449_v50  ;;  %v618_v60 = vrot.slane %v614_v53, %v5931_v39  ;;  %vm6164_vm3 = vcmp.ne.s16.totalorder %v1191_v46, 0  ;;  %vm2479_vm8 = vcmask 1043456  }
  0x28   : > { %p5705_p13 = pneg %p5704_p12 }
  0x29   : > { %vm5975_vm15 = vcmp.ne.s16.totalorder %v618_v60, 0 }
  0x2a   : > { %4914 = vmatpush3.bf16.msra.mxu0 %v5441_v26  ;;  %v7452_v5 = vsel %vm5975_vm15, 4294967295, %v7451_v5 }
  0x2b   : > { %7453 = vst [vmem:[#allocation10_spill] sm:$0xff] %v7452_v5 }
  0x2d   : > { %4908 = vmatmul.mubr.msk.bf16.gmra.mrb[4].mxu0 %vm407_vm0, %v385_v31 }
  0x2e   : > { %4915 = vmatprep.mubr.msk.bf16.mxu0 %vm407_vm0, %v485_v32 }
  0x35   : > { %4916 = vmatmul.mubr.msk.bf16.vlgmr.msra.gmra.mrb[8].mxu0 %vm407_vm0, %v486_v33 }
  0x36   : > { %4919 = vmatprep.mubr.msk.bf16.mxu0 %vm407_vm0, %v487_v34 }
  0x3d   : > { %4920 = vmatmul.mubr.msk.bf16.gmra.mrb[12].mxu0 %vm407_vm0, %v488_v35 }
  0xf8   : > { %v4905_v52 = vpop.f32.mrb[0].mxu0 }
  0xf9   : > { %v463_v54 = vadd.f32 %v4905_v52, %v4462_v51  ;;  %v454_v55 = vpop.f32.mrb[1].mxu0 }
  0xfa   : > { %v455_v56 = vadd.f32 %v4462_v51, %v454_v55  ;;  %v4906_v57 = vpop.f32.mrb[2].mxu0 }
  0xfb   : > { %v466_v58 = vadd.f32 %v4906_v57, %v4462_v51  ;;  %v457_v59 = vpop.f32.mrb[3].mxu0  ;;  %v590_v62 = vmul.f32 0.35355338, %v463_v54 }
  0xfc   : > { %v458_v61 = vadd.f32 %v4462_v51, %v457_v59  ;;  %v588_v1 = vmul.f32 0.35355338, %v455_v56 }
  0xfd   : > { %v591_v63 = vmul.f32 0.35355338, %v466_v58  ;;  %v601_v0 = vpack.c.bf16 %v466_v58, %v463_v54 }
  0xfe   : > { %v589_v2 = vmul.f32 0.35355338, %v458_v61  ;;  %v600_v3 = vpack.c.bf16 %v458_v61, %v455_v56 }
  0xff   : > { %v5973_v4 = vpack.c.bf16 %v591_v63, %v590_v62 }
 0x100   : > { %v5979_v6 = vpack.c.bf16 %v589_v2, %v588_v1  ;;  %632 = vrot.lane.b32.xlu0 %v600_v3, %s5767_s29  ;;  %v4909_v7 = vpop.f32.mrb[4].mxu0 }
 0x101   : > { %v479_v8 = vadd.f32 %v4909_v7, %v4462_v51  ;;  %v470_v9 = vpop.f32.mrb[5].mxu0  ;;  %v7454_v7 = vmov 0 }
 0x102   : > { %v471_v10 = vadd.f32 %v4462_v51, %v470_v9  ;;  %v4910_v11 = vpop.f32.mrb[6].mxu0  ;;  %v620_v12 = vsel %vm5975_vm15, %v5979_v6, 0  ;;  %v7455_v7 = vsel %vm6069_vm1, 4294967295, %v7454_v7  ;;  %v621_v9 = vsel %vm5975_vm15, %v5973_v4, 0 }
 0x103   : > { %v594_v13 = vmul.f32 0.35355338, %v479_v8  ;;  %v482_v14 = vadd.f32 %v4910_v11, %v4462_v51  ;;  %4931 = vmatprep.mubr.msk.bf16.mxu0 %vm407_vm0, %v620_v12  ;;  %v473_v15 = vpop.f32.mrb[7].mxu0  ;;  %7456 = vst [vmem:[#allocation11_spill] sm:$0xff] %v7455_v7 }
 0x104   : > { %v592_v16 = vmul.f32 0.35355338, %v471_v10  ;;  %v474_v17 = vadd.f32 %v4462_v51, %v473_v15  ;;  %634 = vrot.lane.b32.xlu0 %v601_v0, %s5767_s29 }
 0x105   : > { %v595_v18 = vmul.f32 0.35355338, %v482_v14  ;;  %v603_v19 = vpack.c.bf16 %v482_v14, %v479_v8 }
 0x106   : > { %v593_v20 = vmul.f32 0.35355338, %v474_v17  ;;  %v602_v21 = vpack.c.bf16 %v474_v17, %v471_v10 }
 0x107   : > { %v5987_v22 = vpack.c.bf16 %v595_v18, %v594_v13 }
 0x108   : > { %v5992_v24 = vpack.c.bf16 %v593_v20, %v592_v16  ;;  %636 = vrot.lane.b32.xlu1 %v602_v21, %s5767_s29  ;;  %v4917_v25 = vpop.f32.mrb[8].mxu0 }
 0x109   : > { %v566_v26 = vadd.f32 %v4917_v25, %v4473_v23  ;;  %v557_v27 = vpop.f32.mrb[9].mxu0  ;;  %v623_v11 = vsel %vm5975_vm15, %v5987_v22, 0 }
 0x10a   : > { %v558_v28 = vadd.f32 %v4473_v23, %v557_v27  ;;  %v4918_v29 = vpop.f32.mrb[10].mxu0  ;;  %v622_v42 = vsel %vm5975_vm15, %v5992_v24, 0 }
 0x10b   : > { %v569_v30 = vadd.f32 %v4918_v29, %v4473_v23  ;;  %v560_v31 = vpop.f32.mrb[11].mxu0 }
 0x10c   : > { %638 = vrot.lane.b32.xlu1 %v603_v19, %s5767_s29  ;;  %v561_v32 = vadd.f32 %v4473_v23, %v560_v31 }
 0x10d   : > { %v5996_v33 = vpack.c.bf16 %v569_v30, %v566_v26 }
 0x10e   : > { %v5998_v34 = vpack.c.bf16 %v561_v32, %v558_v28 }
 0x10f   : > { %v625_v52 = vsel %vm5975_vm15, %v5996_v33, 0  ;;  %v924_v43 = vsel %vm6069_vm1, %v5996_v33, 0  ;;  %v1198_v46 = vsel %vm6164_vm3, %v5996_v33, 0 }
 0x110   : > { %v4921_v35 = vpop.f32.mrb[12].mxu0  ;;  %5367 = vmatprep.subr.msk.bf16.mxu1 %vm5975_vm15, %v5998_v34  ;;  %v624_v36 = vsel %vm5975_vm15, %v5998_v34, 0  ;;  %v923_v8 = vsel %vm6069_vm1, %v5998_v34, 0  ;;  %v1197_v45 = vsel %vm6164_vm3, %v5998_v34, 0 }
 0x111   : > { %v582_v37 = vadd.f32 %v4921_v35, %v4473_v23  ;;  %v573_v38 = vpop.f32.mrb[13].mxu0  ;;  %4940 = vmatpush3.bf16.msra.mxu1 %v624_v36 }
 0x112   : > { %v574_v41 = vadd.f32 %v4473_v23, %v573_v38  ;;  %v4922_v51 = vpop.f32.mrb[14].mxu0  ;;  %5368 = vmatprep.subr.msk.bf16.mxu1 %vm5975_vm15, %v5996_v33 }
 0x113   : > { %v585_v53 = vadd.f32 %v4922_v51, %v4473_v23  ;;  %v576_v54 = vpop.f32.mrb[15].mxu0 }
 0x114   : > { %v577_v55 = vadd.f32 %v4473_v23, %v576_v54 }
 0x115   : > { %v6012_v56 = vpack.c.bf16 %v585_v53, %v582_v37  ;;  %4942 = vmatpush3.bf16.msra.mxu1 %v625_v52 }
 0x116   : > { %v6014_v57 = vpack.c.bf16 %v577_v55, %v574_v41 }
 0x117   : > { %v627_v59 = vsel %vm5975_vm15, %v6012_v56, 0  ;;  %v926_v12 = vsel %vm6069_vm1, %v6012_v56, 0 }
 0x118   : > { %5369 = vmatprep.subr.msk.bf16.mxu1 %vm5975_vm15, %v6014_v57  ;;  %v626_v58 = vsel %vm5975_vm15, %v6014_v57, 0  ;;  %v925_v10 = vsel %vm6069_vm1, %v6014_v57, 0 }
 0x119   : > { %4944 = vmatpush3.bf16.msra.mxu1 %v626_v58 }
 0x11a   : > { %5370 = vmatprep.subr.msk.bf16.mxu1 %vm5975_vm15, %v6012_v56 }
 0x11d   : > { %4946 = vmatpush3.bf16.msra.mxu1 %v627_v59 }
 0x172   : > { %v6028_v60 = vpop.permute.xlu0 %632 }
 0x173   : > { %5363 = vmatprep.subr.msk.bf16.mxu0 %vm407_vm0, %v6028_v60  ;;  %5371 = vmatprep.subr.msk.bf16.mxu1 %vm407_vm0, %v6028_v60  ;;  %v6036_v61 = vsel %vm407_vm0, %v6028_v60, 0 }
 0x174   : > { %4924 = vmatpush3.bf16.xpose.msra.mxu0 %v6036_v61 }
 0x176   : > { %v6039_v62 = vpop.permute.xlu0 %634 }
 0x177   : > { %5364 = vmatprep.subr.msk.bf16.mxu0 %vm407_vm0, %v6039_v62  ;;  %v6045_v63 = vsel %vm407_vm0, %v6039_v62, 0 }
 0x17a   : > { %v6047_v0 = vpop.permute.xlu1 %636 }
 0x17b   : > { %v6054_v1 = vsel %vm407_vm0, %v6047_v0, 0 }
 0x17c   : > { %4926 = vmatpush3.bf16.xpose.msra.mxu0 %v6045_v63 }
 0x17d   : > { %5365 = vmatprep.subr.msk.bf16.mxu0 %vm407_vm0, %v6047_v0 }
 0x17e   : > { %v6056_v2 = vpop.permute.xlu1 %638 }
 0x17f   : > { %v6063_v3 = vsel %vm407_vm0, %v6056_v2, 0 }
 0x184   : > { %4928 = vmatpush3.bf16.xpose.msra.mxu0 %v6054_v1 }
 0x185   : > { %5366 = vmatprep.subr.msk.bf16.mxu0 %vm407_vm0, %v6056_v2 }
 0x18c   : > { %4930 = vmatpush3.bf16.xpose.msra.mxu0 %v6063_v3 }
 0x18d   : > { %5375 = vmatprep.subr.msk.bf16.mxu0 %vm6069_vm1, %v5998_v34 }
 0x193   : > { %4932 = vmatmul.mubr.msk.bf16.vlgmr.msra.gmra.mrb[16].mxu0 %vm407_vm0, %v621_v9 }
 0x194   : > { %4935 = vmatprep.mubr.msk.bf16.mxu0 %vm407_vm0, %v622_v42  ;;  %4972 = vmatpush3.bf16.msra.mxu0 %v923_v8 }
 0x195   : > { %5376 = vmatprep.subr.msk.bf16.mxu0 %vm6069_vm1, %v5996_v33 }
 0x198   : > { %4974 = vmatpush3.bf16.msra.mxu0 %v924_v43 }
 0x199   : > { %5377 = vmatprep.subr.msk.bf16.mxu0 %vm6069_vm1, %v6014_v57 }
 0x19b   : > { %4936 = vmatmul.mubr.msk.bf16.gmra.mrb[20].mxu0 %vm407_vm0, %v623_v11 }
 0x19c   : > { %4976 = vmatpush3.bf16.msra.mxu0 %v925_v10 }
 0x19d   : > { %5378 = vmatprep.subr.msk.bf16.mxu0 %vm6069_vm1, %v6012_v56 }
 0x1a0   : > { %4978 = vmatpush3.bf16.msra.mxu0 %v926_v12 }
 0x1a1   : > { %5379 = vmatprep.subr.msk.bf16.mxu0 %vm407_vm0, %v6028_v60 }
 0x266   : > { %v4933_v13 = vpop.f32.mrb[16].mxu0 }
 0x267   : > { %v698_v14 = vpop.f32.mrb[17].mxu0  ;;  %v736_v19 = vsel %vm729_vm2, %v4933_v13, -inf }
 0x268   : > { %v4934_v15 = vpop.f32.mrb[18].mxu0  ;;  %v730_v16 = vsel %vm729_vm2, %v698_v14, -inf }
 0x269   : > { %731 = vmax.xlane.f32.xlu0 %v730_v16  ;;  %v701_v17 = vpop.f32.mrb[19].mxu0  ;;  %v739_v25 = vsel %vm729_vm2, %v4934_v15, -inf }
 0x26a   : > { %v733_v18 = vsel %vm729_vm2, %v701_v17, -inf }
 0x26b   : > { %734 = vmax.xlane.f32.xlu1 %v733_v18 }
 0x26d   : > { %737 = vmax.xlane.f32.xlu0 %v736_v19 }
 0x26e   : > { %v4937_v20 = vpop.f32.mrb[20].mxu0 }
 0x26f   : > { %v714_v21 = vpop.f32.mrb[21].mxu0  ;;  %v748_v28 = vsel %vm729_vm2, %v4937_v20, -inf }
 0x270   : > { %v4938_v23 = vpop.f32.mrb[22].mxu0  ;;  %v742_v26 = vsel %vm729_vm2, %v714_v21, -inf }
 0x271   : > { %740 = vmax.xlane.f32.xlu0 %v739_v25  ;;  %743 = vmax.xlane.f32.xlu1 %v742_v26  ;;  %v717_v27 = vpop.f32.mrb[23].mxu0  ;;  %v751_v30 = vsel %vm729_vm2, %v4938_v23, -inf }
 0x272   : > { %v745_v29 = vsel %vm729_vm2, %v717_v27, -inf }
 0x275   : > { %749 = vmax.xlane.f32.xlu1 %v748_v28  ;;  %746 = vmax.xlane.f32.xlu0 %v745_v29 }
 0x279   : > { %752 = vmax.xlane.f32.xlu0 %v751_v30  ;;  %v919_v30 = vsel %vm6069_vm1, %v5979_v6, 0 }
 0x2f6   : > { %v732_v31 = vpop.xlane.xlu0 %731 }
 0x2f7   : > { %v754_v32 = vsub.f32 %v698_v14, %v732_v31  ;;  %v7457_v31 = vmov 0 }
 0x2f8   : > { %v735_v35 = vpop.xlane.xlu1 %734  ;;  %v7458_v31 = vsel %vm6164_vm3, 4294967295, %v7457_v31 }
 0x2f9   : > { %v762_v36 = vmul.f32 1.442695, %v754_v32  ;;  %v755_v37 = vsub.f32 %v701_v17, %v735_v35  ;;  %7459 = vst [vmem:[#allocation12_spill] sm:$0xff] %v7458_v31  ;;  %v920_v32 = vsel %vm6069_vm1, %v5973_v4, 0  ;;  %v921_v35 = vsel %vm6069_vm1, %v5992_v24, 0 }
 0x2fa   : > { %v738_v38 = vpop.xlane.xlu0 %737 }
 0x2fb   : > { %v764_v41 = vmul.f32 1.442695, %v755_v37  ;;  %v756_v51 = vsub.f32 %v4933_v13, %v738_v38  ;;  %5484 = vpow2.f32 %v762_v36  ;;  %v922_v36 = vsel %vm6069_vm1, %v5987_v22, 0 }
 0x2fc   : > { %v1199_v37 = vsel %vm6164_vm3, %v6014_v57, 0  ;;  %v1200_v38 = vsel %vm6164_vm3, %v6012_v56, 0 }
 0x2fd   : > { %5486 = vpow2.f32 %v764_v41  ;;  %v766_v52 = vmul.f32 1.442695, %v756_v51 }
 0x2fe   : > { %v741_v53 = vpop.xlane.xlu0 %740  ;;  %v744_v54 = vpop.xlane.xlu1 %743 }
 0x2ff   : > { %v757_v55 = vsub.f32 %v4934_v15, %v741_v53  ;;  %v758_v58 = vsub.f32 %v714_v21, %v744_v54  ;;  %5488 = vpow2.f32 %v766_v52 }
 0x301   : > { %v768_v59 = vmul.f32 1.442695, %v757_v55  ;;  %v770_v42 = vmul.f32 1.442695, %v758_v58 }
 0x302   : > { %v750_v8 = vpop.xlane.xlu1 %749  ;;  %v747_v9 = vpop.xlane.xlu0 %746 }
 0x303   : > { %5490 = vpow2.f32 %v768_v59  ;;  %v760_v43 = vsub.f32 %v4937_v20, %v750_v8  ;;  %v759_v10 = vsub.f32 %v717_v27, %v747_v9 }
 0x304   : > { %5492 = vpow2.f32 %v770_v42 }
 0x305   : > { %v772_v11 = vmul.f32 1.442695, %v759_v10  ;;  %v6119_v12 = vpop.eup %5484  ;;  %v774_v14 = vmul.f32 1.442695, %v760_v43 }
 0x306   : > { %v753_v13 = vpop.xlane.xlu0 %752 }
 0x307   : > { %v6121_v16 = vpop.eup %5486  ;;  %v761_v17 = vsub.f32 %v4938_v23, %v753_v13  ;;  %5494 = vpow2.f32 %v772_v11 }
 0x308   : > { %v810_v15 = vpack.c.bf16 %v6121_v16, %v6119_v12  ;;  %5496 = vpow2.f32 %v774_v14 }
 0x309   : > { %v776_v18 = vmul.f32 1.442695, %v761_v17  ;;  %v6126_v19 = vpop.eup %5488 }
 0x30a   : > { %4947 = vmatprep.mubr.msk.bf16.mxu1 %vm729_vm2, %v810_v15 }
 0x30b   : > { %5498 = vpow2.f32 %v776_v18 }
 0x30d   : > { %v6128_v20 = vpop.eup %5490 }
 0x30e   : > { %v811_v21 = vpack.c.bf16 %v6128_v20, %v6126_v19  ;;  %v6133_v25 = vpop.eup %5492 }
 0x310   : > { %4948 = vmatmul.mubr.msk.bf16.vlgmr.msra.gmra.mrb[0].mxu1 %vm729_vm2, %v811_v21 }
 0x311   : > { %4956 = vmatpush3.bf16.xpose.msra.mxu1 %v6036_v61  ;;  %v6136_v23 = vpop.eup %5494 }
 0x312   : > { %5372 = vmatprep.subr.msk.bf16.mxu1 %vm407_vm0, %v6039_v62  ;;  %v812_v26 = vpack.c.bf16 %v6136_v23, %v6133_v25  ;;  %v6142_v27 = vpop.eup %5496 }
 0x314   : > { %4951 = vmatprep.mubr.msk.bf16.mxu1 %vm729_vm2, %v812_v26 }
 0x315   : > { %v6144_v28 = vpop.eup %5498 }
 0x316   : > { %v813_v29 = vpack.c.bf16 %v6144_v28, %v6142_v27 }
 0x318   : > { %4952 = vmatmul.mubr.msk.bf16.gmra.mrb[4].mxu1 %vm729_vm2, %v813_v29 }
 0x319   : > { %4958 = vmatpush3.bf16.xpose.msra.mxu1 %v6045_v63  ;;  %4963 = vmatprep.mubr.msk.bf16.mxu1 %vm407_vm0, %v919_v30 }
 0x31a   : > { %5373 = vmatprep.subr.msk.bf16.mxu1 %vm407_vm0, %v6047_v0 }
 0x321   : > { %4960 = vmatpush3.bf16.xpose.msra.mxu1 %v6054_v1 }
 0x322   : > { %5374 = vmatprep.subr.msk.bf16.mxu1 %vm407_vm0, %v6056_v2 }
 0x329   : > { %4962 = vmatpush3.bf16.xpose.msra.mxu1 %v6063_v3 }
 0x32a   : > { %5383 = vmatprep.subr.msk.bf16.mxu1 %vm6164_vm3, %v5998_v34 }
 0x330   : > { %4964 = vmatmul.mubr.msk.bf16.vlgmr.msra.gmra.mrb[8].mxu1 %vm407_vm0, %v920_v32 }
 0x331   : > { %4967 = vmatprep.mubr.msk.bf16.mxu1 %vm407_vm0, %v921_v35  ;;  %5004 = vmatpush3.bf16.msra.mxu1 %v1197_v45 }
 0x332   : > { %5384 = vmatprep.subr.msk.bf16.mxu1 %vm6164_vm3, %v5996_v33 }
 0x335   : > { %5006 = vmatpush3.bf16.msra.mxu1 %v1198_v46 }
 0x336   : > { %5385 = vmatprep.subr.msk.bf16.mxu1 %vm6164_vm3, %v6014_v57 }
 0x338   : > { %4968 = vmatmul.mubr.msk.bf16.gmra.mrb[12].mxu1 %vm407_vm0, %v922_v36 }
 0x339   : > { %5008 = vmatpush3.bf16.msra.mxu1 %v1199_v37 }
 0x33a   : > { %5386 = vmatprep.subr.msk.bf16.mxu1 %vm6164_vm3, %v6012_v56 }
 0x33d   : > { %5010 = vmatpush3.bf16.msra.mxu1 %v1200_v38 }
 0x33e   : > { %5387 = vmatprep.subr.msk.bf16.mxu1 %vm407_vm0, %v6028_v60 }
 0x3e3   : > { %v6206_v41 = vpop.f32.mrb[0].mxu1 }
 0x3e4   : > { %v6208_v51 = vpop.f32.mrb[1].mxu1 }
 0x3e5   : > { %v6210_v52 = vpop.f32.mrb[2].mxu1 }
 0x3e6   : > { %v6212_v53 = vpop.f32.mrb[3].mxu1 }
 0x3eb   : > { %v6214_v54 = vpop.f32.mrb[4].mxu1 }
 0x3ec   : > { %7460 = vst [vmem:[#allocation13_spill] sm:$0xff] %v6214_v54  ;;  %v6216_v55 = vpop.f32.mrb[5].mxu1 }
 0x3ed   : > { %v6218_v58 = vpop.f32.mrb[6].mxu1 }
 0x3ee   : > { %7461 = vst [vmem:[#allocation14_spill] sm:$0xff] %v6218_v58  ;;  %v6220_v59 = vpop.f32.mrb[7].mxu1 }
 0x403   : > { %v4965_v8 = vpop.f32.mrb[8].mxu1 }
 0x404   : > { %v973_v9 = vpop.f32.mrb[9].mxu1  ;;  %v1010_v11 = vsel %vm729_vm2, %v4965_v8, -inf }
 0x405   : > { %v4966_v42 = vpop.f32.mrb[10].mxu1  ;;  %v1004_v60 = vsel %vm729_vm2, %v973_v9, -inf }
 0x406   : > { %1005 = vmax.xlane.f32.xlu1 %v1004_v60  ;;  %v976_v43 = vpop.f32.mrb[11].mxu1  ;;  %v1013_v13 = vsel %vm729_vm2, %v4966_v42, -inf }
 0x407   : > { %v1007_v10 = vsel %vm729_vm2, %v976_v43, -inf }
 0x408   : > { %1008 = vmax.xlane.f32.xlu0 %v1007_v10 }
 0x40a   : > { %1011 = vmax.xlane.f32.xlu1 %v1010_v11 }
 0x40b   : > { %v4969_v14 = vpop.f32.mrb[12].mxu1 }
 0x40c   : > { %1014 = vmax.xlane.f32.xlu0 %v1013_v13  ;;  %v989_v17 = vpop.f32.mrb[13].mxu1  ;;  %v1022_v29 = vsel %vm729_vm2, %v4969_v14, -inf }
 0x40d   : > { %v4970_v15 = vpop.f32.mrb[14].mxu1  ;;  %v1016_v18 = vsel %vm729_vm2, %v989_v17, -inf }
 0x40e   : > { %1017 = vmax.xlane.f32.xlu1 %v1016_v18  ;;  %v992_v21 = vpop.f32.mrb[15].mxu1  ;;  %v1025_v30 = vsel %vm729_vm2, %v4970_v15, -inf }
 0x40f   : > { %v1019_v26 = vsel %vm729_vm2, %v992_v21, -inf }
 0x410   : > { %1020 = vmax.xlane.f32.xlu0 %v1019_v26 }
 0x412   : > { %1023 = vmax.xlane.f32.xlu1 %v1022_v29 }
 0x414   : > { %1026 = vmax.xlane.f32.xlu0 %v1025_v30 }
 0x493   : > { %v1006_v32 = vpop.xlane.xlu1 %1005 }
 0x494   : > { %v1028_v35 = vsub.f32 %v973_v9, %v1006_v32 }
 0x495   : > { %v1009_v45 = vpop.xlane.xlu0 %1008 }
 0x496   : > { %v1036_v46 = vmul.f32 1.442695, %v1028_v35  ;;  %v1029_v36 = vsub.f32 %v976_v43, %v1009_v45 }
 0x497   : > { %v1012_v37 = vpop.xlane.xlu1 %1011 }
 0x498   : > { %v1038_v38 = vmul.f32 1.442695, %v1029_v36  ;;  %v1030_v60 = vsub.f32 %v4965_v8, %v1012_v37  ;;  %5500 = vpow2.f32 %v1036_v46 }
 0x499   : > { %v1015_v10 = vpop.xlane.xlu0 %1014 }
 0x49a   : > { %5502 = vpow2.f32 %v1038_v38  ;;  %v1040_v11 = vmul.f32 1.442695, %v1030_v60  ;;  %v1031_v13 = vsub.f32 %v4966_v42, %v1015_v10 }
 0x49b   : > { %v1018_v18 = vpop.xlane.xlu1 %1017 }
 0x49c   : > { %v1042_v26 = vmul.f32 1.442695, %v1031_v13  ;;  %v1032_v49 = vsub.f32 %v989_v17, %v1018_v18  ;;  %5504 = vpow2.f32 %v1040_v11  ;;  %v1193_v11 = vsel %vm6164_vm3, %v5979_v6, 0 }
 0x49d   : > { %v1021_v29 = vpop.xlane.xlu0 %1020  ;;  %v7462_v13 = vrot.slane %v5959_v48, %v5931_v39 }
 0x49e   : > { %5506 = vpow2.f32 %v1042_v26  ;;  %v1044_v30 = vmul.f32 1.442695, %v1032_v49  ;;  %v1033_v7 = vsub.f32 %v992_v21, %v1021_v29  ;;  %v1194_v26 = vsel %vm6164_vm3, %v5973_v4, 0 }
 0x49f   : > { %v1024_v9 = vpop.xlane.xlu1 %1023  ;;  %vm6275_vm4 = vcmp.ne.s16.totalorder %v7462_v13, 0  ;;  %v1195_v29 = vsel %vm6164_vm3, %v5992_v24, 0 }
 0x4a0   : > { %v1046_v32 = vmul.f32 1.442695, %v1033_v7  ;;  %v1034_v35 = vsub.f32 %v4969_v14, %v1024_v9  ;;  %5508 = vpow2.f32 %v1044_v30  ;;  %v1471_v39 = vsel %vm6275_vm4, %v5998_v34, 0 }
 0x4a1   : > { %v1027_v43 = vpop.xlane.xlu0 %1026  ;;  %v1472_v48 = vsel %vm6275_vm4, %v5996_v33, 0  ;;  %v1473_v30 = vsel %vm6275_vm4, %v6014_v57, 0 }
 0x4a2   : > { %5510 = vpow2.f32 %v1046_v32  ;;  %v1048_v8 = vmul.f32 1.442695, %v1034_v35  ;;  %v1035_v45 = vsub.f32 %v4970_v15, %v1027_v43  ;;  %v6230_v46 = vpop.eup %5500 }
 0x4a4   : > { %v6232_v36 = vpop.eup %5502  ;;  %v1050_v42 = vmul.f32 1.442695, %v1035_v45  ;;  %5512 = vpow2.f32 %v1048_v8 }
 0x4a5   : > { %v1084_v17 = vpack.c.bf16 %v6232_v36, %v6230_v46 }
 0x4a6   : > { %5514 = vpow2.f32 %v1050_v42  ;;  %v6236_v49 = vpop.eup %5504 }
 0x4a7   : > { %4979 = vmatprep.mubr.msk.bf16.mxu0 %vm729_vm2, %v1084_v17 }
 0x4a8   : > { %v6239_v7 = vpop.eup %5506 }
 0x4a9   : > { %v1085_v14 = vpack.c.bf16 %v6239_v7, %v6236_v49 }
 0x4aa   : > { %v6243_v15 = vpop.eup %5508 }
 0x4ab   : > { %4980 = vmatmul.mubr.msk.bf16.vlgmr.msra.gmra.mrb[24].mxu0 %vm729_vm2, %v1085_v14 }
 0x4ac   : > { %v6246_v21 = vpop.eup %5510  ;;  %4988 = vmatpush3.bf16.xpose.msra.mxu0 %v6036_v61 }
 0x4ad   : > { %5380 = vmatprep.subr.msk.bf16.mxu0 %vm407_vm0, %v6039_v62  ;;  %v1086_v37 = vpack.c.bf16 %v6246_v21, %v6243_v15 }
 0x4ae   : > { %v6253_v38 = vpop.eup %5512 }
 0x4af   : > { %4983 = vmatprep.mubr.msk.bf16.mxu0 %vm729_vm2, %v1086_v37 }
 0x4b0   : > { %v6256_v60 = vpop.eup %5514 }
 0x4b1   : > { %v1087_v10 = vpack.c.bf16 %v6256_v60, %v6253_v38 }
 0x4b3   : > { %4984 = vmatmul.mubr.msk.bf16.gmra.mrb[28].mxu0 %vm729_vm2, %v1087_v10 }
 0x4b4   : > { %4990 = vmatpush3.bf16.xpose.msra.mxu0 %v6045_v63  ;;  %4995 = vmatprep.mubr.msk.bf16.mxu0 %vm407_vm0, %v1193_v11 }
 0x4b5   : > { %5381 = vmatprep.subr.msk.bf16.mxu0 %vm407_vm0, %v6047_v0 }
 0x4bc   : > { %4992 = vmatpush3.bf16.xpose.msra.mxu0 %v6054_v1 }
 0x4bd   : > { %5382 = vmatprep.subr.msk.bf16.mxu0 %vm407_vm0, %v6056_v2 }
 0x4c4   : > { %4994 = vmatpush3.bf16.xpose.msra.mxu0 %v6063_v3 }
 0x4c5   : > { %5391 = vmatprep.subr.msk.bf16.mxu0 %vm6275_vm4, %v5998_v34  ;;  %v1196_v34 = vsel %vm6164_vm3, %v5987_v22, 0 }
 0x4cb   : > { %4996 = vmatmul.mubr.msk.bf16.vlgmr.msra.gmra.mrb[32].mxu0 %vm407_vm0, %v1194_v26 }
 0x4cc   : > { %4999 = vmatprep.mubr.msk.bf16.mxu0 %vm407_vm0, %v1195_v29  ;;  %5036 = vmatpush3.bf16.msra.mxu0 %v1471_v39 }
 0x4cd   : > { %5392 = vmatprep.subr.msk.bf16.mxu0 %vm6275_vm4, %v5996_v33  ;;  %v1474_v33 = vsel %vm6275_vm4, %v6012_v56, 0 }
 0x4d0   : > { %5038 = vmatpush3.bf16.msra.mxu0 %v1472_v48 }
 0x4d1   : > { %5393 = vmatprep.subr.msk.bf16.mxu0 %vm6275_vm4, %v6014_v57 }
 0x4d3   : > { %5000 = vmatmul.mubr.msk.bf16.gmra.mrb[36].mxu0 %vm407_vm0, %v1196_v34 }
 0x4d4   : > { %5040 = vmatpush3.bf16.msra.mxu0 %v1473_v30 }
 0x4d5   : > { %5394 = vmatprep.subr.msk.bf16.mxu0 %vm6275_vm4, %v6012_v56 }
 0x4d8   : > { %5042 = vmatpush3.bf16.msra.mxu0 %v1474_v33 }
 0x57e   : > { %v6315_v9 = vpop.f32.mrb[24].mxu0 }
 0x57f   : > { %v6317_v32 = vpop.f32.mrb[25].mxu0 }
 0x580   : > { %v6319_v35 = vpop.f32.mrb[26].mxu0 }
 0x581   : > { %v6321_v43 = vpop.f32.mrb[27].mxu0 }
 0x586   : > { %v6323_v8 = vpop.f32.mrb[28].mxu0 }
 0x587   : > { %7465 = vst [vmem:[#allocation15_spill] sm:$0xff] %v6323_v8  ;;  %v6325_v57 = vpop.f32.mrb[29].mxu0 }
 0x588   : > { %v6327_v45 = vpop.f32.mrb[30].mxu0 }
 0x589   : > { %7466 = vst [vmem:[#allocation16_spill] sm:$0xff] %v6327_v45  ;;  %v6329_v42 = vpop.f32.mrb[31].mxu0 }
 0x58a   : > { %7467 = vst [vmem:[#allocation17_spill] sm:$0xff] %v6329_v42 }
 0x59e   : > { %v4997_v17 = vpop.f32.mrb[32].mxu0 }
 0x59f   : > { %v1247_v14 = vpop.f32.mrb[33].mxu0  ;;  %v1284_v13 = vsel %vm729_vm2, %v4997_v17, -inf }
 0x5a0   : > { %v4998_v56 = vpop.f32.mrb[34].mxu0  ;;  %v1278_v37 = vsel %vm729_vm2, %v1247_v14, -inf }
 0x5a1   : > { %1279 = vmax.xlane.f32.xlu1 %v1278_v37  ;;  %v1250_v10 = vpop.f32.mrb[35].mxu0  ;;  %v1287_v29 = vsel %vm729_vm2, %v4998_v56, -inf }
 0x5a2   : > { %v1281_v11 = vsel %vm729_vm2, %v1250_v10, -inf }
 0x5a3   : > { %1282 = vmax.xlane.f32.xlu0 %v1281_v11 }
 0x5a5   : > { %1285 = vmax.xlane.f32.xlu1 %v1284_v13 }
 0x5a6   : > { %v5001_v26 = vpop.f32.mrb[36].mxu0 }
 0x5a7   : > { %1288 = vmax.xlane.f32.xlu0 %v1287_v29  ;;  %v1263_v39 = vpop.f32.mrb[37].mxu0  ;;  %v1296_v37 = vsel %vm729_vm2, %v5001_v26, -inf }
 0x5a8   : > { %v5002_v48 = vpop.f32.mrb[38].mxu0  ;;  %v1290_v34 = vsel %vm729_vm2, %v1263_v39, -inf }
 0x5a9   : > { %1291 = vmax.xlane.f32.xlu1 %v1290_v34  ;;  %v1266_v30 = vpop.f32.mrb[39].mxu0  ;;  %v1299_v11 = vsel %vm729_vm2, %v5002_v48, -inf }
 0x5aa   : > { %v1293_v33 = vsel %vm729_vm2, %v1266_v30, -inf }
 0x5ab   : > { %1294 = vmax.xlane.f32.xlu0 %v1293_v33 }
 0x5ad   : > { %1297 = vmax.xlane.f32.xlu1 %v1296_v37 }
 0x5af   : > { %1300 = vmax.xlane.f32.xlu0 %v1299_v11 }
 0x62e   : > { %v1280_v13 = vpop.xlane.xlu1 %1279 }
 0x62f   : > { %v1302_v31 = vsub.f32 %v1247_v14, %v1280_v13 }
 0x630   : > { %v1283_v5 = vpop.xlane.xlu0 %1282 }
 0x631   : > { %v1310_v47 = vmul.f32 1.442695, %v1302_v31  ;;  %v1303_v29 = vsub.f32 %v1250_v10, %v1283_v5 }
 0x632   : > { %v1286_v44 = vpop.xlane.xlu1 %1285 }
 0x633   : > { %v1312_v40 = vmul.f32 1.442695, %v1303_v29  ;;  %v1304_v50 = vsub.f32 %v4997_v17, %v1286_v44  ;;  %5516 = vpow2.f32 %v1310_v47 }
 0x634   : > { %v1289_v34 = vpop.xlane.xlu0 %1288 }
 0x635   : > { %5518 = vpow2.f32 %v1312_v40  ;;  %v1314_v45 = vmul.f32 1.442695, %v1304_v50  ;;  %v1305_v58 = vsub.f32 %v4998_v56, %v1289_v34 }
 0x636   : > { %v1292_v33 = vpop.xlane.xlu1 %1291 }
 0x637   : > { %v1316_v8 = vmul.f32 1.442695, %v1305_v58  ;;  %v1306_v54 = vsub.f32 %v1263_v39, %v1292_v33  ;;  %5520 = vpow2.f32 %v1314_v45 }
 0x638   : > { %v1295_v37 = vpop.xlane.xlu0 %1294 }
 0x639   : > { %5522 = vpow2.f32 %v1316_v8  ;;  %v1318_v11 = vmul.f32 1.442695, %v1306_v54  ;;  %v1307_v42 = vsub.f32 %v1266_v30, %v1295_v37 }
 0x63a   : > { %v1298_v14 = vpop.xlane.xlu1 %1297 }
 0x63b   : > { %v1320_v13 = vmul.f32 1.442695, %v1307_v42  ;;  %v1308_v31 = vsub.f32 %v5001_v26, %v1298_v14  ;;  %5524 = vpow2.f32 %v1318_v11 }
 0x63c   : > { %v1301_v5 = vpop.xlane.xlu0 %1300 }
 0x63d   : > { %5526 = vpow2.f32 %v1320_v13  ;;  %v1322_v44 = vmul.f32 1.442695, %v1308_v31  ;;  %v1309_v47 = vsub.f32 %v5002_v48, %v1301_v5  ;;  %v6339_v17 = vpop.eup %5516 }
 0x63f   : > { %v6341_v40 = vpop.eup %5518  ;;  %v1324_v50 = vmul.f32 1.442695, %v1309_v47  ;;  %5528 = vpow2.f32 %v1322_v44 }
 0x640   : > { %v1358_v58 = vpack.c.bf16 %v6341_v40, %v6339_v17 }
 0x641   : > { %5530 = vpow2.f32 %v1324_v50  ;;  %v6345_v54 = vpop.eup %5520 }
 0x642   : > { %5011 = vmatprep.mubr.msk.bf16.mxu1 %vm729_vm2, %v1358_v58 }
 0x643   : > { %v6348_v8 = vpop.eup %5522 }
 0x644   : > { %v1359_v45 = vpack.c.bf16 %v6348_v8, %v6345_v54 }
 0x645   : > { %v6352_v42 = vpop.eup %5524 }
 0x646   : > { %5012 = vmatmul.mubr.msk.bf16.vlgmr.msra.gmra.mrb[16].mxu1 %vm729_vm2, %v1359_v45 }
 0x647   : > { %v6355_v56 = vpop.eup %5526  ;;  %5020 = vmatpush3.bf16.xpose.msra.mxu1 %v6036_v61  ;;  %v1467_v61 = vsel %vm6275_vm4, %v5979_v6, 0  ;;  %v1469_v6 = vsel %vm6275_vm4, %v5992_v24, 0 }
 0x648   : > { %5388 = vmatprep.subr.msk.bf16.mxu1 %vm407_vm0, %v6039_v62  ;;  %v1360_v10 = vpack.c.bf16 %v6355_v56, %v6352_v42  ;;  %v1468_v62 = vsel %vm6275_vm4, %v5973_v4, 0 }
 0x649   : > { %v6362_v26 = vpop.eup %5528 }
 0x64a   : > { %5015 = vmatprep.mubr.msk.bf16.mxu1 %vm729_vm2, %v1360_v10 }
 0x64b   : > { %v6365_v39 = vpop.eup %5530 }
 0x64c   : > { %v1361_v48 = vpack.c.bf16 %v6365_v39, %v6362_v26 }
 0x64e   : > { %5016 = vmatmul.mubr.msk.bf16.gmra.mrb[20].mxu1 %vm729_vm2, %v1361_v48 }
 0x64f   : > { %5022 = vmatpush3.bf16.xpose.msra.mxu1 %v6045_v63  ;;  %5027 = vmatprep.mubr.msk.bf16.mxu1 %vm407_vm0, %v1467_v61  ;;  %v1470_v63 = vsel %vm6275_vm4, %v5987_v22, 0  ;;  %v778_v61 = vsel %vm729_vm2, %v6119_v12, 0.0  ;;  %v787_v12 = vsel %vm729_vm2, %v6128_v20, 0.0  ;;  %v1332_v20 = vsel %vm729_vm2, %v6345_v54, 0.0 }
 0x650   : > { %5389 = vmatprep.subr.msk.bf16.mxu1 %vm407_vm0, %v6047_v0  ;;  %v1067_v54 = vsel %vm729_vm2, %v6246_v21, 0.0  ;;  %v1338_v21 = vsel %vm729_vm2, %v6352_v42, 0.0 }
 0x657   : > { %5024 = vmatpush3.bf16.xpose.msra.mxu1 %v6054_v1 }
 0x658   : > { %5390 = vmatprep.subr.msk.bf16.mxu1 %vm407_vm0, %v6056_v2 }
 0x65f   : > { %5026 = vmatpush3.bf16.xpose.msra.mxu1 %v6063_v3 }
 0x666   : > { %5028 = vmatmul.mubr.msk.bf16.vlgmr.msra.gmra.mrb[24].mxu1 %vm407_vm0, %v1468_v62  ;;  %v781_v62 = vsel %vm729_vm2, %v6121_v16, 0.0  ;;  %v1058_v16 = vsel %vm729_vm2, %v6236_v49, 0.0  ;;  %v1335_v49 = vsel %vm729_vm2, %v6348_v8, 0.0  ;;  %v796_v8 = vsel %vm729_vm2, %v6142_v27, 0.0 }
 0x667   : > { %5031 = vmatprep.mubr.msk.bf16.mxu1 %vm407_vm0, %v1469_v6  ;;  %v1052_v6 = vsel %vm729_vm2, %v6230_v46, 0.0  ;;  %v1061_v46 = vsel %vm729_vm2, %v6239_v7, 0.0  ;;  %v790_v7 = vsel %vm729_vm2, %v6133_v25, 0.0  ;;  %v799_v25 = vsel %vm729_vm2, %v6144_v28, 0.0 }
 0x668   : > { %v1341_v27 = vsel %vm729_vm2, %v6355_v56, 0.0 }
 0x66e   : > { %5032 = vmatmul.mubr.msk.bf16.gmra.mrb[28].mxu1 %vm407_vm0, %v1470_v63  ;;  %v1055_v63 = vsel %vm729_vm2, %v6232_v36, 0.0  ;;  %v1326_v36 = vsel %vm729_vm2, %v6339_v17, 0.0  ;;  %v793_v17 = vsel %vm729_vm2, %v6136_v23, 0.0  ;;  %v1070_v23 = vsel %vm729_vm2, %v6253_v38, 0.0 }
 0x719   : > { %v6393_v0 = vpop.f32.mrb[16].mxu1 }
 0x71a   : > { %v6395_v1 = vpop.f32.mrb[17].mxu1 }
 0x71b   : > { %v6397_v2 = vpop.f32.mrb[18].mxu1 }
 0x71c   : > { %v6399_v4 = vpop.f32.mrb[19].mxu1 }
 0x721   : > { %v6401_v3 = vpop.f32.mrb[20].mxu1 }
 0x722   : > { %v6403_v30 = vpop.f32.mrb[21].mxu1 }
 0x723   : > { %v6405_v24 = vpop.f32.mrb[22].mxu1 }
 0x724   : > { %v6407_v29 = vpop.f32.mrb[23].mxu1 }
 0x739   : > { %v6409_v34 = vpop.f32.mrb[24].mxu1 }
 0x73a   : > { %v6411_v22 = vpop.f32.mrb[25].mxu1  ;;  %v1558_v13 = vsel %vm729_vm2, %v6409_v34, -inf }
 0x73b   : > { %v6413_v33 = vpop.f32.mrb[26].mxu1  ;;  %v1552_v37 = vsel %vm729_vm2, %v6411_v22, -inf }
 0x73c   : > { %1553 = vmax.xlane.f32.xlu1 %v1552_v37  ;;  %v6417_v11 = vpop.f32.mrb[27].mxu1  ;;  %v1561_v5 = vsel %vm729_vm2, %v6413_v33, -inf  ;;  %v784_v37 = vsel %vm729_vm2, %v6126_v19, 0.0  ;;  %v1329_v19 = vsel %vm729_vm2, %v6341_v40, 0.0  ;;  %v1064_v40 = vsel %vm729_vm2, %v6243_v15, 0.0 }
 0x73d   : > { %v1555_v14 = vsel %vm729_vm2, %v6417_v11, -inf  ;;  %v1073_v15 = vsel %vm729_vm2, %v6256_v60, 0.0 }
 0x73e   : > { %1556 = vmax.xlane.f32.xlu0 %v1555_v14 }
 0x740   : > { %1559 = vmax.xlane.f32.xlu1 %v1558_v13 }
 0x741   : > { %v6423_v31 = vpop.f32.mrb[28].mxu1 }
 0x742   : > { %1562 = vmax.xlane.f32.xlu0 %v1561_v5  ;;  %v6427_v44 = vpop.f32.mrb[29].mxu1  ;;  %v1570_v10 = vsel %vm729_vm2, %v6423_v31, -inf }
 0x743   : > { %v6429_v47 = vpop.f32.mrb[30].mxu1  ;;  %v1564_v50 = vsel %vm729_vm2, %v6427_v44, -inf }
 0x744   : > { %1565 = vmax.xlane.f32.xlu1 %v1564_v50  ;;  %v6433_v58 = vpop.f32.mrb[31].mxu1  ;;  %v1573_v48 = vsel %vm729_vm2, %v6429_v47, -inf }
 0x745   : > { %v1567_v45 = vsel %vm729_vm2, %v6433_v58, -inf }
 0x746   : > { %1568 = vmax.xlane.f32.xlu0 %v1567_v45 }
 0x748   : > { %1571 = vmax.xlane.f32.xlu1 %v1570_v10 }
 0x74a   : > { %1574 = vmax.xlane.f32.xlu0 %v1573_v48 }
 0x74c   : > { %779 = vadd.xlane.f32.xlu1 %v778_v61 }
 0x74e   : > { %782 = vadd.xlane.f32.xlu0 %v781_v62 }
 0x750   : > { %1053 = vadd.xlane.f32.xlu1 %v1052_v6 }
 0x752   : > { %1056 = vadd.xlane.f32.xlu0 %v1055_v63 }
 0x754   : > { %785 = vadd.xlane.f32.xlu1 %v784_v37 }
 0x756   : > { %788 = vadd.xlane.f32.xlu0 %v787_v12 }
 0x758   : > { %1059 = vadd.xlane.f32.xlu1 %v1058_v16 }
 0x75a   : > { %1062 = vadd.xlane.f32.xlu0 %v1061_v46 }
 0x75c   : > { %1327 = vadd.xlane.f32.xlu1 %v1326_v36 }
 0x75e   : > { %1330 = vadd.xlane.f32.xlu0 %v1329_v19 }
 0x760   : > { %1333 = vadd.xlane.f32.xlu1 %v1332_v20 }
 0x762   : > { %1336 = vadd.xlane.f32.xlu0 %v1335_v49 }
 0x764   : > { %791 = vadd.xlane.f32.xlu1 %v790_v7 }
 0x766   : > { %794 = vadd.xlane.f32.xlu0 %v793_v17 }
 0x768   : > { %1065 = vadd.xlane.f32.xlu1 %v1064_v40 }
 0x76a   : > { %1068 = vadd.xlane.f32.xlu0 %v1067_v54 }
 0x76c   : > { %797 = vadd.xlane.f32.xlu1 %v796_v8 }
 0x76e   : > { %800 = vadd.xlane.f32.xlu0 %v799_v25 }
 0x770   : > { %1071 = vadd.xlane.f32.xlu1 %v1070_v23 }
 0x772   : > { %1074 = vadd.xlane.f32.xlu0 %v1073_v15 }
 0x774   : > { %1339 = vadd.xlane.f32.xlu1 %v1338_v21 }
 0x776   : > { %1342 = vadd.xlane.f32.xlu0 %v1341_v27 }
 0x7c9   : > { %v1554_v14 = vpop.xlane.xlu1 %1553 }
 0x7ca   : > { %v1576_v28 = vsub.f32 %v6411_v22, %v1554_v14 }
 0x7cb   : > { %v1557_v13 = vpop.xlane.xlu0 %1556 }
 0x7cc   : > { %v1584_v5 = vmul.f32 1.442695, %v1576_v28  ;;  %v1577_v38 = vsub.f32 %v6417_v11, %v1557_v13 }
 0x7cd   : > { %v1560_v50 = vpop.xlane.xlu1 %1559 }
 0x7ce   : > { %v1586_v45 = vmul.f32 1.442695, %v1577_v38  ;;  %v1578_v60 = vsub.f32 %v6409_v34, %v1560_v50  ;;  %5532 = vpow2.f32 %v1584_v5  ;;  %v1344_v38 = vsel %vm729_vm2, %v6362_v26, 0.0 }
 0x7cf   : > { %v1563_v10 = vpop.xlane.xlu0 %1562 }
 0x7d0   : > { %5534 = vpow2.f32 %v1586_v45  ;;  %v1588_v42 = vmul.f32 1.442695, %v1578_v60  ;;  %v1579_v48 = vsub.f32 %v6413_v33, %v1563_v10  ;;  %v1347_v10 = vsel %vm729_vm2, %v6365_v39, 0.0 }
 0x7d1   : > { %v1566_v61 = vpop.xlane.xlu1 %1565 }
 0x7d2   : > { %5536 = vpow2.f32 %v1588_v42  ;;  %v1590_v56 = vmul.f32 1.442695, %v1579_v48  ;;  %v1580_v62 = vsub.f32 %v6427_v44, %v1566_v61 }
 0x7d3   : > { %v1569_v22 = vpop.xlane.xlu0 %1568 }
 0x7d4   : > { %5538 = vpow2.f32 %v1590_v56  ;;  %v1592_v6 = vmul.f32 1.442695, %v1580_v62  ;;  %v1581_v11 = vsub.f32 %v6433_v58, %v1569_v22 }
 0x7d5   : > { %v1572_v63 = vpop.xlane.xlu1 %1571 }
 0x7d6   : > { %v1594_v37 = vmul.f32 1.442695, %v1581_v11  ;;  %v1582_v34 = vsub.f32 %v6423_v31, %v1572_v63  ;;  %5540 = vpow2.f32 %v1592_v6 }
 0x7d7   : > { %v1575_v12 = vpop.xlane.xlu0 %1574 }
 0x7d8   : > { %5542 = vpow2.f32 %v1594_v37  ;;  %v1596_v16 = vmul.f32 1.442695, %v1582_v34  ;;  %v1583_v33 = vsub.f32 %v6429_v47, %v1575_v12  ;;  %v5533_v46 = vpop.eup %5532 }
 0x7d9   : > { %v780_v36 = vpop.xlane.xlu1 %779  ;;  %v1600_v23 = vsel %vm729_vm2, %v5533_v46, 0.0 }
 0x7da   : > { %v5535_v19 = vpop.eup %5534  ;;  %5544 = vpow2.f32 %v1596_v16  ;;  %v1598_v44 = vmul.f32 1.442695, %v1583_v33 }
 0x7db   : > { %5546 = vrcp.f32 %v780_v36  ;;  %v783_v20 = vpop.xlane.xlu0 %782  ;;  %v1632_v49 = vpack.c.bf16 %v5535_v19, %v5533_v46  ;;  %v1603_v27 = vsel %vm729_vm2, %v5535_v19, 0.0 }
 0x7dc   : > { %v5537_v7 = vpop.eup %5536  ;;  %5548 = vpow2.f32 %v1598_v44 }
 0x7dd   : > { %5550 = vrcp.f32 %v783_v20  ;;  %5043 = vmatprep.mubr.msk.bf16.mxu0 %vm729_vm2, %v1632_v49  ;;  %v1054_v31 = vpop.xlane.xlu1 %1053  ;;  %v1606_v58 = vsel %vm729_vm2, %v5537_v7, 0.0 }
 0x7de   : > { %v5539_v17 = vpop.eup %5538  ;;  %5552 = vrcp.f32 %v1054_v31  ;;  %1607 = vadd.xlane.f32.xlu1 %v1606_v58 }
 0x7df   : > { %v1633_v47 = vpack.c.bf16 %v5539_v17, %v5537_v7  ;;  %v1057_v40 = vpop.xlane.xlu0 %1056  ;;  %v1609_v54 = vsel %vm729_vm2, %v5539_v17, 0.0 }
 0x7e0   : > { %5554 = vrcp.f32 %v1057_v40  ;;  %1610 = vadd.xlane.f32.xlu0 %v1609_v54  ;;  %v5541_v8 = vpop.eup %5540 }
 0x7e1   : > { %5044 = vmatmul.mubr.msk.bf16.vlgmr.msra.gmra.mrb[40].mxu0 %vm729_vm2, %v1633_v47  ;;  %v786_v25 = vpop.xlane.xlu1 %785  ;;  %v1612_v56 = vsel %vm729_vm2, %v5541_v8, 0.0 }
 0x7e2   : > { %v5543_v15 = vpop.eup %5542  ;;  %1601 = vadd.xlane.f32.xlu1 %v1600_v23  ;;  %5556 = vrcp.f32 %v786_v25 }
 0x7e3   : > { %v789_v21 = vpop.xlane.xlu0 %788  ;;  %v1634_v14 = vpack.c.bf16 %v5543_v15, %v5541_v8  ;;  %v1615_v11 = vsel %vm729_vm2, %v5543_v15, 0.0 }
 0x7e4   : > { %v5545_v28 = vpop.eup %5544  ;;  %1604 = vadd.xlane.f32.xlu0 %v1603_v27  ;;  %5558 = vrcp.f32 %v789_v21 }
 0x7e5   : > { %v5547_v13 = vpop.eup %5546  ;;  %v1060_v5 = vpop.xlane.xlu1 %1059  ;;  %5047 = vmatprep.mubr.msk.bf16.mxu0 %vm729_vm2, %v1634_v14  ;;  %v1618_v12 = vsel %vm729_vm2, %v5545_v28, 0.0 }
 0x7e6   : > { %v5549_v50 = vpop.eup %5548  ;;  %5560 = vrcp.f32 %v1060_v5  ;;  %1345 = vadd.xlane.f32.xlu1 %v1344_v38  ;;  %v891_v62 = vmul.f32 %v5547_v13, %v6208_v51 }
 0x7e7   : > { %v5551_v45 = vpop.eup %5550  ;;  %v1063_v60 = vpop.xlane.xlu0 %1062  ;;  %v1635_v42 = vpack.c.bf16 %v5549_v50, %v5545_v28  ;;  %v1621_v46 = vsel %vm729_vm2, %v5549_v50, 0.0 }
 0x7e8   : > { %v5553_v48 = vpop.eup %5552  ;;  %5562 = vrcp.f32 %v1063_v60  ;;  %1348 = vadd.xlane.f32.xlu0 %v1347_v10  ;;  %v892_v63 = vmul.f32 %v5551_v45, %v6212_v53 }
 0x7e9   : > { %v1328_v61 = vpop.xlane.xlu1 %1327  ;;  %5048 = vmatmul.mubr.msk.bf16.gmra.mrb[44].mxu0 %vm729_vm2, %v1635_v42  ;;  %v1165_v26 = vmul.f32 %v5553_v48, %v6317_v32 }
 0x7ea   : > { %v5555_v22 = vpop.eup %5554  ;;  %5564 = vrcp.f32 %v1328_v61  ;;  %1613 = vadd.xlane.f32.xlu1 %v1612_v56  ;;  %v7468_v61 = vld [vmem:[#allocation17_spill] sm:$0xff] }
 0x7eb   : > { %v1331_v6 = vpop.xlane.xlu0 %1330  ;;  %v1173_v39 = vadd.f32 %v1165_v26, %v891_v62  ;;  %v1166_v37 = vmul.f32 %v5555_v22, %v6321_v43 }
 0x7ec   : > { %5566 = vrcp.f32 %v1331_v6  ;;  %1616 = vadd.xlane.f32.xlu0 %v1615_v11  ;;  %v5557_v51 = vpop.eup %5556  ;;  %v7469_v11 = vld [vmem:[#allocation13_spill] sm:$0xff] }
 0x7ed   : > { %v1334_v34 = vpop.xlane.xlu1 %1333  ;;  %v1174_v16 = vadd.f32 %v1166_v37, %v892_v63  ;;  %v893_v53 = vmul.f32 %v5557_v51, %v6206_v41  ;;  %v7470_v63 = vld [vmem:[#allocation15_spill] sm:$0xff] }
 0x7ee   : > { %5568 = vrcp.f32 %v1334_v34  ;;  %1619 = vadd.xlane.f32.xlu1 %v1618_v12  ;;  %v5559_v32 = vpop.eup %5558 }
 0x7ef   : > { %v1337_v33 = vpop.xlane.xlu0 %1336  ;;  %v894_v7 = vmul.f32 %v5559_v32, %v6210_v52 }
 0x7f0   : > { %v5561_v36 = vpop.eup %5560  ;;  %5570 = vrcp.f32 %v1337_v33  ;;  %1622 = vadd.xlane.f32.xlu0 %v1621_v46 }
 0x7f1   : > { %v792_v19 = vpop.xlane.xlu1 %791  ;;  %v1167_v43 = vmul.f32 %v5561_v36, %v6315_v9 }
 0x7f2   : > { %v5563_v44 = vpop.eup %5562  ;;  %5572 = vrcp.f32 %v792_v19 }
 0x7f3   : > { %v795_v20 = vpop.xlane.xlu0 %794  ;;  %v1175_v49 = vadd.f32 %v1167_v43, %v893_v53  ;;  %v1168_v31 = vmul.f32 %v5563_v44, %v6319_v35  ;;  %v5443_v43 = vld [vmem:[%s7411_s3 + $0x28] sm:$0xff]  }
 0x7f4   : > { %v5565_v58 = vpop.eup %5564  ;;  %5574 = vrcp.f32 %v795_v20 }
 0x7f5   : > { %v1066_v17 = vpop.xlane.xlu1 %1065  ;;  %v1439_v47 = vmul.f32 %v5565_v58, %v6395_v1  ;;  %v1176_v40 = vadd.f32 %v1168_v31, %v894_v7 }
 0x7f6   : > { %v5567_v54 = vpop.eup %5566  ;;  %5576 = vrcp.f32 %v1066_v17 }
 0x7f7   : > { %v1069_v8 = vpop.xlane.xlu0 %1068  ;;  %v6518_v41 = vadd.f32 %v1439_v47, %v1173_v39  ;;  %v1440_v9 = vmul.f32 %v5567_v54, %v6399_v4  ;;  %v5442_v4 = vld [vmem:[%s7411_s3 + $0x20] sm:$0xff]  }
 0x7f8   : > { %v5569_v25 = vpop.eup %5568  ;;  %5578 = vrcp.f32 %v1069_v8  ;;  %5051 = vmatprep.subr.bf16.mxu0 %v5442_v4 }
 0x7f9   : > { %v798_v23 = vpop.xlane.xlu1 %797  ;;  %v1441_v52 = vmul.f32 %v5569_v25, %v6393_v0  ;;  %v6522_v35 = vadd.f32 %v1440_v9, %v1174_v16  ;;  %5052 = vmatpush3.bf16.msra.mxu0 %v5442_v4  ;;  %v7472_v16 = vld [vmem:[#allocation16_spill] sm:$0xff] }
 0x7fa   : > { %v5571_v15 = vpop.eup %5570  ;;  %5580 = vrcp.f32 %v798_v23  ;;  %5053 = vmatprep.subr.bf16.mxu0 %v5443_v43 }
 0x7fb   : > { %v801_v21 = vpop.xlane.xlu0 %800  ;;  %v6524_v27 = vadd.f32 %v1441_v52, %v1175_v49  ;;  %v1442_v1 = vmul.f32 %v5571_v15, %v6397_v2 }
 0x7fc   : > { %5582 = vrcp.f32 %v801_v21  ;;  %v5573_v13 = vpop.eup %5572 }
 0x7fd   : > { %v1072_v14 = vpop.xlane.xlu1 %1071  ;;  %v6527_v28 = vadd.f32 %v1442_v1, %v1176_v40  ;;  %v895_v2 = vmul.f32 %v5573_v13, %v6216_v55  ;;  %5054 = vmatpush3.bf16.msra.mxu0 %v5443_v43 }
 0x7fe   : > { %5584 = vrcp.f32 %v1072_v14  ;;  %v5575_v0 = vpop.eup %5574 }
 0x7ff   : > { %v1075_v5 = vpop.xlane.xlu0 %1074  ;;  %v896_v48 = vmul.f32 %v5575_v0, %v6220_v59 }
 0x800   : > { %v5577_v38 = vpop.eup %5576  ;;  %5586 = vrcp.f32 %v1075_v5 }
 0x801   : > { %v1340_v50 = vpop.xlane.xlu1 %1339  ;;  %v1169_v45 = vmul.f32 %v5577_v38, %v6325_v57  ;;  %v7471_v57 = vld [vmem:[#allocation14_spill] sm:$0xff] }
 0x802   : > { %v5579_v60 = vpop.eup %5578  ;;  %5588 = vrcp.f32 %v1340_v50 }
 0x803   : > { %v1343_v10 = vpop.xlane.xlu0 %1342  ;;  %v1177_v42 = vadd.f32 %v1169_v45, %v895_v2  ;;  %v1170_v56 = vmul.f32 %v5579_v60, %v7468_v61 }
 0x804   : > { %5590 = vrcp.f32 %v1343_v10  ;;  %v5581_v26 = vpop.eup %5580 }
 0x805   : > { %v1178_v62 = vadd.f32 %v1170_v56, %v896_v48  ;;  %v897_v39 = vmul.f32 %v5581_v26, %v7469_v11 }
 0x806   : > { %v5583_v22 = vpop.eup %5582 }
 0x807   : > { %v898_v12 = vmul.f32 %v5583_v22, %v7471_v57 }
 0x808   : > { %v5585_v6 = vpop.eup %5584 }
 0x809   : > { %v1171_v37 = vmul.f32 %v5585_v6, %v7470_v63 }
 0x80a   : > { %v5587_v55 = vpop.eup %5586 }
 0x80b   : > { %v1179_v34 = vadd.f32 %v1171_v37, %v897_v39  ;;  %v1172_v51 = vmul.f32 %v5587_v55, %v7472_v16 }
 0x80c   : > { %v5589_v32 = vpop.eup %5588 }
 0x80d   : > { %v1443_v59 = vmul.f32 %v5589_v32, %v6403_v30  ;;  %v1180_v33 = vadd.f32 %v1172_v51, %v898_v12  ;;  %v4516_v12 = vld [vmem:[%s7414_s6 + $0x2] ss:$0 sm:$0xff] }
 0x80e   : > { %v5591_v46 = vpop.eup %5590 }
 0x80f   : > { %v6541_v36 = vadd.f32 %v1443_v59, %v1177_v42  ;;  %v1444_v19 = vmul.f32 %v5591_v46, %v6407_v29 }
 0x811   : > { %v6544_v53 = vadd.f32 %v1444_v19, %v1178_v62 }
 0x86b   : > { %v1608_v44 = vpop.xlane.xlu1 %1607 }
 0x86d   : > { %v1611_v20 = vpop.xlane.xlu0 %1610 }
 0x86f   : > { %v1602_v49 = vpop.xlane.xlu1 %1601 }
 0x871   : > { %v1605_v7 = vpop.xlane.xlu0 %1604 }
 0x873   : > { %v1346_v31 = vpop.xlane.xlu1 %1345 }
 0x874   : > { %5592 = vrcp.f32 %v1346_v31 }
 0x875   : > { %v1349_v30 = vpop.xlane.xlu0 %1348 }
 0x876   : > { %5594 = vrcp.f32 %v1349_v30 }
 0x877   : > { %v1614_v8 = vpop.xlane.xlu1 %1613  ;;  %5596 = vrcp.f32 %v1608_v44 }
 0x878   : > { %5598 = vrcp.f32 %v1602_v49 }
 0x879   : > { %v1617_v9 = vpop.xlane.xlu0 %1616  ;;  %5600 = vrcp.f32 %v1611_v20  ;;  %v5687_v20 = vld [vmem:[%s5901_s18 + $0x8] sm:$0xff] }
 0x87a   : > { %5602 = vrcp.f32 %v1605_v7  ;;  %v5688_v7 = vld [vmem:[%s5901_s18 + $0x10] sm:$0xff] }
 0x87b   : > { %v1620_v25 = vpop.xlane.xlu1 %1619 }
 0x87c   : > { %5604 = vrcp.f32 %v1620_v25 }
 0x87d   : > { %v1623_v23 = vpop.xlane.xlu0 %1622  ;;  %5606 = vrcp.f32 %v1614_v8 }
 0x87e   : > { %v5593_v58 = vpop.eup %5592  ;;  %5608 = vrcp.f32 %v1623_v23 }
 0x87f   : > { %v1445_v17 = vmul.f32 %v5593_v58, %v6401_v3  ;;  %5610 = vrcp.f32 %v1617_v9 }
 0x880   : > { %v5595_v29 = vpop.eup %5594 }
 0x881   : > { %v1453_v47 = vadd.f32 %v1445_v17, %v1179_v34  ;;  %v1446_v40 = vmul.f32 %v5595_v29, %v6405_v24  ;;  %v5597_v52 = vpop.eup %5596  ;;  %v5689_v17 = vld [vmem:[%s5901_s18 + $0x18] sm:$0xff] }
 0x882   : > { %v5599_v21 = vpop.eup %5598 }
 0x883   : > { %v1454_v54 = vadd.f32 %v1446_v40, %v1180_v33  ;;  %v5601_v14 = vpop.eup %5600 }
 0x884   : > { %v5603_v4 = vpop.eup %5602 }
 0x886   : > { %v5605_v42 = vpop.eup %5604 }
 0x887   : > { %v5607_v56 = vpop.eup %5606 }
 0x888   : > { %v5609_v22 = vpop.eup %5608 }
 0x8b4   : > { %v5045_v15 = vpop.f32.mrb[40].mxu0 }
 0x8b5   : > { %v1715_v3 = vmul.f32 %v5597_v52, %v5045_v15  ;;  %v1682_v1 = vpop.f32.mrb[41].mxu0 }
 0x8b6   : > { %v1713_v24 = vmul.f32 %v5599_v21, %v1682_v1  ;;  %v5046_v13 = vpop.f32.mrb[42].mxu0  ;;  %v5690_v21 = vld [vmem:[%s5901_s18 + $0x20] sm:$0xff] }
 0x8b7   : > { %v1723_v0 = vadd.f32 %v1715_v3, %v6524_v27  ;;  %v1716_v5 = vmul.f32 %v5601_v14, %v5046_v13  ;;  %v1685_v38 = vpop.f32.mrb[43].mxu0  ;;  %v5611_v27 = vpop.eup %5610  ;;  %v5691_v14 = vld [vmem:[%s5901_s18 + $0x28] sm:$0xff]  ;;  %v5692_v13 = vld [vmem:[%s5901_s18 + $0x30] sm:$0xff] }
 0x8b8   : > { %v1721_v50 = vadd.f32 %v1713_v24, %v6518_v41  ;;  %v1714_v2 = vmul.f32 %v5603_v4, %v1685_v38 }
 0x8b9   : > { %v1724_v45 = vadd.f32 %v1716_v5, %v6527_v28  ;;  %v5693_v5 = vld [vmem:[%s5901_s18 + $0x38] sm:$0xff] }
 0x8ba   : > { %v1722_v60 = vadd.f32 %v1714_v2, %v6522_v35 }
 0x8bb   : > { %v1730_v10 = vpack.c.bf16 %v1724_v45, %v1723_v0 }
 0x8bc   : > { %v1729_v48 = vpack.c.bf16 %v1722_v60, %v1721_v50  ;;  %v5049_v61 = vpop.f32.mrb[44].mxu0 }
 0x8bd   : > { %v1719_v62 = vmul.f32 %v5605_v42, %v5049_v61  ;;  %v1698_v26 = vpop.f32.mrb[45].mxu0 }
 0x8be   : > { %v1717_v6 = vmul.f32 %v5607_v56, %v1698_v26  ;;  %v5050_v11 = vpop.f32.mrb[46].mxu0  ;;  %5055 = vmatprep.mubr.msk.bf16.mxu0 %vm407_vm0, %v1729_v48 }
 0x8bf   : > { %v1727_v39 = vadd.f32 %v1719_v62, %v1453_v47  ;;  %v1720_v41 = vmul.f32 %v5609_v22, %v5050_v11  ;;  %v1701_v63 = vpop.f32.mrb[47].mxu0  ;;  %5056 = vmatmul.mubr.msk.bf16.vlgmr.msra.gmra.mrb[48].mxu0 %vm407_vm0, %v1730_v10 }
 0x8c0   : > { %v1725_v35 = vadd.f32 %v1717_v6, %v6541_v36  ;;  %v1718_v28 = vmul.f32 %v5611_v27, %v1701_v63 }
 0x8c1   : > { %v1728_v37 = vadd.f32 %v1720_v41, %v1454_v54 }
 0x8c2   : > { %v1726_v55 = vadd.f32 %v1718_v28, %v6544_v53  ;;  %v5686_v53 = vld [vmem:[%s5901_s18] sm:$0xff]  ;;  %s5770_s18 = smov [#allocation2]  }
 0x8c3   : > { %v1732_v34 = vpack.c.bf16 %v1728_v37, %v1727_v39  ;;  %s5706_s16 = sshll.u32 %s5770_s18, 4  ;;  %s5707_s16 = int_to_ptr.vmem [resolvable:$false] %s5706_s16 }
 0x8c4   : > { %v1731_v57 = vpack.c.bf16 %v1726_v55, %v1725_v35  ;;  %p5709_p0 = scmp.lt.s32.totalorder %s4341_s14, %s5707_s16 }
 0x8c6   : > { %5059 = vmatprep.mubr.msk.bf16.mxu0 %vm407_vm0, %v1731_v57 }
 0x8c7   : > { %5060 = vmatmul.mubr.msk.bf16.gmra.mrb[52].mxu0 %vm407_vm0, %v1732_v34 }
 0x992   : > { %v5057_v16 = vpop.f32.mrb[48].mxu0 }
 0x993   : > { %v1801_v51 = vpop.f32.mrb[49].mxu0  ;;  %v1810_v32 = vadd.f32 %v5057_v16, %v4516_v12 }
 0x994   : > { %v1802_v59 = vadd.f32 %v4516_v12, %v1801_v51  ;;  %v5058_v33 = vpop.f32.mrb[50].mxu0 }
 0x995   : > { %v1804_v46 = vpop.f32.mrb[51].mxu0  ;;  %v1813_v36 = vadd.f32 %v5058_v33, %v4516_v12  ;;  %v1834_v31 = vadd.f32 %v5688_v7, %v1810_v32 }
 0x996   : > { %v1805_v19 = vadd.f32 %v4516_v12, %v1804_v46  ;;  %v1832_v43 = vadd.f32 %v5686_v53, %v1802_v59 }
 0x997   : > { %v1835_v29 = vadd.f32 %v5689_v17, %v1813_v36  ;;  %v1846_v9 = vsel %vm407_vm0, %v1834_v31, 0.0  ;;  %v5444_v17 = vld [vmem:[%s7411_s3 + $0x30] sm:$0xff]  }
 0x998   : > { %v1840_v44 = vsel %vm407_vm0, %v1832_v43, 0.0  ;;  %v1833_v49 = vadd.f32 %v5687_v20, %v1805_v19  ;;  %5063 = vmatprep.subr.bf16.mxu1 %v5444_v17 }
 0x999   : > { %1841 = vadd.xlane.f32.xlu1 %v1840_v44  ;;  %v1849_v15 = vsel %vm407_vm0, %v1835_v29, 0.0  ;;  %5064 = vmatpush3.bf16.msra.mxu1 %v5444_v17 }
 0x99a   : > { %v5061_v30 = vpop.f32.mrb[52].mxu0  ;;  %v1843_v58 = vsel %vm407_vm0, %v1833_v49, 0.0 }
 0x99b   : > { %1844 = vadd.xlane.f32.xlu0 %v1843_v58  ;;  %v1817_v47 = vpop.f32.mrb[53].mxu0  ;;  %v1826_v40 = vadd.f32 %v5061_v30, %v4516_v12 }
 0x99c   : > { %v1818_v54 = vadd.f32 %v4516_v12, %v1817_v47  ;;  %v5062_v8 = vpop.f32.mrb[54].mxu0  ;;  %v5768_v47 = vmov 0.0  }
 0x99d   : > { %1847 = vadd.xlane.f32.xlu1 %v1846_v9  ;;  %v1820_v25 = vpop.f32.mrb[55].mxu0  ;;  %v1829_v23 = vadd.f32 %v5062_v8, %v4516_v12  ;;  %v1838_v4 = vadd.f32 %v5692_v13, %v1826_v40  ;;  %v5448_v40 = vld [vmem:[%s7412_s4] sm:$0xff]  }
 0x99e   : > { %v1821_v52 = vadd.f32 %v4516_v12, %v1820_v25  ;;  %v1836_v3 = vadd.f32 %v5690_v21, %v1818_v54  ;;  %v5449_v54 = vld [vmem:[%s7412_s4 + $0x8] sm:$0xff]   ;;  %5075 = vmatprep.subr.bf16.mxu0 %v5448_v40 }
 0x99f   : > { %1850 = vadd.xlane.f32.xlu0 %v1849_v15  ;;  %v1839_v38 = vadd.f32 %v5693_v5, %v1829_v23  ;;  %v1858_v50 = vsel %vm407_vm0, %v1838_v4, 0.0  ;;  %5076 = vmatpush3.bf16.msra.mxu0 %v5448_v40  ;;  %v5447_v40 = vld [vmem:[%s7411_s3 + $0x48] sm:$0xff]  }
 0x9a0   : > { %v1852_v1 = vsel %vm407_vm0, %v1836_v3, 0.0  ;;  %v1837_v24 = vadd.f32 %v5691_v14, %v1821_v52  ;;  %5077 = vmatprep.subr.bf16.mxu0 %v5449_v54 }
 0x9a1   : > { %1853 = vadd.xlane.f32.xlu1 %v1852_v1  ;;  %v1861_v2 = vsel %vm407_vm0, %v1839_v38, 0.0 }
 0x9a2   : > { %v1855_v0 = vsel %vm407_vm0, %v1837_v24, 0.0 }
 0x9a3   : > { %1856 = vadd.xlane.f32.xlu0 %v1855_v0  ;;  %5078 = vmatpush3.bf16.msra.mxu0 %v5449_v54 }
 0x9a5   : > { %1859 = vadd.xlane.f32.xlu1 %v1858_v50 }
 0x9a7   : > { %1862 = vadd.xlane.f32.xlu0 %v1861_v2 }
 0xa26   : > { %v1842_v45 = vpop.xlane.xlu1 %1841 }
 0xa27   : > { %v1865_v60 = vmul.f32 0.03125, %v1842_v45 }
 0xa28   : > { %v1845_v10 = vpop.xlane.xlu0 %1844 }
 0xa29   : > { %v6580_v42 = vsub.f32 %v1832_v43, %v1865_v60  ;;  %v1866_v48 = vmul.f32 0.03125, %v1845_v10 }
 0xa2a   : > { %v1848_v61 = vpop.xlane.xlu1 %1847 }
 0xa2b   : > { %v6582_v56 = vsub.f32 %v1833_v49, %v1866_v48  ;;  %v1867_v62 = vmul.f32 0.03125, %v1848_v61  ;;  %v1881_v26 = vmul.f32 %v6580_v42, %v6580_v42  ;;  %v4523_v61 = vld [vmem:[%s7414_s6 + $0x3] ss:$0 sm:$0xff] }
 0xa2c   : > { %v1851_v22 = vpop.xlane.xlu0 %1850 }
 0xa2d   : > { %v6586_v6 = vsub.f32 %v1834_v31, %v1867_v62  ;;  %v1868_v11 = vmul.f32 0.03125, %v1851_v22  ;;  %v1889_v27 = vsel %vm407_vm0, %v1881_v26, 0.0  ;;  %v1882_v39 = vmul.f32 %v6582_v56, %v6582_v56 }
 0xa2e   : > { %1890 = vadd.xlane.f32.xlu1 %v1889_v27  ;;  %v1854_v41 = vpop.xlane.xlu1 %1853 }
 0xa2f   : > { %v6591_v63 = vsub.f32 %v1835_v29, %v1868_v11  ;;  %v1869_v35 = vmul.f32 0.03125, %v1854_v41  ;;  %v1892_v28 = vsel %vm407_vm0, %v1882_v39, 0.0  ;;  %v1883_v37 = vmul.f32 %v6586_v6, %v6586_v6  ;;  %v5445_v29 = vld [vmem:[%s7411_s3 + $0x38] sm:$0xff]  }
 0xa30   : > { %1893 = vadd.xlane.f32.xlu0 %v1892_v28  ;;  %v1857_v55 = vpop.xlane.xlu0 %1856  ;;  %5065 = vmatprep.subr.bf16.mxu1 %v5445_v29  ;;  %v4524_v28 = vld [vmem:[%s7414_s6 + $0x4] ss:$0 sm:$0xff] }
 0xa31   : > { %v6596_v34 = vsub.f32 %v1836_v3, %v1869_v35  ;;  %v1870_v57 = vmul.f32 0.03125, %v1857_v55  ;;  %v1895_v12 = vsel %vm407_vm0, %v1883_v37, 0.0  ;;  %v1884_v16 = vmul.f32 %v6591_v63, %v6591_v63  ;;  %5066 = vmatpush3.bf16.msra.mxu1 %v5445_v29 }
 0xa32   : > { %1896 = vadd.xlane.f32.xlu1 %v1895_v12  ;;  %v1860_v51 = vpop.xlane.xlu1 %1859  ;;  %5091 = vmatprep.subr.bf16.mxu1 %v5768_v47 }
 0xa33   : > { %v6601_v32 = vsub.f32 %v1837_v24, %v1870_v57  ;;  %v1871_v59 = vmul.f32 0.03125, %v1860_v51  ;;  %v1898_v33 = vsel %vm407_vm0, %v1884_v16, 0.0  ;;  %v1885_v46 = vmul.f32 %v6596_v34, %v6596_v34 }
 0xa34   : > { %1899 = vadd.xlane.f32.xlu0 %v1898_v33  ;;  %v1863_v36 = vpop.xlane.xlu0 %1862 }
 0xa35   : > { %v6606_v19 = vsub.f32 %v1838_v4, %v1871_v59  ;;  %v1872_v53 = vmul.f32 0.03125, %v1863_v36  ;;  %v1901_v43 = vsel %vm407_vm0, %v1885_v46, 0.0  ;;  %v1886_v44 = vmul.f32 %v6601_v32, %v6601_v32 }
 0xa36   : > { %1902 = vadd.xlane.f32.xlu1 %v1901_v43 }
 0xa37   : > { %v6611_v20 = vsub.f32 %v1839_v38, %v1872_v53  ;;  %v1904_v49 = vsel %vm407_vm0, %v1886_v44, 0.0  ;;  %v1887_v7 = vmul.f32 %v6606_v19, %v6606_v19 }
 0xa38   : > { %1905 = vadd.xlane.f32.xlu0 %v1904_v49  ;;  %v5446_v49 = vld [vmem:[%s7411_s3 + $0x40] sm:$0xff]  }
 0xa39   : > { %v1907_v31 = vsel %vm407_vm0, %v1887_v7, 0.0  ;;  %v1888_v30 = vmul.f32 %v6611_v20, %v6611_v20 }
 0xa3a   : > { %1908 = vadd.xlane.f32.xlu1 %v1907_v31 }
 0xa3b   : > { %v1910_v58 = vsel %vm407_vm0, %v1888_v30, 0.0 }
 0xa3c   : > { %1911 = vadd.xlane.f32.xlu0 %v1910_v58 }
 0xabb   : > { %v1891_v8 = vpop.xlane.xlu1 %1890 }
 0xabc   : > { %v1913_v9 = vmul.f32 0.03125, %v1891_v8 }
 0xabd   : > { %v1894_v25 = vpop.xlane.xlu0 %1893 }
 0xabe   : > { %v1921_v23 = vadd.f32 1e-05, %v1913_v9  ;;  %v1914_v52 = vmul.f32 0.03125, %v1894_v25  ;;  %v6688_v25 = vld [vmem:[%s7410_s2] sm:$0xff] }
 0xabf   : > { %v1897_v15 = vpop.xlane.xlu1 %1896 }
 0xac0   : > { %5612 = vrsqrt.f32 %v1921_v23  ;;  %v1922_v21 = vadd.f32 1e-05, %v1914_v52  ;;  %v1915_v3 = vmul.f32 0.03125, %v1897_v15  ;;  %v2338_v23 = vpack.c.bf16 %v6688_v25, %v6688_v25  ;;  %v5450_v52 = vld [vmem:[%s7412_s4 + $0x10] sm:$0xff]   ;;  %v5451_v15 = vld [vmem:[%s7412_s4 + $0x18] sm:$0xff]  }
 0xac1   : > { %v1900_v1 = vpop.xlane.xlu0 %1899  ;;  %5079 = vmatprep.subr.bf16.mxu0 %v5450_v52 }
 0xac2   : > { %5614 = vrsqrt.f32 %v1922_v21  ;;  %v1923_v14 = vadd.f32 1e-05, %v1915_v3  ;;  %v1916_v24 = vmul.f32 0.03125, %v1900_v1  ;;  %5080 = vmatpush3.bf16.msra.mxu0 %v5450_v52  ;;  %v4529_v21 = vld [vmem:[%s7414_s6 + $0x5] ss:$0 sm:$0xff] }
 0xac3   : > { %v1903_v13 = vpop.xlane.xlu1 %1902  ;;  %5081 = vmatprep.subr.bf16.mxu0 %v5451_v15 }
 0xac4   : > { %5616 = vrsqrt.f32 %v1923_v14  ;;  %v1924_v4 = vadd.f32 1e-05, %v1916_v24  ;;  %v1917_v0 = vmul.f32 0.03125, %v1903_v13 }
 0xac5   : > { %v1906_v5 = vpop.xlane.xlu0 %1905 }
 0xac6   : > { %5618 = vrsqrt.f32 %v1924_v4  ;;  %v1925_v38 = vadd.f32 1e-05, %v1917_v0  ;;  %v1918_v50 = vmul.f32 0.03125, %v1906_v5  ;;  %5082 = vmatpush3.bf16.msra.mxu0 %v5451_v15 }
 0xac7   : > { %v1909_v2 = vpop.xlane.xlu1 %1908  ;;  %5105 = vmatprep.subr.bf16.mxu0 %v5768_v47 }
 0xac8   : > { %5620 = vrsqrt.f32 %v1925_v38  ;;  %v1926_v45 = vadd.f32 1e-05, %v1918_v50  ;;  %v1919_v60 = vmul.f32 0.03125, %v1909_v2 }
 0xac9   : > { %v1912_v10 = vpop.xlane.xlu0 %1911 }
 0xaca   : > { %v5613_v48 = vpop.eup %5612  ;;  %5622 = vrsqrt.f32 %v1926_v45  ;;  %v1927_v62 = vadd.f32 1e-05, %v1919_v60  ;;  %v1920_v26 = vmul.f32 0.03125, %v1912_v10 }
 0xacb   : > { %v1937_v22 = vmul.f32 %v5613_v48, %v6580_v42 }
 0xacc   : > { %v5615_v11 = vpop.eup %5614  ;;  %5624 = vrsqrt.f32 %v1927_v62  ;;  %v1928_v27 = vadd.f32 1e-05, %v1920_v26 }
 0xacd   : > { %v1938_v39 = vmul.f32 %v5615_v11, %v6582_v56  ;;  %v1950_v41 = vmul.f32 %v4523_v61, %v1937_v22 }
 0xace   : > { %v5617_v35 = vpop.eup %5616  ;;  %5626 = vrsqrt.f32 %v1928_v27 }
 0xacf   : > { %v1939_v37 = vmul.f32 %v5617_v35, %v6586_v6  ;;  %v1951_v55 = vmul.f32 %v4523_v61, %v1938_v39  ;;  %v6643_v42 = vadd.f32 %v4524_v28, %v1950_v41 }
 0xad0   : > { %v5619_v57 = vpop.eup %5618 }
 0xad1   : > { %v1952_v12 = vmul.f32 %v4523_v61, %v1939_v37  ;;  %v1940_v16 = vmul.f32 %v5619_v57, %v6591_v63  ;;  %v6645_v51 = vadd.f32 %v4524_v28, %v1951_v55  ;;  %v4551_v55 = vld [vmem:[%s7414_s6 + $0x9] ss:$0 sm:$0xff] }
 0xad2   : > { %v5621_v59 = vpop.eup %5620 }
 0xad3   : > { %v1953_v56 = vmul.f32 %v4523_v61, %v1940_v16  ;;  %v1941_v33 = vmul.f32 %v5621_v59, %v6596_v34  ;;  %v1971_v46 = vpack.c.bf16 %v6645_v51, %v6643_v42  ;;  %v6650_v53 = vadd.f32 %v4524_v28, %v1952_v12 }
 0xad4   : > { %v5623_v36 = vpop.eup %5622 }
 0xad5   : > { %v6652_v6 = vadd.f32 %v4524_v28, %v1953_v56  ;;  %v1942_v43 = vmul.f32 %v5623_v36, %v6601_v32  ;;  %5067 = vmatprep.mubr.msk.bf16.mxu1 %vm407_vm0, %v1971_v46  ;;  %v1954_v63 = vmul.f32 %v4523_v61, %v1941_v33 }
 0xad6   : > { %v5625_v44 = vpop.eup %5624 }
 0xad7   : > { %v1943_v34 = vmul.f32 %v5625_v44, %v6606_v19  ;;  %v1972_v7 = vpack.c.bf16 %v6652_v6, %v6650_v53  ;;  %v1955_v31 = vmul.f32 %v4523_v61, %v1942_v43  ;;  %v6664_v32 = vadd.f32 %v4524_v28, %v1954_v63 }
 0xad8   : > { %v5627_v30 = vpop.eup %5626 }
 0xad9   : > { %v1944_v58 = vmul.f32 %v5627_v30, %v6611_v20  ;;  %5068 = vmatmul.mubr.msk.bf16.vlgmr.msra.gmra.mrb[32].mxu1 %vm407_vm0, %v1972_v7  ;;  %v6666_v17 = vadd.f32 %v4524_v28, %v1955_v31  ;;  %v1956_v29 = vmul.f32 %v4523_v61, %v1943_v34 }
 0xada   : > { %5092 = vmatpush3.bf16.msra.mxu1 %v5446_v49 }
 0xadb   : > { %v1973_v19 = vpack.c.bf16 %v6666_v17, %v6664_v32  ;;  %v1957_v54 = vmul.f32 %v4523_v61, %v1944_v58  ;;  %5093 = vmatprep.subr.bf16.mxu1 %v5768_v47  ;;  %v6675_v20 = vadd.f32 %v4524_v28, %v1956_v29 }
 0xadd   : > { %5071 = vmatprep.mubr.msk.bf16.mxu1 %vm407_vm0, %v1973_v19  ;;  %v6677_v8 = vadd.f32 %v4524_v28, %v1957_v54 }
 0xade   : > { %5094 = vmatpush3.bf16.msra.mxu1 %v5447_v40 }
 0xadf   : > { %v1974_v9 = vpack.c.bf16 %v6677_v8, %v6675_v20  ;;  %5099 = vmatprep.subr.bf16.mxu1 %v5768_v47 }
 0xae1   : > { %5072 = vmatmul.mubr.msk.bf16.gmra.mrb[36].mxu1 %vm407_vm0, %v1974_v9 }
 0xae2   : > { %5095 = vmatprep.mubr.msk.bf16.mxu1 %vm5769_vm5, %v5768_v47 }
 0xae9   : > { %5096 = vmatmul.mubr.msk.bf16.vlgmr.msra.gmra.mrb[40].mxu1 %vm407_vm0, %v2338_v23 }
 0xaea   : > { %5101 = vmatprep.mubr.msk.bf16.mxu1 %vm5769_vm5, %v5768_v47 }
 0xbac   : > { %v5069_v3 = vpop.f32.mrb[32].mxu1 }
 0xbad   : > { %v2052_v1 = vadd.f32 %v5069_v3, %v4529_v21  ;;  %v2043_v14 = vpop.f32.mrb[33].mxu1 }
 0xbae   : > { %v2044_v24 = vadd.f32 %v4529_v21, %v2043_v14  ;;  %v5070_v13 = vpop.f32.mrb[34].mxu1 }
 0xbaf   : > { %v2055_v4 = vadd.f32 %v5070_v13, %v4529_v21  ;;  %v2046_v0 = vpop.f32.mrb[35].mxu1  ;;  %v2076_v38 = vmax.f32 %v2052_v1, 0.0 }
 0xbb0   : > { %v2047_v5 = vadd.f32 %v4529_v21, %v2046_v0  ;;  %v2074_v2 = vmax.f32 %v2044_v24, 0.0 }
 0xbb1   : > { %v2077_v50 = vmax.f32 %v2055_v4, 0.0 }
 0xbb2   : > { %v2075_v45 = vmax.f32 %v2047_v5, 0.0 }
 0xbb3   : > { %v2083_v60 = vpack.c.bf16 %v2077_v50, %v2076_v38 }
 0xbb4   : > { %v2082_v10 = vpack.c.bf16 %v2075_v45, %v2074_v2  ;;  %v5073_v48 = vpop.f32.mrb[36].mxu1 }
 0xbb5   : > { %v2068_v61 = vadd.f32 %v5073_v48, %v4529_v21  ;;  %v2059_v62 = vpop.f32.mrb[37].mxu1 }
 0xbb6   : > { %v2060_v26 = vadd.f32 %v4529_v21, %v2059_v62  ;;  %v5074_v22 = vpop.f32.mrb[38].mxu1  ;;  %5083 = vmatprep.mubr.msk.bf16.mxu0 %vm729_vm2, %v2082_v10 }
 0xbb7   : > { %v2071_v11 = vadd.f32 %v5074_v22, %v4529_v21  ;;  %v2062_v27 = vpop.f32.mrb[39].mxu1  ;;  %5084 = vmatmul.mubr.msk.bf16.vlgmr.msra.gmra.mrb[56].mxu0 %vm729_vm2, %v2083_v60  ;;  %v2080_v41 = vmax.f32 %v2068_v61, 0.0 }
 0xbb8   : > { %v2063_v39 = vadd.f32 %v4529_v21, %v2062_v27  ;;  %v2078_v28 = vmax.f32 %v2060_v26, 0.0 }
 0xbb9   : > { %v2081_v35 = vmax.f32 %v2071_v11, 0.0 }
 0xbba   : > { %v2079_v37 = vmax.f32 %v2063_v39, 0.0  ;;  %v4555_v39 = vld [vmem:[%s7414_s6 + $0xa] ss:$0 sm:$0xff] }
 0xbbb   : > { %v2085_v57 = vpack.c.bf16 %v2081_v35, %v2080_v41  ;;  %v2412_v35 = vpack.c.bf16 %v4555_v39, %v4555_v39 }
 0xbbc   : > { %v2084_v12 = vpack.c.bf16 %v2079_v37, %v2078_v28  ;;  %v2398_v16 = vpop.f32.mrb[40].mxu1 }
 0xbbd   : > { %v2399_v59 = vadd.f32 %v4551_v55, %v2398_v16  ;;  %v5097_v56 = vpop.f32.mrb[41].mxu1  ;;  %v2414_v28 = vsel %vm5963_vm14, %v2412_v35, 0  ;;  %v2526_v55 = vsel %vm5933_vm6, %v2412_v35, 0 }
 0xbbe   : > { %5087 = vmatprep.mubr.msk.bf16.mxu0 %vm729_vm2, %v2084_v12  ;;  %v2401_v33 = vpop.f32.mrb[42].mxu1  ;;  %v2481_v37 = vsel %vm2479_vm8, %v2414_v28, 0  ;;  %v2630_v12 = vsel %vm5943_vm10, %v2412_v35, 0 }
 0xbbf   : > { %v2411_v46 = vpack.c.bf16 %v2399_v59, %v2399_v59  ;;  %5088 = vmatmul.mubr.msk.bf16.gmra.mrb[60].mxu0 %vm729_vm2, %v2085_v57  ;;  %v5098_v36 = vpop.f32.mrb[43].mxu1  ;;  %v2409_v43 = vmul.f32 0.35355338, %v2399_v59  ;;  %v2585_v57 = vsel %vm2479_vm8, %v2526_v55, 0  ;;  %v2689_v16 = vsel %vm2479_vm8, %v2630_v12, 0 }
 0xbc0   : > { %5107 = vmatprep.mubr.msk.bf16.mxu0 %vm5769_vm5, %v5768_v47  ;;  %5106 = vmatpush3.bf16.msra.mxu0 %v2481_v37  ;;  %v2734_v59 = vsel %vm5953_vm12, %v2412_v35, 0 }
 0xbc1   : > { %2416 = vrot.lane.b32.xlu1 %v2411_v46, %s5767_s29  ;;  %v2410_v49 = vpack.c.bf16 %v2409_v43, %v2409_v43  ;;  %5117 = vmatprep.subr.bf16.mxu0 %v5768_v47  ;;  %v2793_v56 = vsel %vm2479_vm8, %v2734_v59, 0 }
 0xbc3   : > { %v2413_v7 = vsel %vm5963_vm14, %v2410_v49, 0  ;;  %v2525_v30 = vsel %vm5933_vm6, %v2410_v49, 0  ;;  %v2629_v29 = vsel %vm5943_vm10, %v2410_v49, 0  ;;  %v2733_v19 = vsel %vm5953_vm12, %v2410_v49, 0 }
 0xc33   : > { %v2417_v63 = vpop.permute.xlu1 %2416 }
 0xc34   : > { %v2422_v44 = vsel %vm407_vm0, %v2417_v63, 0 }
 0xc35   : > { %5100 = vmatpush3.bf16.xpose.msra.mxu1 %v2422_v44 }
 0xc36   : > { %5111 = vmatprep.subr.bf16.mxu1 %v5768_v47 }
 0xc3c   : > { %5102 = vmatmul.mubr.msk.bf16.vlgmr.msra.gmra.mrb[44].mxu1 %vm407_vm0, %v2413_v7 }
 0xc3d   : > { %5112 = vmatpush3.bf16.xpose.msra.mxu1 %v2422_v44  ;;  %5113 = vmatprep.mubr.msk.bf16.mxu1 %vm5769_vm5, %v5768_v47 }
 0xc3e   : > { %5123 = vmatprep.subr.bf16.mxu1 %v5768_v47 }
 0xc44   : > { %5114 = vmatmul.mubr.msk.bf16.vlgmr.msra.gmra.mrb[48].mxu1 %vm407_vm0, %v2525_v30 }
 0xc45   : > { %5124 = vmatpush3.bf16.xpose.msra.mxu1 %v2422_v44  ;;  %5125 = vmatprep.mubr.msk.bf16.mxu1 %vm5769_vm5, %v5768_v47 }
 0xc46   : > { %5135 = vmatprep.subr.bf16.mxu1 %v5768_v47 }
 0xc4c   : > { %5126 = vmatmul.mubr.msk.bf16.vlgmr.msra.gmra.mrb[52].mxu1 %vm407_vm0, %v2629_v29 }
 0xc4d   : > { %5136 = vmatpush3.bf16.xpose.msra.mxu1 %v2422_v44  ;;  %5137 = vmatprep.mubr.msk.bf16.mxu1 %vm5769_vm5, %v5768_v47  ;;  %v6773_v44 = vld [vmem:[%s7414_s6 + $0x6] ss:$0 sm:$0xff] }
 0xc4e   : > { %5147 = vmatprep.subr.bf16.mxu1 %v5768_v47 }
 0xc54   : > { %5138 = vmatmul.mubr.msk.bf16.vlgmr.msra.gmra.mrb[56].mxu1 %vm407_vm0, %v2733_v19 }
 0xc55   : > { %5151 = vmatprep.mubr.msk.bf16.mxu1 %vm5769_vm5, %v5768_v47 }
 0xc8a   : > { %v6740_v54 = vpop.f32.mrb[56].mxu0 }
 0xc8b   : > { %v6742_v9 = vpop.f32.mrb[57].mxu0 }
 0xc8c   : > { %v6744_v23 = vpop.f32.mrb[58].mxu0 }
 0xc8d   : > { %v6746_v52 = vpop.f32.mrb[59].mxu0  ;;  %v2181_v39 = vadd.f32 %v6744_v23, %v6773_v44 }
 0xc8f   : > { %v6817_v35 = vadd.f32 %v2181_v39, %v6652_v6 }
 0xc91   : > { %v2217_v23 = vsel %vm407_vm0, %v6817_v35, 0.0 }
 0xc92   : > { %v5089_v15 = vpop.f32.mrb[60].mxu0 }
 0xc93   : > { %v6748_v21 = vpop.f32.mrb[61].mxu0  ;;  %v2194_v7 = vadd.f32 %v5089_v15, %v6773_v44 }
 0xc94   : > { %v6750_v3 = vpop.f32.mrb[62].mxu0 }
 0xc95   : > { %v6752_v1 = vpop.f32.mrb[63].mxu0  ;;  %v2197_v37 = vadd.f32 %v6750_v3, %v6773_v44  ;;  %v5452_v3 = vld [vmem:[%s7411_s3 + $0x60] sm:$0xff]  }
 0xc96   : > { %5148 = vmatpush3.bf16.msra.mxu1 %v5452_v3 }
 0xc97   : > { %v6834_v55 = vadd.f32 %v2197_v37, %v6677_v8  ;;  %5149 = vmatprep.subr.bf16.mxu1 %v5768_v47 }
 0xd0f   : > { %v2458_v14 = vpop.f32.mrb[44].mxu1 }
 0xd10   : > { %v5103_v24 = vpop.f32.mrb[45].mxu1  ;;  %v2465_v13 = vsel %vm2464_vm7, %v2458_v14, -inf }
 0xd11   : > { %2466 = vmax.xlane.f32.xlu0 %v2465_v13  ;;  %v2461_v4 = vpop.f32.mrb[46].mxu1 }
 0xd12   : > { %v5104_v0 = vpop.f32.mrb[47].mxu1 }
 0xd17   : > { %v2564_v5 = vpop.f32.mrb[48].mxu1 }
 0xd18   : > { %v5115_v38 = vpop.f32.mrb[49].mxu1  ;;  %v2570_v50 = vsel %vm2464_vm7, %v2564_v5, -inf }
 0xd19   : > { %2571 = vmax.xlane.f32.xlu0 %v2570_v50  ;;  %v2567_v2 = vpop.f32.mrb[50].mxu1 }
 0xd1a   : > { %v5116_v45 = vpop.f32.mrb[51].mxu1 }
 0xd1f   : > { %v2668_v60 = vpop.f32.mrb[52].mxu1 }
 0xd20   : > { %v5127_v10 = vpop.f32.mrb[53].mxu1  ;;  %v2674_v48 = vsel %vm2464_vm7, %v2668_v60, -inf }
 0xd21   : > { %2675 = vmax.xlane.f32.xlu0 %v2674_v48  ;;  %v2671_v61 = vpop.f32.mrb[54].mxu1  ;;  %v2170_v48 = vadd.f32 %v6773_v44, %v6742_v9  ;;  %v2178_v9 = vadd.f32 %v6740_v54, %v6773_v44  ;;  %v2186_v54 = vadd.f32 %v6773_v44, %v6748_v21 }
 0xd22   : > { %v5128_v62 = vpop.f32.mrb[55].mxu1 }
 0xd23   : > { %v2200_v62 = vadd.f32 %v2170_v48, %v6643_v42  ;;  %v2204_v28 = vadd.f32 %v2186_v54, %v6664_v32 }
 0xd25   : > { %v2208_v42 = vsel %vm407_vm0, %v2200_v62, 0.0  ;;  %v2220_v21 = vsel %vm407_vm0, %v2204_v28, 0.0 }
 0xd27   : > { %v2772_v26 = vpop.f32.mrb[56].mxu1 }
 0xd28   : > { %v5139_v22 = vpop.f32.mrb[57].mxu1  ;;  %v2778_v11 = vsel %vm2464_vm7, %v2772_v26, -inf }
 0xd29   : > { %2779 = vmax.xlane.f32.xlu0 %v2778_v11  ;;  %v2775_v27 = vpop.f32.mrb[58].mxu1 }
 0xd2a   : > { %v5140_v41 = vpop.f32.mrb[59].mxu1 }
 0xd9e   : > { %v2467_v33 = vpop.xlane.xlu0 %2466 }
 0xd9f   : > { %v2468_v46 = vsub.f32 %v2458_v14, %v2467_v33  ;;  %v6778_v14 = vadd.f32 %v2194_v7, %v6675_v20 }
 0xda1   : > { %v2469_v36 = vmul.f32 1.442695, %v2468_v46  ;;  %v2226_v15 = vsel %vm407_vm0, %v6778_v14, 0.0 }
 0xda3   : > { %5628 = vpow2.f32 %v2469_v36 }
 0xda6   : > { %v2572_v43 = vpop.xlane.xlu0 %2571 }
 0xda7   : > { %v2573_v63 = vsub.f32 %v2564_v5, %v2572_v43 }
 0xda9   : > { %v2574_v49 = vmul.f32 1.442695, %v2573_v63 }
 0xdab   : > { %5630 = vpow2.f32 %v2574_v49 }
 0xdad   : > { %v5629_v30 = vpop.eup %5628 }
 0xdae   : > { %v2475_v29 = vpack.c.bf16 %v5629_v30, %v5629_v30  ;;  %v2676_v19 = vpop.xlane.xlu0 %2675  ;;  %v2471_v24 = vsel %vm2464_vm7, %v5629_v30, 0.0 }
 0xdaf   : > { %v2677_v13 = vsub.f32 %v2668_v60, %v2676_v19  ;;  %2472 = vadd.xlane.f32.xlu1 %v2471_v24 }
 0xdb0   : > { %5108 = vmatmul.mubr.msk.bf16.vlgmr.msra.gmra.mrb[64].mxu0 %vm2464_vm7, %v2475_v29 }
 0xdb1   : > { %v2678_v4 = vmul.f32 1.442695, %v2677_v13  ;;  %5118 = vmatpush3.bf16.msra.mxu0 %v2585_v57  ;;  %5119 = vmatprep.mubr.msk.bf16.mxu0 %vm5769_vm5, %v5768_v47 }
 0xdb2   : > { %5129 = vmatprep.subr.bf16.mxu0 %v5768_v47 }
 0xdb3   : > { %5632 = vpow2.f32 %v2678_v4  ;;  %2227 = vadd.xlane.f32.xlu1 %v2226_v15 }
 0xdb5   : > { %v5631_v0 = vpop.eup %5630 }
 0xdb6   : > { %v2780_v5 = vpop.xlane.xlu0 %2779  ;;  %v2576_v20 = vsel %vm2464_vm7, %v5631_v0, 0.0  ;;  %v2580_v38 = vpack.c.bf16 %v5631_v0, %v5631_v0 }
 0xdb7   : > { %v2781_v50 = vsub.f32 %v2772_v26, %v2780_v5  ;;  %2577 = vadd.xlane.f32.xlu0 %v2576_v20  ;;  %v2173_v26 = vadd.f32 %v6773_v44, %v6746_v52  ;;  %v2202_v52 = vadd.f32 %v2178_v9, %v6650_v53  ;;  %v2189_v53 = vadd.f32 %v6773_v44, %v6752_v1 }
 0xdb8   : > { %5120 = vmatmul.mubr.msk.bf16.vlgmr.msra.gmra.mrb[68].mxu0 %vm2464_vm7, %v2580_v38  ;;  %v2229_v1 = vsel %vm407_vm0, %v6834_v55, 0.0 }
 0xdb9   : > { %v2782_v2 = vmul.f32 1.442695, %v2781_v50  ;;  %5130 = vmatpush3.bf16.msra.mxu0 %v2689_v16  ;;  %5131 = vmatprep.mubr.msk.bf16.mxu0 %vm5769_vm5, %v5768_v47  ;;  %v6808_v27 = vadd.f32 %v2173_v26, %v6645_v51  ;;  %v2214_v51 = vsel %vm407_vm0, %v2202_v52, 0.0  ;;  %v6830_v6 = vadd.f32 %v2189_v53, %v6666_v17  ;;  %v5453_v17 = vld [vmem:[%s7411_s3 + $0x68] sm:$0xff]  }
 0xdba   : > { %5141 = vmatprep.subr.bf16.mxu0 %v5768_v47  ;;  %5150 = vmatpush3.bf16.msra.mxu1 %v5453_v17 }
 0xdbb   : > { %5634 = vpow2.f32 %v2782_v2  ;;  %v2211_v41 = vsel %vm407_vm0, %v6808_v27, 0.0  ;;  %v2223_v32 = vsel %vm407_vm0, %v6830_v6, 0.0 }
 0xdbd   : > { %v5633_v45 = vpop.eup %5632 }
 0xdbe   : > { %v2680_v60 = vsel %vm2464_vm7, %v5633_v45, 0.0  ;;  %v2684_v10 = vpack.c.bf16 %v5633_v45, %v5633_v45 }
 0xdbf   : > { %2681 = vadd.xlane.f32.xlu0 %v2680_v60 }
 0xdc0   : > { %5132 = vmatmul.mubr.msk.bf16.vlgmr.msra.gmra.mrb[72].mxu0 %vm2464_vm7, %v2684_v10 }
 0xdc1   : > { %5142 = vmatpush3.bf16.msra.mxu0 %v2793_v56  ;;  %5143 = vmatprep.mubr.msk.bf16.mxu0 %vm5769_vm5, %v5768_v47 }
 0xdc2   : > { %5155 = vmatprep.subr.bf16.mxu0 %v5768_v47 }
 0xdc5   : > { %v5635_v61 = vpop.eup %5634 }
 0xdc6   : > { %v2784_v22 = vsel %vm2464_vm7, %v5635_v61, 0.0  ;;  %v2788_v11 = vpack.c.bf16 %v5635_v61, %v5635_v61 }
 0xdc7   : > { %2785 = vadd.xlane.f32.xlu0 %v2784_v22 }
 0xdc8   : > { %5144 = vmatmul.mubr.msk.bf16.vlgmr.msra.gmra.mrb[76].mxu0 %vm2464_vm7, %v2788_v11 }
 0xdc9   : > { %5159 = vmatprep.mubr.msk.bf16.mxu0 %vm5769_vm5, %v5768_v47 }
 0xdcb   : > { %2209 = vadd.xlane.f32.xlu0 %v2208_v42 }
 0xdcf   : > { %2212 = vadd.xlane.f32.xlu0 %v2211_v41 }
 0xdd3   : > { %2215 = vadd.xlane.f32.xlu0 %v2214_v51 }
 0xdd7   : > { %2218 = vadd.xlane.f32.xlu0 %v2217_v23 }
 0xddb   : > { %2221 = vadd.xlane.f32.xlu0 %v2220_v21 }
 0xddf   : > { %2224 = vadd.xlane.f32.xlu0 %v2223_v32 }
 0xde3   : > { %2230 = vadd.xlane.f32.xlu0 %v2229_v1 }
 0xe3c   : > { %v2473_v36 = vpop.xlane.xlu1 %2472 }
 0xe3d   : > { %5636 = vrcp.f32 %v2473_v36 }
 0xe40   : > { %v2228_v7 = vpop.xlane.xlu1 %2227 }
 0xe41   : > { %v2238_v19 = vmul.f32 0.03125, %v2228_v7 }
 0xe43   : > { %v6858_v15 = vsub.f32 %v6778_v14, %v2238_v19 }
 0xe44   : > { %v2578_v8 = vpop.xlane.xlu0 %2577 }
 0xe45   : > { %v2254_v38 = vmul.f32 %v6858_v15, %v6858_v15  ;;  %5638 = vrcp.f32 %v2578_v8 }
 0xe47   : > { %v2274_v50 = vsel %vm407_vm0, %v2254_v38, 0.0  ;;  %v5637_v10 = vpop.eup %5636 }
 0xe4c   : > { %v2682_v57 = vpop.xlane.xlu0 %2681 }
 0xe4d   : > { %5640 = vrcp.f32 %v2682_v57 }
 0xe4f   : > { %v5639_v48 = vpop.eup %5638 }
 0xe54   : > { %v2786_v12 = vpop.xlane.xlu0 %2785 }
 0xe55   : > { %5642 = vrcp.f32 %v2786_v12  ;;  %v4568_v12 = vld [vmem:[%s7414_s6 + $0xb] ss:$0 sm:$0xff] }
 0xe58   : > { %v2210_v16 = vpop.xlane.xlu0 %2209 }
 0xe59   : > { %v2232_v59 = vmul.f32 0.03125, %v2210_v16 }
 0xe5b   : > { %v6847_v56 = vsub.f32 %v2200_v62, %v2232_v59 }
 0xe5c   : > { %v2213_v33 = vpop.xlane.xlu0 %2212 }
 0xe5d   : > { %v2248_v46 = vmul.f32 %v6847_v56, %v6847_v56  ;;  %v2233_v57 = vmul.f32 0.03125, %v2213_v33 }
 0xe5f   : > { %v2256_v43 = vsel %vm407_vm0, %v2248_v46, 0.0  ;;  %v6873_v59 = vsub.f32 %v6808_v27, %v2233_v57 }
 0xe60   : > { %v2216_v63 = vpop.xlane.xlu0 %2215  ;;  %2257 = vadd.xlane.f32.xlu0 %v2256_v43 }
 0xe61   : > { %v2234_v44 = vmul.f32 0.03125, %v2216_v63 }
 0xe63   : > { %v6852_v49 = vsub.f32 %v2202_v52, %v2234_v44  ;;  %v5641_v52 = vpop.eup %5640 }
 0xe64   : > { %v2219_v30 = vpop.xlane.xlu0 %2218  ;;  %v5643_v23 = vpop.eup %5642 }
 0xe65   : > { %v2250_v29 = vmul.f32 %v6852_v49, %v6852_v49  ;;  %v2235_v46 = vmul.f32 0.03125, %v2219_v30 }
 0xe67   : > { %v2262_v24 = vsel %vm407_vm0, %v2250_v29, 0.0  ;;  %v6876_v7 = vsub.f32 %v6817_v35, %v2235_v46 }
 0xe68   : > { %2263 = vadd.xlane.f32.xlu0 %v2262_v24  ;;  %v2222_v13 = vpop.xlane.xlu0 %2221  ;;  %v2249_v24 = vmul.f32 %v6873_v59, %v6873_v59 }
 0xe69   : > { %v2236_v4 = vmul.f32 0.03125, %v2222_v13 }
 0xe6b   : > { %v6860_v0 = vsub.f32 %v2204_v28, %v2236_v4  ;;  %v2259_v4 = vsel %vm407_vm0, %v2249_v24, 0.0 }
 0xe6c   : > { %v2225_v16 = vpop.xlane.xlu0 %2224 }
 0xe6d   : > { %v2252_v5 = vmul.f32 %v6860_v0, %v6860_v0  ;;  %v2237_v29 = vmul.f32 0.03125, %v2225_v16 }
 0xe6f   : > { %v2268_v20 = vsel %vm407_vm0, %v2252_v5, 0.0  ;;  %v6882_v27 = vsub.f32 %v6830_v6, %v2237_v29  ;;  %v2251_v5 = vmul.f32 %v6876_v7, %v6876_v7 }
 0xe70   : > { %2269 = vadd.xlane.f32.xlu0 %v2268_v20  ;;  %v2231_v13 = vpop.xlane.xlu0 %2230 }
 0xe71   : > { %v2239_v30 = vmul.f32 0.03125, %v2231_v13  ;;  %v2265_v20 = vsel %vm407_vm0, %v2251_v5, 0.0  ;;  %v2253_v38 = vmul.f32 %v6882_v27, %v6882_v27 }
 0xe73   : > { %v6888_v35 = vsub.f32 %v6834_v55, %v2239_v30  ;;  %v5454_v55 = vld [vmem:[%s7411_s3 + $0x80] sm:$0xff]  }
 0xe74   : > { %2275 = vadd.xlane.f32.xlu0 %v2274_v50  ;;  %v2271_v50 = vsel %vm407_vm0, %v2253_v38, 0.0  ;;  %5163 = vmatprep.subr.bf16.mxu1 %v5454_v55 }
 0xe75   : > { %v2255_v6 = vmul.f32 %v6888_v35, %v6888_v35 }
 0xe83   : > { %v2517_v2 = vpop.f32.mrb[64].mxu0 }
 0xe84   : > { %v5109_v45 = vpop.f32.mrb[65].mxu0  ;;  %v2523_v62 = vmul.f32 %v5637_v10, %v2517_v2  ;;  %v2277_v2 = vsel %vm407_vm0, %v2255_v6, 0.0  ;;  %v5694_v6 = vld [vmem:[%s7409_s1] sm:$0xff] }
 0xe85   : > { %v2520_v14 = vpop.f32.mrb[66].mxu0  ;;  %v5455_v45 = vld [vmem:[%s7411_s3 + $0x88] sm:$0xff]  }
 0xe86   : > { %v5110_v60 = vpop.f32.mrb[67].mxu0 }
 0xe8b   : > { %v2621_v61 = vpop.f32.mrb[68].mxu0 }
 0xe8c   : > { %v2627_v26 = vmul.f32 %v5639_v48, %v2621_v61  ;;  %v5121_v22 = vpop.f32.mrb[69].mxu0 }
 0xe8d   : > { %v2624_v11 = vpop.f32.mrb[70].mxu0 }
 0xe8e   : > { %v2628_v9 = vadd.f32 %v2627_v26, %v2523_v62  ;;  %v5122_v42 = vpop.f32.mrb[71].mxu0 }
 0xe93   : > { %v2725_v39 = vpop.f32.mrb[72].mxu0 }
 0xe94   : > { %v2731_v41 = vmul.f32 %v5641_v52, %v2725_v39  ;;  %v5133_v54 = vpop.f32.mrb[73].mxu0 }
 0xe95   : > { %v2728_v51 = vpop.f32.mrb[74].mxu0 }
 0xe96   : > { %v2732_v28 = vadd.f32 %v2731_v41, %v2628_v9  ;;  %v5134_v53 = vpop.f32.mrb[75].mxu0 }
 0xe9b   : > { %v2829_v37 = vpop.f32.mrb[76].mxu0 }
 0xe9c   : > { %v2835_v21 = vmul.f32 %v5643_v23, %v2829_v37  ;;  %v5145_v32 = vpop.f32.mrb[77].mxu0 }
 0xe9d   : > { %v2832_v1 = vpop.f32.mrb[78].mxu0 }
 0xe9e   : > { %v2836_v3 = vadd.f32 %v2835_v21, %v2732_v28  ;;  %v5146_v17 = vpop.f32.mrb[79].mxu0 }
 0xea0   : > { %v2837_v8 = vpack.c.bf16 %v2836_v3, %v2836_v3 }
 0xea2   : > { %5152 = vmatmul.mubr.msk.bf16.vlgmr.msra.gmra.mrb[60].mxu1 %vm407_vm0, %v2837_v8 }
 0xea3   : > { %5164 = vmatpush3.bf16.msra.mxu1 %v5454_v55 }
 0xea4   : > { %5165 = vmatprep.subr.bf16.mxu1 %v5455_v45 }
 0xea7   : > { %5166 = vmatpush3.bf16.msra.mxu1 %v5455_v45 }
 0xea8   : > { %5187 = vmatprep.subr.bf16.mxu1 %v5768_v47 }
 0xeed   : > { %v2258_v14 = vpop.xlane.xlu0 %2257 }
 0xeee   : > { %v2280_v10 = vmul.f32 0.03125, %v2258_v14 }
 0xef0   : > { %v2288_v61 = vadd.f32 1e-05, %v2280_v10 }
 0xef2   : > { %5644 = vrsqrt.f32 %v2288_v61 }
 0xef5   : > { %v2264_v60 = vpop.xlane.xlu0 %2263 }
 0xef6   : > { %v2282_v62 = vmul.f32 0.03125, %v2264_v60 }
 0xef8   : > { %v2290_v26 = vadd.f32 1e-05, %v2282_v62  ;;  %v5696_v62 = vld [vmem:[%s7409_s1 + $0x10] sm:$0xff] }
 0xefa   : > { %5646 = vrsqrt.f32 %v2290_v26 }
 0xefc   : > { %v5645_v1 = vpop.eup %5644 }
 0xefd   : > { %v2270_v48 = vpop.xlane.xlu0 %2269  ;;  %v2304_v8 = vmul.f32 %v5645_v1, %v6847_v56 }
 0xefe   : > { %v2284_v22 = vmul.f32 0.03125, %v2270_v48 }
 0xf00   : > { %v2292_v39 = vadd.f32 1e-05, %v2284_v22 }
 0xf01   : > { %v2276_v9 = vpop.xlane.xlu0 %2275 }
 0xf02   : > { %v2286_v41 = vmul.f32 0.03125, %v2276_v9  ;;  %5648 = vrsqrt.f32 %v2292_v39 }
 0xf04   : > { %v2294_v37 = vadd.f32 1e-05, %v2286_v41  ;;  %v5647_v16 = vpop.eup %5646 }
 0xf0c   : > { %v5649_v29 = vpop.eup %5648 }
 0xf0d   : > { %v2308_v5 = vmul.f32 %v5649_v29, %v6860_v0  ;;  %v5695_v0 = vld [vmem:[%s7409_s1 + $0x8] sm:$0xff] }
 0xf0e   : > { %v4572_v29 = vld [vmem:[%s7414_s6 + $0xc] ss:$0 sm:$0xff] }
 0xf75   : > { %v2897_v36 = vpop.f32.mrb[60].mxu1 }
 0xf76   : > { %v2898_v43 = vadd.f32 %v4568_v12, %v2897_v36  ;;  %v5153_v63 = vpop.f32.mrb[61].mxu1  ;;  %v4545_v12 = vld [vmem:[%s7414_s6 + $0x7] ss:$0 sm:$0xff] }
 0xf77   : > { %v2900_v44 = vpop.f32.mrb[62].mxu1 }
 0xf78   : > { %v5154_v19 = vpop.f32.mrb[63].mxu1  ;;  %v2903_v33 = vsel %vm407_vm0, %v2898_v43, 0.0  ;;  %v2317_v44 = vmul.f32 %v4545_v12, %v2304_v8 }
 0xf79   : > { %2904 = vadd.xlane.f32.xlu1 %v2903_v33  ;;  %v4546_v19 = vld [vmem:[%s7414_s6 + $0x8] ss:$0 sm:$0xff] }
 0xf7a   : > { %v6918_v30 = vadd.f32 %v4546_v19, %v2317_v44 }
 0xf7d   : > { %2260 = vadd.xlane.f32.xlu1 %v2259_v4 }
 0xf81   : > { %2266 = vadd.xlane.f32.xlu1 %v2265_v20 }
 0xf85   : > { %2272 = vadd.xlane.f32.xlu1 %v2271_v50 }
 0xf89   : > { %2278 = vadd.xlane.f32.xlu1 %v2277_v2  ;;  %v2995_v2 = vadd.f32 %v5694_v6, %v6918_v30 }
0x1006   : > { %v2905_v11 = vpop.xlane.xlu1 %2904 }
0x1007   : > { %v2906_v42 = vmul.f32 0.03125, %v2905_v11 }
0x1009   : > { %v6904_v52 = vsub.f32 %v2898_v43, %v2906_v42  ;;  %v2306_v43 = vmul.f32 %v5647_v16, %v6852_v49 }
0x100a   : > { %v2261_v54 = vpop.xlane.xlu1 %2260 }
0x100b   : > { %v2281_v51 = vmul.f32 0.03125, %v2261_v54  ;;  %v2908_v28 = vmul.f32 %v6904_v52, %v6904_v52  ;;  %v2319_v13 = vmul.f32 %v4545_v12, %v2306_v43 }
0x100d   : > { %v2289_v53 = vadd.f32 1e-05, %v2281_v51  ;;  %v2909_v23 = vsel %vm407_vm0, %v2908_v28, 0.0  ;;  %v5698_v51 = vld [vmem:[%s7409_s1 + $0x20] sm:$0xff] }
0x100e   : > { %v2267_v21 = vpop.xlane.xlu1 %2266  ;;  %2910 = vadd.xlane.f32.xlu0 %v2909_v23 }
0x100f   : > { %5650 = vrsqrt.f32 %v2289_v53  ;;  %v2283_v32 = vmul.f32 0.03125, %v2267_v21  ;;  %v5699_v53 = vld [vmem:[%s7409_s1 + $0x28] sm:$0xff] }
0x1010   : > { %5652 = vrsqrt.f32 %v2294_v37 }
0x1011   : > { %v2291_v3 = vadd.f32 1e-05, %v2283_v32 }
0x1012   : > { %v2273_v17 = vpop.xlane.xlu1 %2272 }
0x1013   : > { %5654 = vrsqrt.f32 %v2291_v3  ;;  %v2285_v57 = vmul.f32 0.03125, %v2273_v17  ;;  %v5701_v17 = vld [vmem:[%s7409_s1 + $0x38] sm:$0xff] }
0x1015   : > { %v2293_v46 = vadd.f32 1e-05, %v2285_v57  ;;  %v5456_v57 = vld [vmem:[%s7411_s3 + $0x70] sm:$0xff]  }
0x1016   : > { %v2279_v36 = vpop.xlane.xlu1 %2278  ;;  %5156 = vmatpush3.bf16.msra.mxu0 %v5456_v57 }
0x1017   : > { %5656 = vrsqrt.f32 %v2293_v46  ;;  %v2287_v63 = vmul.f32 0.03125, %v2279_v36  ;;  %5157 = vmatprep.subr.bf16.mxu0 %v5768_v47  ;;  %v5458_v46 = vld [vmem:[%s7411_s3 + $0x90] sm:$0xff]  }
0x1019   : > { %v5651_v56 = vpop.eup %5650  ;;  %v2295_v33 = vadd.f32 1e-05, %v2287_v63 }
0x101a   : > { %v2305_v24 = vmul.f32 %v5651_v56, %v6873_v59  ;;  %v5653_v4 = vpop.eup %5652  ;;  %v6928_v59 = vadd.f32 %v4546_v19, %v2319_v13  ;;  %v4573_v56 = vld [vmem:[%s7414_s6 + $0xd] ss:$0 sm:$0xff] }
0x101b   : > { %5658 = vrsqrt.f32 %v2295_v33  ;;  %v2310_v55 = vmul.f32 %v5653_v4, %v6858_v15  ;;  %v5697_v15 = vld [vmem:[%s7409_s1 + $0x18] sm:$0xff] }
0x101c   : > { %v2318_v49 = vmul.f32 %v4545_v12, %v2305_v24  ;;  %v2997_v26 = vadd.f32 %v5696_v62, %v6928_v59 }
0x101d   : > { %v5655_v20 = vpop.eup %5654  ;;  %v2323_v42 = vmul.f32 %v4545_v12, %v2310_v55 }
0x101e   : > { %v2307_v38 = vmul.f32 %v5655_v20, %v6876_v7  ;;  %v6922_v50 = vadd.f32 %v4546_v19, %v2318_v49  ;;  %v2321_v7 = vmul.f32 %v4545_v12, %v2308_v5  ;;  %v5459_v5 = vld [vmem:[%s7411_s3 + $0x98] sm:$0xff]  }
0x101f   : > { %v2336_v21 = vadd.f32 %v4546_v19, %v2323_v42 }
0x1020   : > { %v2320_v45 = vmul.f32 %v4545_v12, %v2307_v38  ;;  %v2996_v14 = vadd.f32 %v5695_v0, %v6922_v50  ;;  %v2334_v9 = vadd.f32 %v4546_v19, %v2321_v7  ;;  %v3106_v49 = vpack.c.bf16 %v6922_v50, %v6918_v30  ;;  %v4586_v38 = vld [vmem:[%s7414_s6 + $0xf] ss:$0 sm:$0xff] }
0x1021   : > { %v5657_v60 = vpop.eup %5656 }
0x1022   : > { %v2309_v10 = vmul.f32 %v5657_v60, %v6882_v27  ;;  %v3003_v48 = vpack.c.bf16 %v2996_v14, %v2995_v2  ;;  %v2333_v61 = vadd.f32 %v4546_v19, %v2320_v45  ;;  %v2999_v28 = vadd.f32 %v5698_v51, %v2334_v9 }
0x1024   : > { %5167 = vmatprep.mubr.msk.bf16.mxu1 %vm407_vm0, %v3003_v48  ;;  %v2998_v22 = vadd.f32 %v5697_v15, %v2333_v61  ;;  %v2322_v11 = vmul.f32 %v4545_v12, %v2309_v10 }
0x1025   : > { %v5659_v39 = vpop.eup %5658 }
0x1026   : > { %v2311_v27 = vmul.f32 %v5659_v39, %v6888_v35  ;;  %v3004_v41 = vpack.c.bf16 %v2998_v22, %v2997_v26  ;;  %v2335_v54 = vadd.f32 %v4546_v19, %v2322_v11  ;;  %v5700_v35 = vld [vmem:[%s7409_s1 + $0x30] sm:$0xff] }
0x1027   : > { %v3001_v3 = vadd.f32 %v5700_v35, %v2336_v21 }
0x1028   : > { %5168 = vmatmul.mubr.msk.bf16.vlgmr.msra.gmra.mrb[64].mxu1 %vm407_vm0, %v3004_v41  ;;  %v3000_v23 = vadd.f32 %v5699_v53, %v2335_v54  ;;  %v2324_v37 = vmul.f32 %v4545_v12, %v2311_v27  ;;  %v5457_v12 = vld [vmem:[%s7411_s3 + $0x78] sm:$0xff]  }
0x1029   : > { %5158 = vmatpush3.bf16.msra.mxu0 %v5457_v12 }
0x102a   : > { %v3005_v32 = vpack.c.bf16 %v3000_v23, %v2999_v28  ;;  %v2337_v1 = vadd.f32 %v4546_v19, %v2324_v37  ;;  %5175 = vmatprep.subr.bf16.mxu0 %v5458_v46 }
0x102c   : > { %5171 = vmatprep.mubr.msk.bf16.mxu1 %vm407_vm0, %v3005_v32  ;;  %v3002_v8 = vadd.f32 %v5701_v17, %v2337_v1  ;;  %v3109_v20 = vpack.c.bf16 %v2337_v1, %v2336_v21 }
0x102e   : > { %v3006_v16 = vpack.c.bf16 %v3002_v8, %v3001_v3  ;;  %v4597_v3 = vld [vmem:[%s7414_s6 + $0x10] ss:$0 sm:$0xff] }
0x1030   : > { %5172 = vmatmul.mubr.msk.bf16.gmra.mrb[68].mxu1 %vm407_vm0, %v3006_v16 }
0x1031   : > { %5195 = vmatprep.mubr.msk.bf16.mxu1 %vm5769_vm5, %v5768_v47 }
0x109b   : > { %v2911_v36 = vpop.xlane.xlu0 %2910 }
0x109c   : > { %v2912_v43 = vmul.f32 0.03125, %v2911_v36 }
0x109e   : > { %v2913_v63 = vadd.f32 1e-05, %v2912_v43 }
0x10a0   : > { %5660 = vrsqrt.f32 %v2913_v63 }
0x10aa   : > { %v5661_v44 = vpop.eup %5660 }
0x10ab   : > { %v2915_v19 = vmul.f32 %v5661_v44, %v6904_v52  ;;  %v3107_v52 = vpack.c.bf16 %v2333_v61, %v6928_v59 }
0x10ad   : > { %v2921_v33 = vmul.f32 %v4572_v29, %v2915_v19 }
0x10af   : > { %v6979_v24 = vadd.f32 %v4573_v56, %v2921_v33 }
0x10b1   : > { %v2928_v13 = vadd.f32 %v6979_v24, %v6688_v25  ;;  %v3108_v25 = vpack.c.bf16 %v2335_v54, %v2334_v9  ;;  %v4578_v54 = vld [vmem:[%s7414_s6 + $0xe] ss:$0 sm:$0xff] }
0x10b3   : > { %v2929_v4 = vpack.c.bf16 %v2928_v13, %v2928_v13 }
0x10b5   : > { %5160 = vmatmul.mubr.msk.bf16.vlgmr.msra.gmra.mrb[80].mxu0 %vm407_vm0, %v2929_v4 }
0x10b6   : > { %5176 = vmatpush3.bf16.msra.mxu0 %v5458_v46  ;;  %5179 = vmatprep.mubr.msk.bf16.mxu0 %vm407_vm0, %v3106_v49 }
0x10b7   : > { %5177 = vmatprep.subr.bf16.mxu0 %v5459_v5 }
0x10ba   : > { %5178 = vmatpush3.bf16.msra.mxu0 %v5459_v5 }
0x10bb   : > { %5199 = vmatprep.subr.bf16.mxu0 %v5768_v47 }
0x10bd   : > { %5180 = vmatmul.mubr.msk.bf16.vlgmr.msra.gmra.mrb[84].mxu0 %vm407_vm0, %v3107_v52 }
0x10be   : > { %5183 = vmatprep.mubr.msk.bf16.mxu0 %vm407_vm0, %v3108_v25 }
0x10c5   : > { %5184 = vmatmul.mubr.msk.bf16.gmra.mrb[88].mxu0 %vm407_vm0, %v3109_v20 }
0x10c6   : > { %5207 = vmatprep.mubr.msk.bf16.mxu0 %vm5769_vm5, %v5768_v47 }
0x10fb   : > { %v5169_v30 = vpop.f32.mrb[64].mxu1 }
0x10fc   : > { %v3075_v50 = vpop.f32.mrb[65].mxu1  ;;  %v3084_v2 = vadd.f32 %v5169_v30, %v4586_v38 }
0x10fd   : > { %v5170_v6 = vpop.f32.mrb[66].mxu1  ;;  %v3076_v45 = vadd.f32 %v4586_v38, %v3075_v50 }
0x10fe   : > { %v3087_v59 = vadd.f32 %v5170_v6, %v4586_v38  ;;  %v3078_v55 = vpop.f32.mrb[67].mxu1 }
0x10ff   : > { %v3079_v0 = vadd.f32 %v4586_v38, %v3078_v55 }
0x1100   : > { %v3212_v14 = vpack.c.bf16 %v3087_v59, %v3084_v2 }
0x1101   : > { %v3211_v7 = vpack.c.bf16 %v3079_v0, %v3076_v45 }
0x1102   : > { %v7006_v39 = vsel %vm407_vm0, %v3212_v14, 0 }
0x1103   : > { %v5173_v60 = vpop.f32.mrb[68].mxu1  ;;  %v7001_v10 = vsel %vm407_vm0, %v3211_v7, 0 }
0x1104   : > { %v3091_v48 = vpop.f32.mrb[69].mxu1  ;;  %5188 = vmatpush3.bf16.xpose.msra.mxu1 %v7001_v10  ;;  %v3100_v62 = vadd.f32 %v5173_v60, %v4586_v38 }
0x1105   : > { %v5174_v61 = vpop.f32.mrb[70].mxu1  ;;  %5189 = vmatprep.subr.bf16.mxu1 %v5768_v47  ;;  %v3092_v22 = vadd.f32 %v4586_v38, %v3091_v48 }
0x1106   : > { %v3103_v26 = vadd.f32 %v5174_v61, %v4586_v38  ;;  %v3094_v15 = vpop.f32.mrb[71].mxu1 }
0x1107   : > { %v3095_v11 = vadd.f32 %v4586_v38, %v3094_v15 }
0x1108   : > { %v3214_v9 = vpack.c.bf16 %v3103_v26, %v3100_v62 }
0x1109   : > { %v3213_v42 = vpack.c.bf16 %v3095_v11, %v3092_v22 }
0x110a   : > { %v7016_v41 = vsel %vm407_vm0, %v3214_v9, 0 }
0x110b   : > { %v7011_v27 = vsel %vm407_vm0, %v3213_v42, 0 }
0x110c   : > { %5190 = vmatpush3.bf16.xpose.msra.mxu1 %v7006_v39 }
0x110d   : > { %5191 = vmatprep.subr.bf16.mxu1 %v5768_v47 }
0x1114   : > { %5192 = vmatpush3.bf16.xpose.msra.mxu1 %v7011_v27 }
0x1115   : > { %5193 = vmatprep.subr.bf16.mxu1 %v5768_v47 }
0x111c   : > { %5194 = vmatpush3.bf16.xpose.msra.mxu1 %v7016_v41 }
0x111d   : > { %5223 = vmatprep.subr.bf16.mxu1 %v5768_v47 }
0x1188   : > { %v2989_v51 = vpop.f32.mrb[80].mxu0 }
0x1189   : > { %v2990_v28 = vadd.f32 %v4578_v54, %v2989_v51  ;;  %v5161_v53 = vpop.f32.mrb[81].mxu0 }
0x118a   : > { %v2992_v23 = vpop.f32.mrb[82].mxu0 }
0x118b   : > { %v3209_v37 = vmul.f32 0.35355338, %v2990_v28  ;;  %v5162_v21 = vpop.f32.mrb[83].mxu0 }
0x118d   : > { %v7023_v32 = vpack.c.bf16 %v3209_v37, %v3209_v37 }
0x118f   : > { %v3219_v1 = vsel %vm5963_vm14, %v7023_v32, 0  ;;  %v3335_v22 = vsel %vm5933_vm6, %v7023_v32, 0 }
0x1190   : > { %v5181_v35 = vpop.f32.mrb[84].mxu0  ;;  %5196 = vmatmul.mubr.msk.bf16.vlgmr.msra.gmra.mrb[72].mxu1 %vm407_vm0, %v3219_v1 }
0x1191   : > { %v3178_v17 = vpop.f32.mrb[85].mxu0  ;;  %5231 = vmatprep.mubr.msk.bf16.mxu1 %vm5769_vm5, %v5768_v47  ;;  %v3187_v57 = vadd.f32 %v5181_v35, %v4597_v3 }
0x1192   : > { %v5182_v8 = vpop.f32.mrb[86].mxu0  ;;  %v3179_v46 = vadd.f32 %v4597_v3, %v3178_v17 }
0x1193   : > { %v3190_v16 = vadd.f32 %v5182_v8, %v4597_v3  ;;  %v3181_v12 = vpop.f32.mrb[87].mxu0 }
0x1194   : > { %v3182_v36 = vadd.f32 %v4597_v3, %v3181_v12 }
0x1195   : > { %v7034_v43 = vpack.c.bf16 %v3190_v16, %v3187_v57 }
0x1196   : > { %v7036_v34 = vpack.c.bf16 %v3182_v36, %v3179_v46  ;;  %v3439_v46 = vsel %vm5943_vm10, %v7023_v32, 0 }
0x1197   : > { %v3221_v20 = vsel %vm5975_vm15, %v7034_v43, 0  ;;  %v3337_v30 = vsel %vm6069_vm1, %v7034_v43, 0  ;;  %v3441_v42 = vsel %vm6164_vm3, %v7034_v43, 0 }
0x1198   : > { %v5185_v63 = vpop.f32.mrb[88].mxu0  ;;  %v3220_v29 = vsel %vm5975_vm15, %v7036_v34, 0  ;;  %v3336_v56 = vsel %vm6069_vm1, %v7036_v34, 0  ;;  %v3440_v9 = vsel %vm6164_vm3, %v7036_v34, 0  ;;  %v3544_v36 = vsel %vm6275_vm4, %v7036_v34, 0 }
0x1199   : > { %v3194_v33 = vpop.f32.mrb[89].mxu0  ;;  %5200 = vmatpush3.bf16.msra.mxu0 %v3220_v29  ;;  %5224 = vmatpush3.bf16.msra.mxu1 %v3336_v56  ;;  %v3203_v4 = vadd.f32 %v5185_v63, %v4597_v3  ;;  %v3545_v63 = vsel %vm6275_vm4, %v7034_v43, 0 }
0x119a   : > { %v5186_v13 = vpop.f32.mrb[90].mxu0  ;;  %5201 = vmatprep.subr.bf16.mxu0 %v5768_v47  ;;  %5225 = vmatprep.subr.bf16.mxu1 %v5768_v47  ;;  %v3195_v52 = vadd.f32 %v4597_v3, %v3194_v33 }
0x119b   : > { %v3206_v5 = vadd.f32 %v5186_v13, %v4597_v3  ;;  %v3197_v49 = vpop.f32.mrb[91].mxu0 }
0x119c   : > { %v3198_v25 = vadd.f32 %v4597_v3, %v3197_v49 }
0x119d   : > { %v7052_v38 = vpack.c.bf16 %v3206_v5, %v3203_v4  ;;  %5202 = vmatpush3.bf16.msra.mxu0 %v3221_v20  ;;  %5226 = vmatpush3.bf16.msra.mxu1 %v3337_v30 }
0x119e   : > { %v7054_v50 = vpack.c.bf16 %v3198_v25, %v3195_v52  ;;  %5203 = vmatprep.subr.bf16.mxu0 %v5768_v47  ;;  %5227 = vmatprep.subr.bf16.mxu1 %v5768_v47 }
0x119f   : > { %v3223_v59 = vsel %vm5975_vm15, %v7052_v38, 0  ;;  %v3339_v55 = vsel %vm6069_vm1, %v7052_v38, 0  ;;  %v3443_v54 = vsel %vm6164_vm3, %v7052_v38, 0  ;;  %v3547_v34 = vsel %vm6275_vm4, %v7052_v38, 0 }
0x11a0   : > { %v3222_v6 = vsel %vm5975_vm15, %v7054_v50, 0  ;;  %v3338_v2 = vsel %vm6069_vm1, %v7054_v50, 0  ;;  %v3442_v31 = vsel %vm6164_vm3, %v7054_v50, 0  ;;  %v3546_v58 = vsel %vm6275_vm4, %v7054_v50, 0 }
0x11a1   : > { %5204 = vmatpush3.bf16.msra.mxu0 %v3222_v6  ;;  %5228 = vmatpush3.bf16.msra.mxu1 %v3338_v2 }
0x11a2   : > { %5205 = vmatprep.subr.bf16.mxu0 %v5768_v47  ;;  %5229 = vmatprep.subr.bf16.mxu1 %v5768_v47 }
0x11a5   : > { %5206 = vmatpush3.bf16.msra.mxu0 %v3223_v59  ;;  %5230 = vmatpush3.bf16.msra.mxu1 %v3339_v55 }
0x11a6   : > { %5211 = vmatprep.subr.bf16.mxu0 %v5768_v47  ;;  %5235 = vmatprep.subr.bf16.mxu1 %v5768_v47 }
0x1263   : > { %v3273_v45 = vpop.f32.mrb[72].mxu1 }
0x1264   : > { %v5197_v0 = vpop.f32.mrb[73].mxu1  ;;  %v3279_v14 = vsel %vm729_vm2, %v3273_v45, -inf }
0x1265   : > { %3280 = vmax.xlane.f32.xlu1 %v3279_v14  ;;  %v3276_v7 = vpop.f32.mrb[74].mxu1 }
0x1266   : > { %v5198_v60 = vpop.f32.mrb[75].mxu1 }
0x12f2   : > { %v3281_v48 = vpop.xlane.xlu1 %3280 }
0x12f3   : > { %v3282_v61 = vsub.f32 %v3273_v45, %v3281_v48 }
0x12f5   : > { %v3283_v62 = vmul.f32 1.442695, %v3282_v61 }
0x12f7   : > { %5662 = vpow2.f32 %v3283_v62 }
0x1301   : > { %v7075_v26 = vpop.eup %5662 }
0x1302   : > { %v3289_v15 = vpack.c.bf16 %v7075_v26, %v7075_v26  ;;  %v3285_v49 = vsel %vm729_vm2, %v7075_v26, 0.0 }
0x1304   : > { %5208 = vmatmul.mubr.msk.bf16.vlgmr.msra.gmra.mrb[92].mxu0 %vm729_vm2, %v3289_v15 }
0x1305   : > { %5212 = vmatpush3.bf16.xpose.msra.mxu0 %v7001_v10  ;;  %5219 = vmatprep.mubr.msk.bf16.mxu0 %vm5769_vm5, %v5768_v47 }
0x1306   : > { %5213 = vmatprep.subr.bf16.mxu0 %v5768_v47 }
0x130d   : > { %5214 = vmatpush3.bf16.xpose.msra.mxu0 %v7006_v39 }
0x130e   : > { %5215 = vmatprep.subr.bf16.mxu0 %v5768_v47 }
0x1315   : > { %5216 = vmatpush3.bf16.xpose.msra.mxu0 %v7011_v27 }
0x1316   : > { %5217 = vmatprep.subr.bf16.mxu0 %v5768_v47 }
0x131d   : > { %5218 = vmatpush3.bf16.xpose.msra.mxu0 %v7016_v41 }
0x131e   : > { %5247 = vmatprep.subr.bf16.mxu0 %v5768_v47 }
0x1324   : > { %5220 = vmatmul.mubr.msk.bf16.vlgmr.msra.gmra.mrb[96].mxu0 %vm407_vm0, %v3335_v22 }
0x1325   : > { %5248 = vmatpush3.bf16.msra.mxu0 %v3440_v9  ;;  %5255 = vmatprep.mubr.msk.bf16.mxu0 %vm5769_vm5, %v5768_v47 }
0x1326   : > { %5249 = vmatprep.subr.bf16.mxu0 %v5768_v47 }
0x1329   : > { %5250 = vmatpush3.bf16.msra.mxu0 %v3441_v42 }
0x132a   : > { %5251 = vmatprep.subr.bf16.mxu0 %v5768_v47 }
0x132d   : > { %5252 = vmatpush3.bf16.msra.mxu0 %v3442_v31 }
0x132e   : > { %5253 = vmatprep.subr.bf16.mxu0 %v5768_v47 }
0x1331   : > { %5254 = vmatpush3.bf16.msra.mxu0 %v3443_v54 }
0x1332   : > { %5259 = vmatprep.subr.bf16.mxu0 %v5768_v47 }
0x13d7   : > { %v7112_v51 = vpop.f32.mrb[92].mxu0 }
0x13d8   : > { %v5209_v28 = vpop.f32.mrb[93].mxu0 }
0x13d9   : > { %v3330_v53 = vpop.f32.mrb[94].mxu0 }
0x13da   : > { %v5210_v23 = vpop.f32.mrb[95].mxu0  ;;  %v5460_v53 = vld [vmem:[%s7411_s3 + $0xa0] sm:$0xff]  }
0x13f7   : > { %v3377_v37 = vpop.f32.mrb[96].mxu0 }
0x13f8   : > { %v5221_v21 = vpop.f32.mrb[97].mxu0  ;;  %v3383_v1 = vsel %vm729_vm2, %v3377_v37, -inf }
0x13f9   : > { %3384 = vmax.xlane.f32.xlu0 %v3383_v1  ;;  %v3380_v35 = vpop.f32.mrb[98].mxu0 }
0x13fa   : > { %v5222_v3 = vpop.f32.mrb[99].mxu0 }
0x1486   : > { %v3385_v17 = vpop.xlane.xlu0 %3384 }
0x1487   : > { %v3386_v8 = vsub.f32 %v3377_v37, %v3385_v17 }
0x1489   : > { %v3387_v57 = vmul.f32 1.442695, %v3386_v8 }
0x148b   : > { %5664 = vpow2.f32 %v3387_v57 }
0x1495   : > { %v7115_v16 = vpop.eup %5664 }
0x1496   : > { %v3393_v12 = vpack.c.bf16 %v7115_v16, %v7115_v16  ;;  %v3389_v40 = vsel %vm729_vm2, %v7115_v16, 0.0  ;;  %v4616_v16 = vld [vmem:[%s7414_s6 + $0x11] ss:$0 sm:$0xff] }
0x1498   : > { %5232 = vmatmul.mubr.msk.bf16.vlgmr.msra.gmra.mrb[76].mxu1 %vm729_vm2, %v3393_v12 }
0x1499   : > { %5236 = vmatpush3.bf16.xpose.msra.mxu1 %v7001_v10  ;;  %5243 = vmatprep.mubr.msk.bf16.mxu1 %vm5769_vm5, %v5768_v47 }
0x149a   : > { %5237 = vmatprep.subr.bf16.mxu1 %v5768_v47 }
0x14a1   : > { %5238 = vmatpush3.bf16.xpose.msra.mxu1 %v7006_v39 }
0x14a2   : > { %5239 = vmatprep.subr.bf16.mxu1 %v5768_v47 }
0x14a9   : > { %5240 = vmatpush3.bf16.xpose.msra.mxu1 %v7011_v27 }
0x14aa   : > { %5241 = vmatprep.subr.bf16.mxu1 %v5768_v47 }
0x14b1   : > { %5242 = vmatpush3.bf16.xpose.msra.mxu1 %v7016_v41 }
0x14b2   : > { %5271 = vmatprep.subr.bf16.mxu1 %v5768_v47 }
0x14b8   : > { %5244 = vmatmul.mubr.msk.bf16.vlgmr.msra.gmra.mrb[80].mxu1 %vm407_vm0, %v3439_v46 }
0x14b9   : > { %5272 = vmatpush3.bf16.msra.mxu1 %v3544_v36  ;;  %5279 = vmatprep.mubr.msk.bf16.mxu1 %vm5769_vm5, %v5768_v47 }
0x14ba   : > { %5273 = vmatprep.subr.bf16.mxu1 %v5768_v47 }
0x14bd   : > { %5274 = vmatpush3.bf16.msra.mxu1 %v3545_v63 }
0x14be   : > { %5275 = vmatprep.subr.bf16.mxu1 %v5768_v47 }
0x14c1   : > { %5276 = vmatpush3.bf16.msra.mxu1 %v3546_v58 }
0x14c2   : > { %5277 = vmatprep.subr.bf16.mxu1 %v5768_v47 }
0x14c5   : > { %5278 = vmatpush3.bf16.msra.mxu1 %v3547_v34 }
0x14c6   : > { %5283 = vmatprep.subr.bf16.mxu1 %v5768_v47 }
0x156b   : > { %v3431_v44 = vpop.f32.mrb[76].mxu1 }
0x156c   : > { %v5233_v29 = vpop.f32.mrb[77].mxu1 }
0x156d   : > { %v3434_v43 = vpop.f32.mrb[78].mxu1 }
0x156e   : > { %v5234_v19 = vpop.f32.mrb[79].mxu1 }
0x158b   : > { %v3481_v56 = vpop.f32.mrb[80].mxu1 }
0x158c   : > { %v5245_v33 = vpop.f32.mrb[81].mxu1  ;;  %v3487_v13 = vsel %vm729_vm2, %v3481_v56, -inf }
0x158d   : > { %3488 = vmax.xlane.f32.xlu1 %v3487_v13  ;;  %v3484_v4 = vpop.f32.mrb[82].mxu1  ;;  %v5462_v13 = vld [vmem:[%s7411_s3 + $0xb0] sm:$0xff]  }
0x158e   : > { %v5246_v5 = vpop.f32.mrb[83].mxu1  ;;  %v5464_v4 = vld [vmem:[%s7412_s4 + $0x20] sm:$0xff]  }
0x158f   : > { %v5465_v5 = vld [vmem:[%s7412_s4 + $0x28] sm:$0xff]  }
0x1591   : > { %3286 = vadd.xlane.f32.xlu1 %v3285_v49 }
0x161a   : > { %v3489_v18 = vpop.xlane.xlu1 %3488 }
0x161b   : > { %v3490_v52 = vsub.f32 %v3481_v56, %v3489_v18 }
0x161d   : > { %v3491_v25 = vmul.f32 1.442695, %v3490_v52 }
0x161e   : > { %v3287_v0 = vpop.xlane.xlu1 %3286 }
0x161f   : > { %5666 = vpow2.f32 %v3491_v25 }
0x1620   : > { %5668 = vrcp.f32 %v3287_v0 }
0x1629   : > { %v5667_v20 = vpop.eup %5666 }
0x162a   : > { %v3493_v30 = vsel %vm729_vm2, %v5667_v20, 0.0  ;;  %v3497_v38 = vpack.c.bf16 %v5667_v20, %v5667_v20  ;;  %v5669_v61 = vpop.eup %5668  ;;  %v4620_v20 = vld [vmem:[%s7414_s6 + $0x12] ss:$0 sm:$0xff] }
0x162b   : > { %3494 = vadd.xlane.f32.xlu1 %v3493_v30  ;;  %v3333_v11 = vmul.f32 %v5669_v61, %v7112_v51  ;;  %v5461_v51 = vld [vmem:[%s7411_s3 + $0xa8] sm:$0xff]  }
0x162c   : > { %5256 = vmatmul.mubr.msk.bf16.vlgmr.msra.gmra.mrb[100].mxu0 %vm729_vm2, %v3497_v38  ;;  %v4621_v38 = vld [vmem:[%s7414_s6 + $0x13] ss:$0 sm:$0xff] }
0x162d   : > { %5260 = vmatpush3.bf16.xpose.msra.mxu0 %v7001_v10  ;;  %5267 = vmatprep.mubr.msk.bf16.mxu0 %vm5769_vm5, %v5768_v47  ;;  %v3543_v10 = vsel %vm5953_vm12, %v7023_v32, 0 }
0x162e   : > { %5261 = vmatprep.subr.bf16.mxu0 %v5768_v47 }
0x1635   : > { %5262 = vmatpush3.bf16.xpose.msra.mxu0 %v7006_v39 }
0x1636   : > { %5263 = vmatprep.subr.bf16.mxu0 %v5768_v47 }
0x163d   : > { %5264 = vmatpush3.bf16.xpose.msra.mxu0 %v7011_v27 }
0x163e   : > { %5265 = vmatprep.subr.bf16.mxu0 %v5768_v47 }
0x1645   : > { %5266 = vmatpush3.bf16.xpose.msra.mxu0 %v7016_v41 }
0x1646   : > { %5291 = vmatprep.subr.bf16.mxu0 %v5768_v47 }
0x164c   : > { %5268 = vmatmul.mubr.msk.bf16.vlgmr.msra.gmra.mrb[104].mxu0 %vm407_vm0, %v3543_v10 }
0x164d   : > { %5295 = vmatprep.mubr.msk.bf16.mxu0 %vm5769_vm5, %v5768_v47  ;;  %5292 = vmatpush3.bf16.msra.mxu0 %v5462_v13  ;;  %v5470_v13 = vld [vmem:[%s7411_s3 + $0xd0] sm:$0xff]  }
0x164e   : > { %5293 = vmatprep.subr.bf16.mxu0 %v5768_v47 }
0x16b8   : > { %v3495_v48 = vpop.xlane.xlu1 %3494 }
0x16ff   : > { %v3535_v39 = vpop.f32.mrb[100].mxu0 }
0x1700   : > { %v5257_v50 = vpop.f32.mrb[101].mxu0 }
0x1701   : > { %v3538_v6 = vpop.f32.mrb[102].mxu0 }
0x1702   : > { %v5258_v2 = vpop.f32.mrb[103].mxu0  ;;  %v5466_v6 = vld [vmem:[%s7412_s4 + $0x30] sm:$0xff]  }
0x1703   : > { %v5467_v2 = vld [vmem:[%s7412_s4 + $0x38] sm:$0xff]  }
0x171f   : > { %v3585_v27 = vpop.f32.mrb[104].mxu0 }
0x1720   : > { %v5269_v59 = vpop.f32.mrb[105].mxu0  ;;  %v3591_v55 = vsel %vm729_vm2, %v3585_v27, -inf }
0x1721   : > { %3592 = vmax.xlane.f32.xlu0 %v3591_v55  ;;  %v3588_v41 = vpop.f32.mrb[106].mxu0 }
0x1722   : > { %v5270_v45 = vpop.f32.mrb[107].mxu0 }
0x1725   : > { %3390 = vadd.xlane.f32.xlu0 %v3389_v40 }
0x17ae   : > { %v3593_v32 = vpop.xlane.xlu0 %3592 }
0x17af   : > { %v3594_v14 = vsub.f32 %v3585_v27, %v3593_v32  ;;  %v4626_v27 = vld [vmem:[%s7414_s6 + $0x14] ss:$0 sm:$0xff] }
0x17b1   : > { %v3595_v7 = vmul.f32 1.442695, %v3594_v14  ;;  %v4638_v14 = vld [vmem:[%s7414_s6 + $0x15] ss:$0 sm:$0xff] }
0x17b2   : > { %v3391_v60 = vpop.xlane.xlu0 %3390 }
0x17b3   : > { %5670 = vpow2.f32 %v3595_v7 }
0x17b4   : > { %5672 = vrcp.f32 %v3391_v60 }
0x17b5   : > { %5674 = vrcp.f32 %v3495_v48 }
0x17bd   : > { %v5671_v62 = vpop.eup %5670 }
0x17be   : > { %v5673_v26 = vpop.eup %5672  ;;  %v3597_v15 = vsel %vm729_vm2, %v5671_v62, 0.0  ;;  %v3601_v22 = vpack.c.bf16 %v5671_v62, %v5671_v62 }
0x17bf   : > { %3598 = vadd.xlane.f32.xlu0 %v3597_v15  ;;  %v3437_v9 = vmul.f32 %v5673_v26, %v3431_v44  ;;  %v5675_v42 = vpop.eup %5674 }
0x17c0   : > { %5280 = vmatmul.mubr.msk.bf16.vlgmr.msra.gmra.mrb[84].mxu1 %vm729_vm2, %v3601_v22  ;;  %v3541_v31 = vmul.f32 %v5675_v42, %v3535_v39 }
0x17c1   : > { %v3438_v54 = vadd.f32 %v3437_v9, %v3333_v11  ;;  %5287 = vmatprep.mubr.msk.bf16.mxu1 %vm5769_vm5, %v5768_v47  ;;  %5284 = vmatpush3.bf16.msra.mxu1 %v5460_v53 }
0x17c2   : > { %5285 = vmatprep.subr.bf16.mxu1 %v5768_v47 }
0x17c3   : > { %v3542_v28 = vadd.f32 %v3541_v31, %v3438_v54 }
0x17c5   : > { %5286 = vmatpush3.bf16.msra.mxu1 %v5461_v51 }
0x17c6   : > { %5299 = vmatprep.subr.bf16.mxu1 %v5768_v47 }
0x184c   : > { %v3599_v23 = vpop.xlane.xlu0 %3598 }
0x184d   : > { %5676 = vrcp.f32 %v3599_v23  ;;  %v4644_v23 = vld [vmem:[%s7414_s6 + $0x16] ss:$0 sm:$0xff] }
0x1857   : > { %v5677_v37 = vpop.eup %5676 }
0x1893   : > { %v3639_v21 = vpop.f32.mrb[84].mxu1 }
0x1894   : > { %v3645_v1 = vmul.f32 %v5677_v37, %v3639_v21  ;;  %v5281_v35 = vpop.f32.mrb[85].mxu1  ;;  %v4645_v21 = vld [vmem:[%s7414_s6 + $0x17] ss:$0 sm:$0xff] }
0x1895   : > { %v3642_v3 = vpop.f32.mrb[86].mxu1 }
0x1896   : > { %v3646_v17 = vadd.f32 %v3645_v1, %v3542_v28  ;;  %v5282_v8 = vpop.f32.mrb[87].mxu1 }
0x1898   : > { %v3647_v57 = vpack.c.bf16 %v3646_v17, %v3646_v17 }
0x189a   : > { %5288 = vmatmul.mubr.msk.bf16.vlgmr.msra.gmra.mrb[88].mxu1 %vm407_vm0, %v3647_v57 }
0x189b   : > { %5307 = vmatprep.mubr.msk.bf16.mxu1 %vm5769_vm5, %v5768_v47  ;;  %5300 = vmatpush3.bf16.msra.mxu1 %v5464_v4  ;;  %v5471_v4 = vld [vmem:[%s7411_s3 + $0xd8] sm:$0xff]  }
0x189c   : > { %5301 = vmatprep.subr.bf16.mxu1 %v5768_v47 }
0x189f   : > { %5302 = vmatpush3.bf16.msra.mxu1 %v5465_v5  ;;  %v5472_v5 = vld [vmem:[%s7411_s3 + $0xe0] sm:$0xff]  }
0x18a0   : > { %5303 = vmatprep.subr.bf16.mxu1 %v5768_v47 }
0x18a3   : > { %5304 = vmatpush3.bf16.msra.mxu1 %v5466_v6 }
0x18a4   : > { %5305 = vmatprep.subr.bf16.mxu1 %v5768_v47 }
0x18a7   : > { %5306 = vmatpush3.bf16.msra.mxu1 %v5467_v2 }
0x18a8   : > { %5327 = vmatprep.subr.bf16.mxu1 %v5768_v47 }
0x196d   : > { %v3707_v12 = vpop.f32.mrb[88].mxu1 }
0x196e   : > { %v3708_v46 = vadd.f32 %v4616_v16, %v3707_v12  ;;  %v5289_v36 = vpop.f32.mrb[89].mxu1 }
0x196f   : > { %v3710_v63 = vpop.f32.mrb[90].mxu1  ;;  %v5469_v36 = vld [vmem:[%s7411_s3 + $0xc8] sm:$0xff]  }
0x1970   : > { %v3713_v58 = vadd.f32 %v3708_v46, %v6979_v24  ;;  %v5290_v34 = vpop.f32.mrb[91].mxu1  ;;  %v5463_v24 = vld [vmem:[%s7411_s3 + $0xb8] sm:$0xff]   ;;  %v5468_v46 = vld [vmem:[%s7411_s3 + $0xc0] sm:$0xff]  }
0x1971   : > { %5294 = vmatpush3.bf16.msra.mxu0 %v5463_v24 }
0x1972   : > { %v3714_v44 = vsel %vm407_vm0, %v3713_v58, 0.0  ;;  %5311 = vmatprep.subr.bf16.mxu0 %v5768_v47 }
0x1973   : > { %3715 = vadd.xlane.f32.xlu1 %v3714_v44 }
0x1a00   : > { %v3716_v29 = vpop.xlane.xlu1 %3715 }
0x1a01   : > { %v3717_v43 = vmul.f32 0.03125, %v3716_v29  ;;  %v4646_v29 = vld [vmem:[%s7414_s6 + $0x18] ss:$0 sm:$0xff] }
0x1a03   : > { %v3718_v19 = vsub.f32 %v3713_v58, %v3717_v43 }
0x1a05   : > { %v3719_v56 = vmul.f32 %v3718_v19, %v3718_v19 }
0x1a07   : > { %v3720_v33 = vsel %vm407_vm0, %v3719_v56, 0.0 }
0x1a08   : > { %3721 = vadd.xlane.f32.xlu0 %v3720_v33 }
0x1a95   : > { %v3722_v49 = vpop.xlane.xlu0 %3721 }
0x1a96   : > { %v3723_v18 = vmul.f32 0.03125, %v3722_v49  ;;  %v5473_v49 = vld [vmem:[%s7411_s3 + $0xe8] sm:$0xff]  }
0x1a98   : > { %v3724_v52 = vadd.f32 1e-05, %v3723_v18  ;;  %v4652_v18 = vld [vmem:[%s7414_s6 + $0x1a] ss:$0 sm:$0xff] }
0x1a9a   : > { %5678 = vrsqrt.f32 %v3724_v52 }
0x1aa4   : > { %v5679_v25 = vpop.eup %5678 }
0x1aa5   : > { %v3726_v30 = vmul.f32 %v5679_v25, %v3718_v19  ;;  %v4647_v19 = vld [vmem:[%s7414_s6 + $0x19] ss:$0 sm:$0xff] }
0x1aa7   : > { %v3732_v10 = vmul.f32 %v4620_v20, %v3726_v30 }
0x1aa9   : > { %v3738_v39 = vadd.f32 %v4621_v38, %v3732_v10  ;;  %v4660_v10 = vld [vmem:[%s7414_s6 + $0x1b] ss:$0 sm:$0xff] }
0x1aab   : > { %v3739_v50 = vpack.c.bf16 %v3738_v39, %v3738_v39 }
0x1aad   : > { %5296 = vmatmul.mubr.msk.bf16.vlgmr.msra.gmra.mrb[108].mxu0 %vm407_vm0, %v3739_v50 }
0x1aae   : > { %5315 = vmatprep.mubr.msk.bf16.mxu0 %vm5769_vm5, %v5768_v47  ;;  %5312 = vmatpush3.bf16.msra.mxu0 %v5468_v46 }
0x1aaf   : > { %5313 = vmatprep.subr.bf16.mxu0 %v5768_v47 }
0x1ab2   : > { %5314 = vmatpush3.bf16.msra.mxu0 %v5469_v36 }
0x1ab3   : > { %5319 = vmatprep.subr.bf16.mxu0 %v5768_v47 }
0x1b80   : > { %v3799_v59 = vpop.f32.mrb[108].mxu0 }
0x1b81   : > { %v3800_v55 = vadd.f32 %v4626_v27, %v3799_v59  ;;  %v5297_v41 = vpop.f32.mrb[109].mxu0 }
0x1b82   : > { %v3802_v45 = vpop.f32.mrb[110].mxu0 }
0x1b83   : > { %v3805_v40 = vmax.f32 %v3800_v55, 0.0  ;;  %v5298_v32 = vpop.f32.mrb[111].mxu0  ;;  %v5474_v55 = vld [vmem:[%s7413_s5] sm:$0xff]   ;;  %v5475_v45 = vld [vmem:[%s7413_s5 + $0x8] sm:$0xff]  }
0x1b84   : > { %v5477_v32 = vld [vmem:[%s7413_s5 + $0x18] sm:$0xff]  }
0x1b85   : > { %v3806_v0 = vpack.c.bf16 %v3805_v40, %v3805_v40  ;;  %v5476_v40 = vld [vmem:[%s7413_s5 + $0x10] sm:$0xff]  }
0x1b87   : > { %5308 = vmatmul.mubr.msk.bf16.vlgmr.msra.gmra.mrb[92].mxu1 %vm729_vm2, %v3806_v0  ;;  %v5478_v0 = vld [vmem:[%s7413_s5 + $0x20] sm:$0xff]  }
0x1b88   : > { %5331 = vmatprep.mubr.msk.bf16.mxu1 %vm5769_vm5, %v5768_v47  ;;  %5328 = vmatpush3.bf16.msra.mxu1 %v5472_v5 }
0x1b89   : > { %5329 = vmatprep.subr.bf16.mxu1 %v5768_v47 }
0x1b8c   : > { %5330 = vmatpush3.bf16.msra.mxu1 %v5473_v49 }
0x1b8d   : > { %5343 = vmatprep.subr.bf16.mxu1 %v5768_v47 }
0x1c5a   : > { %v3882_v7 = vpop.f32.mrb[92].mxu1 }
0x1c5b   : > { %v3883_v60 = vadd.f32 %v4638_v14, %v3882_v7  ;;  %v5309_v48 = vpop.f32.mrb[93].mxu1  ;;  %v5479_v14 = vld [vmem:[%s7413_s5 + $0x28] sm:$0xff]   ;;  %v5480_v7 = vld [vmem:[%s7413_s5 + $0x30] sm:$0xff]  }
0x1c5c   : > { %v3885_v61 = vpop.f32.mrb[94].mxu1 }
0x1c5d   : > { %v3888_v62 = vadd.f32 %v3883_v60, %v3738_v39  ;;  %v5310_v26 = vpop.f32.mrb[95].mxu1  ;;  %v5481_v60 = vld [vmem:[%s7413_s5 + $0x38] sm:$0xff]   ;;  %v5482_v61 = vld [vmem:[%s7411_s3 + $0xf0] sm:$0xff]  }
0x1c5e   : > { %v4668_v26 = vld [vmem:[%s7414_s6 + $0x1c] ss:$0 sm:$0xff] }
0x1c5f   : > { %v3889_v15 = vsel %vm407_vm0, %v3888_v62, 0.0 }
0x1c60   : > { %3890 = vadd.xlane.f32.xlu1 %v3889_v15 }
0x1ced   : > { %v3891_v22 = vpop.xlane.xlu1 %3890 }
0x1cee   : > { %v3892_v11 = vmul.f32 0.03125, %v3891_v22 }
0x1cf0   : > { %v3893_v9 = vsub.f32 %v3888_v62, %v3892_v11  ;;  %v5483_v62 = vld [vmem:[%s7411_s3 + $0xf8] sm:$0xff]  }
0x1cf2   : > { %v3894_v42 = vmul.f32 %v3893_v9, %v3893_v9 }
0x1cf4   : > { %v3895_v31 = vsel %vm407_vm0, %v3894_v42, 0.0 }
0x1cf5   : > { %3896 = vadd.xlane.f32.xlu0 %v3895_v31 }
0x1d82   : > { %v3897_v54 = vpop.xlane.xlu0 %3896 }
0x1d83   : > { %v3898_v28 = vmul.f32 0.03125, %v3897_v54 }
0x1d85   : > { %v3899_v53 = vadd.f32 1e-05, %v3898_v28 }
0x1d87   : > { %5680 = vrsqrt.f32 %v3899_v53 }
0x1d91   : > { %v5681_v51 = vpop.eup %5680 }
0x1d92   : > { %v3901_v37 = vmul.f32 %v5681_v51, %v3893_v9 }
0x1d94   : > { %v3907_v1 = vmul.f32 %v4644_v23, %v3901_v37 }
0x1d96   : > { %v3913_v35 = vadd.f32 %v4645_v21, %v3907_v1 }
0x1d98   : > { %v3914_v3 = vsel %vm407_vm0, %v3913_v35, 0.0 }
0x1d99   : > { %3915 = vadd.xlane.f32.xlu1 %v3914_v3 }
0x1e26   : > { %v3916_v17 = vpop.xlane.xlu1 %3915 }
0x1e27   : > { %v3917_v8 = vmul.f32 0.03125, %v3916_v17 }
0x1e29   : > { %v3918_v57 = vsub.f32 %v3913_v35, %v3917_v8 }
0x1e2b   : > { %v3919_v16 = vmul.f32 %v3918_v57, %v3918_v57 }
0x1e2d   : > { %v3920_v12 = vsel %vm407_vm0, %v3919_v16, 0.0 }
0x1e2e   : > { %3921 = vadd.xlane.f32.xlu0 %v3920_v12 }
0x1ebb   : > { %v3922_v63 = vpop.xlane.xlu0 %3921 }
0x1ebc   : > { %v3923_v58 = vmul.f32 0.03125, %v3922_v63 }
0x1ebe   : > { %v3924_v34 = vadd.f32 1e-05, %v3923_v58 }
0x1ec0   : > { %5682 = vrsqrt.f32 %v3924_v34 }
0x1eca   : > { %v5683_v44 = vpop.eup %5682 }
0x1ecb   : > { %v3926_v43 = vmul.f32 %v5683_v44, %v3918_v57 }
0x1ecd   : > { %v3932_v56 = vmul.f32 %v4646_v29, %v3926_v43 }
0x1ecf   : > { %v3938_v33 = vadd.f32 %v4647_v19, %v3932_v56 }
0x1ed1   : > { %v3939_v24 = vpack.c.bf16 %v3938_v33, %v3938_v33 }
0x1ed3   : > { %5316 = vmatmul.mubr.msk.bf16.vlgmr.msra.gmra.mrb[112].mxu0 %vm407_vm0, %v3939_v24 }
0x1ed4   : > { %5320 = vmatpush3.bf16.msra.mxu0 %v5470_v13  ;;  %5323 = vmatprep.mubr.msk.bf16.mxu0 %vm5769_vm5, %v5768_v47 }
0x1ed5   : > { %5321 = vmatprep.subr.bf16.mxu0 %v5768_v47 }
0x1ed8   : > { %5322 = vmatpush3.bf16.msra.mxu0 %v5471_v4 }
0x1ed9   : > { %5335 = vmatprep.subr.bf16.mxu0 %v5768_v47 }
0x1edb   : > { %5324 = vmatmul.mubr.msk.bf16.vlgmr.msra.gmra.mrb[116].mxu0 %vm407_vm0, %v3939_v24 }
0x1edc   : > { %5339 = vmatprep.mubr.msk.bf16.mxu0 %vm5769_vm5, %v5768_v47  ;;  %5336 = vmatpush3.bf16.msra.mxu0 %v5482_v61 }
0x1edd   : > { %5337 = vmatprep.subr.bf16.mxu0 %v5768_v47 }
0x1ee0   : > { %5338 = vmatpush3.bf16.msra.mxu0 %v5483_v62 }
0x1fa6   : > { %v3999_v52 = vpop.f32.mrb[112].mxu0 }
0x1fa7   : > { %v4000_v25 = vadd.f32 %v4652_v18, %v3999_v52  ;;  %v5317_v20 = vpop.f32.mrb[113].mxu0 }
0x1fa8   : > { %v4002_v30 = vpop.f32.mrb[114].mxu0 }
0x1fa9   : > { %4005 = vst [vmem:[%s326_s24] sm:$0xff] %v4000_v25  ;;  %v5318_v38 = vpop.f32.mrb[115].mxu0  ;;  %v4207_v48 = vpack.c.bf16 %v4000_v25, %v4000_v25 }
0x1fae   : > { %v4062_v39 = vpop.f32.mrb[116].mxu0 }
0x1faf   : > { %v4063_v50 = vadd.f32 %v4660_v10, %v4062_v39  ;;  %v5325_v6 = vpop.f32.mrb[117].mxu0 }
0x1fb0   : > { %v4065_v2 = vpop.f32.mrb[118].mxu0 }
0x1fb1   : > { %v4068_v27 = vmax.f32 %v4063_v50, 0.0  ;;  %v5326_v59 = vpop.f32.mrb[119].mxu0 }
0x1fb3   : > { %v4069_v41 = vpack.c.bf16 %v4068_v27, %v4068_v27 }
0x1fb5   : > { %5332 = vmatmul.mubr.msk.bf16.vlgmr.msra.gmra.mrb[96].mxu1 %vm407_vm0, %v4069_v41 }
0x1fb6   : > { %5344 = vmatpush3.bf16.msra.mxu1 %v5474_v55  ;;  %5359 = vmatprep.mubr.msk.bf16.mxu1 %vm5769_vm5, %v5768_v47 }
0x1fb7   : > { %5345 = vmatprep.subr.bf16.mxu1 %v5768_v47 }
0x1fba   : > { %5346 = vmatpush3.bf16.msra.mxu1 %v5475_v45 }
0x1fbb   : > { %5347 = vmatprep.subr.bf16.mxu1 %v5768_v47 }
0x1fbe   : > { %5348 = vmatpush3.bf16.msra.mxu1 %v5476_v40 }
0x1fbf   : > { %5349 = vmatprep.subr.bf16.mxu1 %v5768_v47 }
0x1fc2   : > { %5350 = vmatpush3.bf16.msra.mxu1 %v5477_v32 }
0x1fc3   : > { %5351 = vmatprep.subr.bf16.mxu1 %v5768_v47 }
0x1fc6   : > { %5352 = vmatpush3.bf16.msra.mxu1 %v5478_v0 }
0x1fc7   : > { %5353 = vmatprep.subr.bf16.mxu1 %v5768_v47 }
0x1fca   : > { %5354 = vmatpush3.bf16.msra.mxu1 %v5479_v14 }
0x1fcb   : > { %5355 = vmatprep.subr.bf16.mxu1 %v5768_v47 }
0x1fce   : > { %5356 = vmatpush3.bf16.msra.mxu1 %v5480_v7 }
0x1fcf   : > { %5357 = vmatprep.subr.bf16.mxu1 %v5768_v47  ;;  %v4680_v47 = vld [vmem:[%s7414_s6 + $0x1e] ss:$0 sm:$0xff] }
0x1fd2   : > { %5358 = vmatpush3.bf16.msra.mxu1 %v5481_v60 }
0x1fd5   : > { %5360 = vmatmul.mubr.bf16.vlgmr.msra.gmra.mrb[100].mxu1 %v4207_v48 }
0x2088   : > { %v4129_v15 = vpop.f32.mrb[96].mxu1 }
0x2089   : > { %v4130_v22 = vadd.f32 %v4668_v26, %v4129_v15  ;;  %v5333_v11 = vpop.f32.mrb[97].mxu1 }
0x208a   : > { %v4132_v9 = vpop.f32.mrb[98].mxu1 }
0x208b   : > { %v4135_v42 = vmax.f32 %v4130_v22, 0.0  ;;  %v5334_v31 = vpop.f32.mrb[99].mxu1 }
0x208d   : > { %v4136_v54 = vpack.c.bf16 %v4135_v42, %v4135_v42 }
0x208f   : > { %5340 = vmatmul.mubr.msk.bf16.vlgmr.msra.gmra.mrb[120].mxu0 %vm407_vm0, %v4136_v54 }
0x20a8   : > { %v4311_v28 = vpop.f32.mrb[100].mxu1 }
0x20a9   : > { %v4312_v53 = vadd.f32 %v4680_v47, %v4311_v28  ;;  %v5361_v51 = vpop.f32.mrb[101].mxu1 }
0x20aa   : > { %v4314_v23 = vpop.f32.mrb[102].mxu1 }
0x20ab   : > { %4317 = vst.msk [vmem:[%s351_s27] sm:$0xff] %vm2464_vm7, %v4312_v53  ;;  %v5362_v37 = vpop.f32.mrb[103].mxu1  ;;  %s5708_s27 = scalar_lea.vmem %s5707_s16, 256 }
0x20ac   : > { %p5710_p1 = scmp.lt.s32.totalorder %s5708_s27, %s5702_s26 }
0x20ae   : > { %p5711_p2 = por %p5710_p1, %p5709_p0 }
0x20b0   : > { %p5712_p3 = pnand %p5711_p2, %p5705_p13 }
0x20b2   : > { %5715 = shalt.err (!%p5712_p3)
}
0x20b3   : > { %s5716_s13 = scalar_lea.hbm %s7361_s22, 128  ;;  %s5720_s24 = scalar_lea.hbm %s7415_s7, 256 }
0x20b4   : > { %p5717_p4 = scmp.ne.s32.totalorder %s7361_s22, %s5716_s13  ;;  %p5721_p9 = scmp.lt.u32.totalorder %s7361_s22, %s7415_s7 }
0x20b5   : > { %p5722_p10 = scmp.lt.u32.totalorder %s5720_s24, %s5716_s13  ;;  %p5724_p12 = scmp.lt.u32.totalorder %s5716_s13, %s7361_s22 }
0x20b6   : > { %p5718_p7 = pnand %p5717_p4, %p5859_p5 }
0x20b7   : > { %p5723_p11 = por %p5722_p10, %p5721_p9 }
0x20b8   : > { %p5719_p8 = pneg %p5718_p7 }
0x20b9   : > { %p5725_p13 = por %p5724_p12, %p5723_p11 }
0x20bb   : > { %p5726_p0 = pnand %p5725_p13, %p5719_p8 }
0x20bd   : > { %5729 = shalt.err (!%p5726_p0)
}
0x20be   : > { %5395 = dma.vmem_to_hbm [thread:$0]  (%p5859_p5), %s4341_s14, 128, %s7361_s22, %s4319_s0   ;;  %v4676_v21 = vld [vmem:[%s7414_s6 + $0x1d] ss:$0 sm:$0xff] }
0x20bf   : > { %s7481_s26 = sshll.u32 %s5877_s25, 3 }
0x20c0   : > { %s347_s19 = scalar_lea.vmem %s7416_s8, %s7481_s26 }
0x2162   : > { %v4196_v1 = vpop.f32.mrb[120].mxu0 }
0x2163   : > { %v4197_v35 = vadd.f32 %v4676_v21, %v4196_v1  ;;  %v5341_v3 = vpop.f32.mrb[121].mxu0 }
0x2164   : > { %v4199_v17 = vpop.f32.mrb[122].mxu0 }
0x2165   : > { %v4202_v8 = vmul.f32 0.5, %v4197_v35  ;;  %v5342_v57 = vpop.f32.mrb[123].mxu0 }
0x2167   : > { %5684 = vtanh.f32 %v4202_v8 }
0x2171   : > { %v5685_v16 = vpop.eup %5684 }
0x2172   : > { %v4204_v12 = vadd.f32 1.0, %v5685_v16 }
0x2174   : > { %v4205_v46 = vmul.f32 0.5, %v4204_v12 }
0x2176   : > { %4206 = vst.msk [vmem:[%s347_s19] sm:$0xff] %vm2464_vm7, %v4205_v46 }
0x2177 PF: > { %p5401_p5 = scmp.ge.s32.totalorder %s5764_s12, 2  ;;  %s4358_s0 = sand.u32 1, %s5752_s30  }
0x2178   : > { %s4359_s14 = scalar_lea.sflag [#allocation3], %s4358_s0 }
0x2179   : > { %p5398_p1 = pnand %p5401_p5, %p5863_p6 }
0x217b   : > { %5747 = dma.done.wait (!%p5398_p1), %s4359_s14, 128  }
0x217c   : > { %5749 = vsyncadd (!%p5398_p1), %s4359_s14, 4294967168  ;;  %s7482_s25 = sld [smem:[#allocation5_spill]]  ;;  %p20_p2 = scmp.ge.s32.totalorder %s5846_s15, 4  }
0x217d   : > { %s7483_s30 = smov %s5756_s10  ;;  %s7484_s10 = smov %s5760_s11 }
0x217e   : > { %s7486_s12 = smov %s5846_s15  ;;  %22 = sbr.rel (!%p20_p2) target bundleno = 5 (0x5), region = 122 }
0x2182   : > { %s7485_s11 = smov %s7482_s25 }
0x2185   :  { %4378 = vsyncpa [#allocation3], 1 }
0x2186   :  { %4380 = vsyncpa [#allocation3 + $0x1], 1 }

</bundles_post_ra>
